<compile_context>
chip_gen: v5e
topology: v5e:2x2
jax: 0.10.0
libtpu: 0.0.40
codegen_flags: <defaults>
</compile_context>

<pallas_src>
import functools

import jax
import jax.numpy as jnp
import numpy as np
from jax.experimental import pallas as pl
from jax.experimental.pallas import tpu as pltpu

MAX_ROW = 8
MAX_COL = 8
HW = MAX_ROW * MAX_COL                      # 64
FILTER_SIZE = 32
HEAD_FC_SIZE = 512
FEAT_DIM = HW * FILTER_SIZE                 # 2048
BN_EPS = 1e-5
OUT_LANES = 128                             # lane-padded output slab width
DEFAULT_BLOCK_B = 512                       # sweep point: 256 / 512 / 1024 all fit VMEM


# ----------------------------- Pallas kernel -------------------------------

def value_head_kernel(x_ref, wc_ref, shift_ref, w1_ref, b1_ref,
                      w2_ref, b2_ref, w3_ref, b3_ref, o_ref):
    cin_g, feat_g = wc_ref.shape            # (GROUP*C_in, GROUP*FILTER_SIZE)
    n_chunks = x_ref.shape[1] // cin_g      # static (e.g. 2)

    x = x_ref[...]
    wc = wc_ref[...]

    # Conv(1x1)+BN+ReLU as n_chunks small lane-dense matmuls against one shared
    # block-diagonal block; each chunk is immediately shifted+ReLU'd+cast to
    # bf16 and folded into FC1 as a partial K-sum, so the (Bt, FEAT_DIM) f32
    # intermediate never materializes in VMEM.
    acc1 = None
    for ci in range(n_chunks):              # static trip count
        conv = jnp.dot(x[:, ci * cin_g:(ci + 1) * cin_g], wc,
                       preferred_element_type=jnp.float32)
        conv = jnp.maximum(conv + shift_ref[:, ci * feat_g:(ci + 1) * feat_g],
                           0.0).astype(jnp.bfloat16)
        part = jnp.dot(conv, w1_ref[ci * feat_g:(ci + 1) * feat_g, :],
                       preferred_element_type=jnp.float32)
        acc1 = part if acc1 is None else acc1 + part

    h = jnp.maximum(acc1 + b1_ref[...], 0.0).astype(jnp.bfloat16)
    h = jnp.dot(h, w2_ref[...], preferred_element_type=jnp.float32) + b2_ref[...]
    h = jnp.maximum(h, 0.0)

    # Final (Bt,512)->(Bt,1) projection: VPU multiply + XLU lane reduction
    # (an N=1 MXU dot would waste it).
    v = jnp.sum(h * w3_ref[...], axis=-1, keepdims=True) + b3_ref[...]
    # Lane-dense slab (unmasked vst); the wrapper slices [:, :1].
    # TODO(synk): pack 128 per-sample scalars per row (XLU transpose) to cut
    # output HBM writes ~128x; modest win at large B only.
    o_ref[...] = jnp.broadcast_to(jnp.tanh(v), o_ref.shape)


# ------------------------------ JAX wrapper --------------------------------

def _round_up(x, m):
    return ((x + m - 1) // m) * m


@functools.lru_cache(maxsize=None)
def _vmem_limit_bytes():
    kind = jax.devices()[0].device_kind.lower()
    if "v7" in kind:
        return 48 * 1024 * 1024     # v7x: 64 MiB physical per TC, leave headroom
    return 64 * 1024 * 1024         # v5e/v6e: 128 MiB physical


@functools.partial(jax.jit, static_argnames=("block_b", "vmem_limit"))
def _value_head_padded(x_flat, params, block_b, vmem_limit):
    b_pad, in_dim = x_flat.shape
    nb = b_pad // block_b

    def w_spec(arr):
        # Constant index_map -> weights stay resident/deduped across grid steps.
        return pl.BlockSpec(arr.shape, lambda i: (0, 0))

    grid_spec = pltpu.PrefetchScalarGridSpec(
        num_scalar_prefetch=0,
        grid=(nb,),
        in_specs=[
            # batch-tiled activations (double-buffered by the pipeline)
            pl.BlockSpec((block_b, in_dim), lambda i: (i, 0)),
            w_spec(params["wc"]), w_spec(params["shift"]),
            w_spec(params["w1"]), w_spec(params["b1"]),
            w_spec(params["w2"]), w_spec(params["b2"]),
            w_spec(params["w3"]), w_spec(params["b3"]),
        ],
        out_specs=pl.BlockSpec((block_b, OUT_LANES), lambda i: (i, 0)),
    )

    return pl.pallas_call(
        value_head_kernel,
        out_shape=jax.ShapeDtypeStruct((b_pad, OUT_LANES), jnp.float32),
        grid_spec=grid_spec,
        compiler_params=pltpu.CompilerParams(
            dimension_semantics=("parallel",),       # megacore sharding on v7x
            vmem_limit_bytes=vmem_limit,
        ),
    )(x_flat, params["wc"], params["shift"], params["w1"], params["b1"],
      params["w2"], params["b2"], params["w3"], params["b3"])


def value_head_forward(x_nchw, params, block_b=DEFAULT_BLOCK_B):
    B, C, H, W = x_nchw.shape
    assert (H, W) == (MAX_ROW, MAX_COL)
    # NCHW -> per-sample HWC-flattened rows (layout plumbing only).
    x_flat = jnp.transpose(x_nchw, (0, 2, 3, 1)).reshape(B, H * W * C)

    # Balanced batch tiles:
    #  * >= 2 grid steps so the "parallel" batch axis spans both v7x TCs,
    #  * tile rows rounded to 16 (bf16 sublane packing),
    #  * tiles sized ~B/nt instead of padding B up to a block_b multiple
    #    (B=300 pads to 320, not 512).
    nt = max(2, pl.cdiv(B, block_b))
    bt = _round_up(pl.cdiv(B, nt), 16)
    b_pad = bt * nt
    if b_pad != B:
        x_flat = jnp.pad(x_flat, ((0, b_pad - B), (0, 0)))

    out = _value_head_padded(x_flat.astype(jnp.bfloat16), params, bt,
                             _vmem_limit_bytes())
    return out[:B, :1]


# ------------------------- deterministic parameters ------------------------

def _pick_group(in_channels):
    # Smallest divisor g of HW such that the conv-block K dimension (g*C_in)
    # is lane-aligned (multiple of 128); fall back to the full kron otherwise.
    for g in (1, 2, 4, 8, 16, 32, 64):
        if HW % g == 0 and (g * in_channels) % 128 == 0:
            return g
    return HW


def init_params(key, in_channels):
    ks = jax.random.split(key, 12)

    # PyTorch-layout weights (out, in)
    conv_w_pt = jax.random.normal(ks[0], (FILTER_SIZE, in_channels), jnp.float32) * 0.1
    conv_b = jax.random.normal(ks[1], (FILTER_SIZE,), jnp.float32) * 0.1
    gamma = 1.0 + 0.1 * jax.random.normal(ks[2], (FILTER_SIZE,), jnp.float32)
    beta = 0.1 * jax.random.normal(ks[3], (FILTER_SIZE,), jnp.float32)
    running_mean = 0.1 * jax.random.normal(ks[4], (FILTER_SIZE,), jnp.float32)
    running_var = jax.random.uniform(ks[5], (FILTER_SIZE,), jnp.float32, 0.5, 1.5)
    scale = gamma / jnp.sqrt(running_var + BN_EPS)
    shift = beta - running_mean * scale

    w1_pt = jax.random.normal(ks[6], (HEAD_FC_SIZE, FEAT_DIM), jnp.float32) * 0.02
    b1 = jax.random.normal(ks[7], (HEAD_FC_SIZE,), jnp.float32) * 0.02
    w2_pt = jax.random.normal(ks[8], (HEAD_FC_SIZE, HEAD_FC_SIZE), jnp.float32) * 0.02
    b2 = jax.random.normal(ks[9], (HEAD_FC_SIZE,), jnp.float32) * 0.02
    w3_pt = jax.random.normal(ks[10], (1, HEAD_FC_SIZE), jnp.float32) * 0.02
    b3 = jax.random.normal(ks[11], (1,), jnp.float32) * 0.02

    # Fold conv bias + eval-mode BN into a per-channel weight/shift:
    #   BN(Wx + b) = (scale*W) x + (scale*b + shift)
    w_fused = (conv_w_pt * scale[:, None]).T                 # (C_in, FILTER)
    shift_fused = conv_b * scale + shift                     # (FILTER,)

    # Small block-diagonal conv block (shared across HW/GROUP column chunks):
    # row index = hw_local*C_in + c_in, col = hw_local*FILTER + c_out.
    g = _pick_group(in_channels)
    wc_blk = jnp.kron(jnp.eye(g, dtype=jnp.float32), w_fused)   # (g*C_in, g*FILTER)
    shift_big = jnp.tile(shift_fused, HW).reshape(1, FEAT_DIM)

    # Column permutation of w1: PyTorch flatten index j = c*(H*W) + hw,
    # kernel flatten index j' = hw*FILTER_SIZE + c  =>  perm[j'] = j
    hw = np.arange(HW)
    c = np.arange(FILTER_SIZE)
    perm = (c[None, :] * HW + hw[:, None]).reshape(-1)
    w1_kernel = w1_pt[:, perm].T                             # (FEAT_DIM, HEAD_FC_SIZE)

    params = dict(
        wc=wc_blk.astype(jnp.bfloat16),
        shift=shift_big,                                     # f32
        w1=w1_kernel.astype(jnp.bfloat16),
        b1=b1.reshape(1, -1),
        w2=w2_pt.T.astype(jnp.bfloat16),
        b2=b2.reshape(1, -1),
        w3=w3_pt.reshape(1, -1),                             # f32, used on VPU
        b3=b3.reshape(1, 1),
    )
    # PyTorch-layout f32 copies for the pure-JAX reference check.
    ref = dict(conv_w=conv_w_pt, conv_b=conv_b, scale=scale, shift=shift,
               w1=w1_pt, b1=b1, w2=w2_pt, b2=b2, w3=w3_pt, b3=b3)
    return params, ref


def reference_forward(x_nchw, ref):
    # Pure-JAX f32 emulation of the PyTorch module (NCHW, CHW flatten, eval BN).
    B = x_nchw.shape[0]
    x_nhwc = jnp.transpose(x_nchw, (0, 2, 3, 1))
    conv = jnp.einsum('bhwc,oc->bhwo', x_nhwc, ref["conv_w"]) + ref["conv_b"]
    act = jnp.maximum(conv * ref["scale"] + ref["shift"], 0.0)
    flat = jnp.transpose(act, (0, 3, 1, 2)).reshape(B, -1)   # CHW flatten
    h = jnp.maximum(flat @ ref["w1"].T + ref["b1"], 0.0)
    h = jnp.maximum(h @ ref["w2"].T + ref["b2"], 0.0)
    return jnp.tanh(h @ ref["w3"].T + ref["b3"])


# ----------------------------------- main -----------------------------------

if __name__ == "__main__":
    key = jax.random.PRNGKey(0)
    k_x1, k_x2, k_p = jax.random.split(key, 3)

    C_IN = 4
    params, ref = init_params(k_p, C_IN)

    # Small case (B=2 -> two 16-row tiles) and a ragged multi-tile case
    # (B=300 -> two balanced 160-row tiles, only 20 padded rows).
    for B, kx in ((2, k_x1), (300, k_x2)):
        x = jax.random.normal(kx, (B, C_IN, MAX_ROW, MAX_COL), jnp.float32)
        out = jax.block_until_ready(value_head_forward(x, params))
        assert out.shape == (B, 1), out.shape
        expected = reference_forward(x, ref)
        # bf16 MXU inputs with f32 accumulation -> loosened tolerance vs f32 ref.
        np.testing.assert_allclose(np.asarray(out), np.asarray(expected),
                                   rtol=2e-2, atol=2e-2)

    print("KERNEL_OK")
</pallas_src>

<mosaic_0001>
module attributes {stable_mosaic.version = 11 : i64} {
  func.func @value_head_kernel(%arg0: i32, %arg1: memref<16x256xbf16, #tpu.memory_space<vmem>>, %arg2: memref<128x1024xbf16, #tpu.memory_space<vmem>>, %arg3: memref<1x2048xf32, #tpu.memory_space<vmem>>, %arg4: memref<2048x512xbf16, #tpu.memory_space<vmem>>, %arg5: memref<1x512xf32, #tpu.memory_space<vmem>>, %arg6: memref<512x512xbf16, #tpu.memory_space<vmem>>, %arg7: memref<1x512xf32, #tpu.memory_space<vmem>>, %arg8: memref<1x512xf32, #tpu.memory_space<vmem>>, %arg9: memref<1x1xf32, #tpu.memory_space<vmem>>, %arg10: memref<16x128xf32, #tpu.memory_space<vmem>>) attributes {dimension_semantics = [#tpu.dimension_semantics<parallel>], iteration_bounds = array<i64: 2>, scalar_prefetch = 0 : i64, scratch_operands = 0 : i64, tpu.core_type = #tpu.core_type<tc>, window_params = [{transform_indices = @transform_0, window_bounds = array<i64: 16, 256>}, {pipeline_mode = #tpu.pipeline_mode<synchronous>, transform_indices = @transform_1, window_bounds = array<i64: 128, 1024>}, {pipeline_mode = #tpu.pipeline_mode<synchronous>, transform_indices = @transform_2, window_bounds = array<i64: 1, 2048>}, {pipeline_mode = #tpu.pipeline_mode<synchronous>, transform_indices = @transform_3, window_bounds = array<i64: 2048, 512>}, {pipeline_mode = #tpu.pipeline_mode<synchronous>, transform_indices = @transform_4, window_bounds = array<i64: 1, 512>}, {pipeline_mode = #tpu.pipeline_mode<synchronous>, transform_indices = @transform_5, window_bounds = array<i64: 512, 512>}, {pipeline_mode = #tpu.pipeline_mode<synchronous>, transform_indices = @transform_6, window_bounds = array<i64: 1, 512>}, {pipeline_mode = #tpu.pipeline_mode<synchronous>, transform_indices = @transform_7, window_bounds = array<i64: 1, 512>}, {pipeline_mode = #tpu.pipeline_mode<synchronous>, transform_indices = @transform_8, window_bounds = array<i64: 1, 1>}, {transform_indices = @transform_9, window_bounds = array<i64: 16, 128>}]} {
    %c0 = arith.constant 0 : index
    %c0_0 = arith.constant 0 : index
    %0 = vector.load %arg1[%c0, %c0_0] : memref<16x256xbf16, #tpu.memory_space<vmem>>, vector<16x256xbf16>
    %c0_1 = arith.constant 0 : index
    %c0_2 = arith.constant 0 : index
    %1 = vector.load %arg2[%c0_1, %c0_2] : memref<128x1024xbf16, #tpu.memory_space<vmem>>, vector<128x1024xbf16>
    %2 = vector.extract_strided_slice %0 {offsets = [0, 0], sizes = [16, 128], strides = [1, 1]} : vector<16x256xbf16> to vector<16x128xbf16>
    %cst = arith.constant dense<0.000000e+00> : vector<16x1024xf32>
    %3 = tpu.matmul %2, %1, %cst {dimension_numbers = #tpu.dot_dimension_numbers<[1], [0], [0], [1], [0, 0, 1, 1], [], []>} : vector<16x128xbf16>, vector<128x1024xbf16>, vector<16x1024xf32> -> vector<16x1024xf32>
    %c0_3 = arith.constant 0 : index
    %c0_4 = arith.constant 0 : index
    %4 = vector.load %arg3[%c0_3, %c0_4] : memref<1x2048xf32, #tpu.memory_space<vmem>>, vector<1x1024xf32>
    %5 = vector.broadcast %4 : vector<1x1024xf32> to vector<16x1024xf32>
    %6 = arith.addf %3, %5 : vector<16x1024xf32>
    %cst_5 = arith.constant 0.000000e+00 : f32
    %7 = vector.broadcast %cst_5 : f32 to vector<16x1024xf32>
    %8 = arith.maximumf %6, %7 : vector<16x1024xf32>
    %9 = arith.truncf %8 : vector<16x1024xf32> to vector<16x1024xbf16>
    %c0_6 = arith.constant 0 : index
    %c0_7 = arith.constant 0 : index
    %10 = vector.load %arg4[%c0_6, %c0_7] : memref<2048x512xbf16, #tpu.memory_space<vmem>>, vector<1024x512xbf16>
    %cst_8 = arith.constant dense<0.000000e+00> : vector<16x512xf32>
    %11 = tpu.matmul %9, %10, %cst_8 {dimension_numbers = #tpu.dot_dimension_numbers<[1], [0], [0], [1], [0, 0, 1, 1], [], []>} : vector<16x1024xbf16>, vector<1024x512xbf16>, vector<16x512xf32> -> vector<16x512xf32>
    %12 = vector.extract_strided_slice %0 {offsets = [0, 128], sizes = [16, 128], strides = [1, 1]} : vector<16x256xbf16> to vector<16x128xbf16>
    %cst_9 = arith.constant dense<0.000000e+00> : vector<16x1024xf32>
    %13 = tpu.matmul %12, %1, %cst_9 {dimension_numbers = #tpu.dot_dimension_numbers<[1], [0], [0], [1], [0, 0, 1, 1], [], []>} : vector<16x128xbf16>, vector<128x1024xbf16>, vector<16x1024xf32> -> vector<16x1024xf32>
    %c0_10 = arith.constant 0 : index
    %c1024 = arith.constant 1024 : index
    %14 = vector.load %arg3[%c0_10, %c1024] : memref<1x2048xf32, #tpu.memory_space<vmem>>, vector<1x1024xf32>
    %15 = vector.broadcast %14 : vector<1x1024xf32> to vector<16x1024xf32>
    %16 = arith.addf %13, %15 : vector<16x1024xf32>
    %cst_11 = arith.constant 0.000000e+00 : f32
    %17 = vector.broadcast %cst_11 : f32 to vector<16x1024xf32>
    %18 = arith.maximumf %16, %17 : vector<16x1024xf32>
    %19 = arith.truncf %18 : vector<16x1024xf32> to vector<16x1024xbf16>
    %c1024_12 = arith.constant 1024 : index
    %c0_13 = arith.constant 0 : index
    %20 = vector.load %arg4[%c1024_12, %c0_13] : memref<2048x512xbf16, #tpu.memory_space<vmem>>, vector<1024x512xbf16>
    %cst_14 = arith.constant dense<0.000000e+00> : vector<16x512xf32>
    %21 = tpu.matmul %19, %20, %cst_14 {dimension_numbers = #tpu.dot_dimension_numbers<[1], [0], [0], [1], [0, 0, 1, 1], [], []>} : vector<16x1024xbf16>, vector<1024x512xbf16>, vector<16x512xf32> -> vector<16x512xf32>
    %22 = arith.addf %11, %21 : vector<16x512xf32>
    %c0_15 = arith.constant 0 : index
    %c0_16 = arith.constant 0 : index
    %23 = vector.load %arg5[%c0_15, %c0_16] : memref<1x512xf32, #tpu.memory_space<vmem>>, vector<1x512xf32>
    %24 = vector.broadcast %23 : vector<1x512xf32> to vector<16x512xf32>
    %25 = arith.addf %22, %24 : vector<16x512xf32>
    %cst_17 = arith.constant 0.000000e+00 : f32
    %26 = vector.broadcast %cst_17 : f32 to vector<16x512xf32>
    %27 = arith.maximumf %25, %26 : vector<16x512xf32>
    %28 = arith.truncf %27 : vector<16x512xf32> to vector<16x512xbf16>
    %c0_18 = arith.constant 0 : index
    %c0_19 = arith.constant 0 : index
    %29 = vector.load %arg6[%c0_18, %c0_19] : memref<512x512xbf16, #tpu.memory_space<vmem>>, vector<512x512xbf16>
    %cst_20 = arith.constant dense<0.000000e+00> : vector<16x512xf32>
    %30 = tpu.matmul %28, %29, %cst_20 {dimension_numbers = #tpu.dot_dimension_numbers<[1], [0], [0], [1], [0, 0, 1, 1], [], []>} : vector<16x512xbf16>, vector<512x512xbf16>, vector<16x512xf32> -> vector<16x512xf32>
    %c0_21 = arith.constant 0 : index
    %c0_22 = arith.constant 0 : index
    %31 = vector.load %arg7[%c0_21, %c0_22] : memref<1x512xf32, #tpu.memory_space<vmem>>, vector<1x512xf32>
    %32 = vector.broadcast %31 : vector<1x512xf32> to vector<16x512xf32>
    %33 = arith.addf %30, %32 : vector<16x512xf32>
    %cst_23 = arith.constant 0.000000e+00 : f32
    %34 = vector.broadcast %cst_23 : f32 to vector<16x512xf32>
    %35 = arith.maximumf %33, %34 : vector<16x512xf32>
    %c0_24 = arith.constant 0 : index
    %c0_25 = arith.constant 0 : index
    %36 = vector.load %arg8[%c0_24, %c0_25] : memref<1x512xf32, #tpu.memory_space<vmem>>, vector<1x512xf32>
    %37 = vector.broadcast %36 : vector<1x512xf32> to vector<16x512xf32>
    %38 = arith.mulf %35, %37 : vector<16x512xf32>
    %cst_26 = arith.constant dense<0.000000e+00> : vector<16xf32>
    %39 = vector.multi_reduction <add>, %38, %cst_26 [1] : vector<16x512xf32> to vector<16xf32>
    %40 = vector.shape_cast %39 : vector<16xf32> to vector<16x1xf32>
    %c0_27 = arith.constant 0 : index
    %c0_28 = arith.constant 0 : index
    %41 = vector.load %arg9[%c0_27, %c0_28] : memref<1x1xf32, #tpu.memory_space<vmem>>, vector<1x1xf32>
    %42 = vector.broadcast %41 : vector<1x1xf32> to vector<16x1xf32>
    %43 = arith.addf %40, %42 : vector<16x1xf32>
    %44 = math.tanh %43 : vector<16x1xf32>
    %45 = vector.shape_cast %44 : vector<16x1xf32> to vector<16x1xf32>
    %46 = vector.broadcast %45 : vector<16x1xf32> to vector<16x128xf32>
    %c0_29 = arith.constant 0 : index
    %c0_30 = arith.constant 0 : index
    %47 = vector.load %arg10[%c0_29, %c0_30] : memref<16x128xf32, #tpu.memory_space<vmem>>, vector<16x128xf32>
    tpu.vector_store %arg10[%c0_29, %c0_30], %46 {strides = array<i32>} : memref<16x128xf32, #tpu.memory_space<vmem>>, vector<16x128xf32>,
    return
  }
  func.func @transform_0(%arg0: i32) -> (i32, i32) {
    %c0_i32 = arith.constant 0 : i32
    %c0_i32_0 = arith.constant 0 : i32
    return %arg0, %c0_i32 : i32, i32
  }
  func.func @transform_1(%arg0: i32) -> (i32, i32) {
    %c0_i32 = arith.constant 0 : i32
    %c0_i32_0 = arith.constant 0 : i32
    %c0_i32_1 = arith.constant 0 : i32
    return %c0_i32, %c0_i32_0 : i32, i32
  }
  func.func @transform_2(%arg0: i32) -> (i32, i32) {
    %c0_i32 = arith.constant 0 : i32
    %c0_i32_0 = arith.constant 0 : i32
    %c0_i32_1 = arith.constant 0 : i32
    return %c0_i32, %c0_i32_0 : i32, i32
  }
  func.func @transform_3(%arg0: i32) -> (i32, i32) {
    %c0_i32 = arith.constant 0 : i32
    %c0_i32_0 = arith.constant 0 : i32
    %c0_i32_1 = arith.constant 0 : i32
    return %c0_i32, %c0_i32_0 : i32, i32
  }
  func.func @transform_4(%arg0: i32) -> (i32, i32) {
    %c0_i32 = arith.constant 0 : i32
    %c0_i32_0 = arith.constant 0 : i32
    %c0_i32_1 = arith.constant 0 : i32
    return %c0_i32, %c0_i32_0 : i32, i32
  }
  func.func @transform_5(%arg0: i32) -> (i32, i32) {
    %c0_i32 = arith.constant 0 : i32
    %c0_i32_0 = arith.constant 0 : i32
    %c0_i32_1 = arith.constant 0 : i32
    return %c0_i32, %c0_i32_0 : i32, i32
  }
  func.func @transform_6(%arg0: i32) -> (i32, i32) {
    %c0_i32 = arith.constant 0 : i32
    %c0_i32_0 = arith.constant 0 : i32
    %c0_i32_1 = arith.constant 0 : i32
    return %c0_i32, %c0_i32_0 : i32, i32
  }
  func.func @transform_7(%arg0: i32) -> (i32, i32) {
    %c0_i32 = arith.constant 0 : i32
    %c0_i32_0 = arith.constant 0 : i32
    %c0_i32_1 = arith.constant 0 : i32
    return %c0_i32, %c0_i32_0 : i32, i32
  }
  func.func @transform_8(%arg0: i32) -> (i32, i32) {
    %c0_i32 = arith.constant 0 : i32
    %c0_i32_0 = arith.constant 0 : i32
    %c0_i32_1 = arith.constant 0 : i32
    return %c0_i32, %c0_i32_0 : i32, i32
  }
  func.func @transform_9(%arg0: i32) -> (i32, i32) {
    %c0_i32 = arith.constant 0 : i32
    %c0_i32_0 = arith.constant 0 : i32
    return %arg0, %c0_i32 : i32, i32
  }
}

</mosaic_0001>

<bundles_post_ra>
// kernel: _value_head_padded.1
= control target key start
LH: loop header
LB: loop body
LE: loop exit
PB: predicated region body
PF: predicated region fallthrough
CT: control target
= control target key end

     0   :  { %s11325_s0 = inlined_call_operand.hbm [shape: bf16[32,256], index: 0, kind: input, shape index: {}]   ;;  %s11326_s1 = inlined_call_operand.hbm [shape: bf16[128,1024], index: 1, kind: input, shape index: {}]   ;;  %s11327_s2 = inlined_call_operand.hbm [shape: f32[1,2048], index: 2, kind: input, shape index: {}]   ;;  %s11328_s3 = inlined_call_operand.hbm [shape: bf16[2048,512], index: 3, kind: input, shape index: {}]   ;;  %s11329_s4 = inlined_call_operand.hbm [shape: f32[1,512], index: 4, kind: input, shape index: {}]   ;;  %s11330_s5 = inlined_call_operand.hbm [shape: bf16[512,512], index: 5, kind: input, shape index: {}]   ;;  %s11331_s6 = inlined_call_operand.hbm [shape: f32[1,512], index: 6, kind: input, shape index: {}]   ;;  %s11332_s7 = inlined_call_operand.hbm [shape: f32[1,512], index: 7, kind: input, shape index: {}]   ;;  %s11333_s8 = inlined_call_operand.<no memory space> [shape: f32[1,1], index: 8, kind: input, shape index: {}]   ;;  %s11334_s9 = inlined_call_operand.hbm [shape: f32[32,128], index: 9, kind: output, shape index: {}]  }
   0x1   :  { %11347 = sst [smem:[#allocation36_spill]] %s11326_s1  ;;  %v14_v0 = vstv %s11333_s8 }
   0x2   :  { %11348 = sst [smem:[#allocation37_spill]] %s11327_s2  ;;  %15 = vst [vmem:[#allocation2] sm:$0x1] %v14_v0 }
   0x3   :  { %11349 = sst [smem:[#allocation38_spill]] %s11328_s3 }
   0x4   :  { %16 = vsyncpa [#allocation4], 0 }
   0x5   :  { %18 = vsyncpa [#allocation4 + $0x1], 0 }
   0x6   :  { %19 = vsyncpa [#allocation7], 0 }
   0x7   :  { %20 = vsyncpa [#allocation10], 0 }
   0x8   :  { %21 = vsyncpa [#allocation13], 0 }
   0x9   :  { %22 = vsyncpa [#allocation16], 0 }
   0xa   :  { %23 = vsyncpa [#allocation5], 0 }
   0xb   :  { %25 = vsyncpa [#allocation5 + $0x1], 0  ;;  %s10471_s11 = smov 0   ;;  %s10473_s12 = smov 0  }
   0xc   :  { %s10475_s13 = smov 0   ;;  %s10477_s14 = smov 0  }
   0xd LB: > { %s11350_s1 = sld [smem:[#allocation36_spill]]  ;;  %s10495_s17 = sadd.s32 4294967295, %s10400_s14   ;;  %s10400_s14 = sphi %s10477_s14, %s11410_s14   ;;  %s10396_s13 = sphi %s10475_s13, %s11409_s13   ;;  %s10392_s12 = sphi %s10473_s12, %s11408_s12   ;;  %s10388_s11 = sphi %s10471_s11, %s11407_s11  }
   0xe   : > { %p6383_p0 = scmp.ge.s32.totalorder %s10400_s14, 1  ;;  %p52_p1 = scmp.eq.s32.totalorder %s10495_s17, 0 }
   0xf   : > { %p256_p2 = scmp.lt.s32.totalorder %s10400_s14, 3  ;;  %s10402_s19 = smov [#allocation6]  }
  0x10   : > { %s269_s20 = sshll.u32 %s10402_s19, 4  ;;  %s11352_s3 = sld [smem:[#allocation38_spill]]  ;;  %s270_s20 = int_to_ptr.vmem [resolvable:$true] %s269_s20 }
  0x11   : > { %p10500_p3 = pnand %p6383_p0, %p256_p2  ;;  %s10403_s25 = smov [#allocation9]  }
  0x12   : > { %s295_s26 = sshll.u32 %s10403_s25, 4  ;;  %s10404_s27 = smov 512   ;;  %s296_s26 = int_to_ptr.vmem [resolvable:$true] %s295_s26 }
  0x13   : > { %s267_s16 = sshll.u32 %s11350_s1, 4  ;;  %p9976_p4 = pneg %p10500_p3  ;;  %s268_s16 = int_to_ptr.hbm [resolvable:$true] %s267_s16 }
  0x14   : > { %s10405_s28 = smov 32   ;;  %s10406_s29 = smov 256  }
  0x15   : > { %p10512_p6 = pnand %p9976_p4, %p52_p1  ;;  %s10407_s30 = smov 16  }
  0x16   : > { %s293_s23 = sshll.u32 %s11352_s3, 4  ;;  %s319_s15 = sshll.u32 %s11330_s5, 4  ;;  %s294_s23 = int_to_ptr.hbm [resolvable:$true] %s293_s23  ;;  %s320_s15 = int_to_ptr.hbm [resolvable:$true] %s319_s15 }
  0x17   : > { %9979 = dma.hbm_to_vmem [thread:$0]  (!%p10512_p6), %s268_s16, 8192, %s270_s20, [#allocation7], %s10404_s27, %s10404_s27, %s10405_s28  }
  0x18   : > { %9985 = dma.hbm_to_vmem [thread:$0]  (!%p10512_p6), %s294_s23, 65536, %s296_s26, [#allocation10], %s10406_s29, %s10406_s29, %s10407_s30  }
  0x19   : > { %s10408_s19 = smov [#allocation12]   ;;  %s11354_s2 = sld [smem:[#allocation37_spill]] }
  0x1a   : > { %s321_s21 = sshll.u32 %s10408_s19, 4  ;;  %s10409_s16 = smov [#allocation8]   ;;  %s322_s21 = int_to_ptr.vmem [resolvable:$true] %s321_s21 }
  0x1b   : > { %9991 = dma.hbm_to_vmem [thread:$0]  (!%p10512_p6), %s320_s15, 16384, %s322_s21, [#allocation13], %s10406_s29, %s10406_s29, %s10407_s30  }
  0x1c   : > { %s284_s20 = sshll.u32 %s10409_s16, 4  ;;  %s308_s26 = sshll.u32 %s11329_s4, 4  ;;  %s285_s20 = int_to_ptr.vmem [resolvable:$true] %s284_s20  ;;  %s309_s26 = int_to_ptr.hbm [resolvable:$true] %s308_s26 }
  0x1d   : > { %s334_s8 = sshll.u32 %s11331_s6, 4  ;;  %s10410_s19 = smov [#allocation11]   ;;  %s335_s8 = int_to_ptr.hbm [resolvable:$true] %s334_s8 }
  0x1e   : > { %s310_s29 = sshll.u32 %s10410_s19, 4  ;;  %s10411_s30 = smov [#allocation14]   ;;  %s311_s29 = int_to_ptr.vmem [resolvable:$true] %s310_s29 }
  0x1f   : > { %s282_s1 = sshll.u32 %s11354_s2, 4  ;;  %s346_s22 = sshll.u32 %s11332_s7, 4  ;;  %s283_s1 = int_to_ptr.hbm [resolvable:$true] %s282_s1  ;;  %s347_s22 = int_to_ptr.hbm [resolvable:$true] %s346_s22 }
  0x20   : > { %9982 = dma.hbm_to_vmem [thread:$0]  (!%p10512_p6), %s283_s1, 256, %s285_s20, [#allocation7]  }
  0x21   : > { %9988 = dma.hbm_to_vmem [thread:$0]  (!%p10512_p6), %s309_s26, 64, %s311_s29, [#allocation10]  }
  0x22   : > { %s336_s1 = sshll.u32 %s10411_s30, 4  ;;  %s10412_s25 = smov [#allocation15]   ;;  %s337_s1 = int_to_ptr.vmem [resolvable:$true] %s336_s1 }
  0x23   : > { %9994 = dma.hbm_to_vmem [thread:$0]  (!%p10512_p6), %s335_s8, 64, %s337_s1, [#allocation13]  }
  0x24   : > { %s348_s16 = sshll.u32 %s10412_s25, 4  ;;  %s6382_s20 = sadd.s32 4294967294, %s10400_s14   ;;  %s349_s16 = int_to_ptr.vmem [resolvable:$true] %s348_s16 }
  0x25   : > { %9997 = dma.hbm_to_vmem [thread:$0]  (!%p10512_p6), %s347_s22, 64, %s349_s16, [#allocation16]  }
  0x26   : > { %s10547_s27 = sadd.s32 1, %s10400_s14   ;;  %s38_s23 = sadd.s32 1, %s10396_s13 }
  0x27   : > { %s35_s26 = ssub.s32 %s10400_s14, %s10547_s27  ;;  %p45_p7 = scmp.ne.s32.totalorder %s10396_s13, %s10392_s12 }
  0x28   : > { %p36_p8 = scmp.eq.s32.totalorder %s35_s26, 0  ;;  %p46_p9 = scmp.eq.s32.totalorder %s10400_s14, 0 }
  0x29   : > { %p51_p10 = scmp.ne.s32.totalorder %s10392_s12, %s10388_s11  ;;  %p243_p11 = scmp.eq.s32.totalorder %s10495_s17, 1 }
  0x2a   : > { %s10559_s28 = scalar_select %p36_p8, %s10396_s13, %s38_s23  }
  0x2b   : > { %p10561_p12 = por %p46_p9, %p45_p7  ;;  %p10567_p13 = por %p52_p1, %p51_p10 }
  0x2c   : > { %p10571_p0 = por %p243_p11, %p45_p7  ;;  %p249_p2 = scmp.eq.s32.totalorder %s6382_s20, 1 }
  0x2d   : > { %p10013_p4 = scmp.lt.s32.totalorder %s10400_s14, 2  ;;  %s362_s19 = sand.u32 1, %s10396_s13  }
  0x2e   : > { %p10577_p6 = por %p249_p2, %p51_p10  ;;  %s6392_s30 = sshll.u32 %s362_s19, 4 }
  0x2f   : > { %s9236_s1 = sshll.u32 %s10400_s14, 4  ;;  %s366_s16 = scalar_lea.vmem [#allocation3], %s6392_s30 }
  0x30   : > { %s372_s22 = scalar_lea.hbm %s11325_s0, %s9236_s1  ;;  %s375_s23 = sshll.u32 %s366_s16, 4  ;;  %s376_s23 = int_to_ptr.vmem [resolvable:$true] %s375_s23 }
  0x31   : > { %s373_s25 = sshll.u32 %s372_s22, 4  ;;  %p10587_p7 = pnand %p10013_p4, %p10561_p12  ;;  %s374_s25 = int_to_ptr.hbm [resolvable:$true] %s373_s25 }
  0x32   : > { %s363_s26 = scalar_lea.sflag [#allocation4], %s362_s19  ;;  %s10288_s2 = sshra.s32 %s374_s25, 4  ;;  %s10289_s2 = int_to_ptr.hbm [resolvable:$true] %s10288_s2 }
  0x33   : > { %s10290_s3 = scalar_lea.hbm %s10289_s2, 16  ;;  %p10292_p9 = pneg %p10587_p7 }
  0x34   : > { %p10291_p8 = scmp.ne.s32.totalorder %s10289_s2, %s10290_s3  ;;  %s10295_s15 = scalar_lea.hbm %s11325_s0, 32 }
  0x35   : > { %p10296_p12 = scmp.lt.s32.totalorder %s10289_s2, %s11325_s0  ;;  %p10297_p2 = scmp.lt.s32.totalorder %s10295_s15, %s10290_s3 }
  0x36   : > { %p10293_p10 = pnand %p10292_p9, %p10291_p8 }
  0x37   : > { %p10298_p4 = por %p10297_p2, %p10296_p12 }
  0x38   : > { %p10294_p11 = pneg %p10293_p10 }
  0x3a   : > { %p10299_p5 = pnand %p10298_p4, %p10294_p11 }
  0x3c   : > { %10302 = shalt.err (!%p10299_p5)
}
  0x3d   : > { %s10413_s19 = smov 128   ;;  %s10414_s22 = smov 8  }
  0x3e   : > { %10001 = dma.hbm_to_vmem [thread:$0]  (!%p10587_p7), %s374_s25, 256, %s376_s23, %s363_s26, %s10413_s19, %s10413_s19, %s10414_s22  }
  0x3f   : > { %387 = sbr.rel (%p10500_p3) target bundleno = 1382 (0x566), region = 56 }
  0x44   : > { %s10604_s16 = sand.u32 1, %s10392_s12  }
  0x45   : > { %s6397_s2 = sshll.u32 %s10604_s16, 4  ;;  %s390_s3 = scalar_lea.sflag [#allocation4], %s10604_s16 }
  0x46   : > { %s10610_s1 = scalar_lea.vmem [#allocation3], %s6397_s2 }
  0x47   : > { %10363 = dma.done.wait (%p10567_p13), %s390_s3, 256  }
  0x48   : > { %10365 = vsyncadd (%p10567_p13), %s390_s3, 4294967040 }
  0x49   : > { %10367 = dma.done.wait (%p52_p1), [#allocation7], 8448  }
  0x4a   : > { %10369 = vsyncadd (%p52_p1), [#allocation7], 4294958848 }
  0x4b   : > { %10371 = dma.done.wait (%p52_p1), [#allocation10], 65600  }
  0x4c   : > { %10373 = vsyncadd (%p52_p1), [#allocation10], 4294901696 }
  0x4d   : > { %10375 = dma.done.wait (%p52_p1), [#allocation13], 16448  }
  0x4e   : > { %10377 = vsyncadd (%p52_p1), [#allocation13], 4294950848 }
  0x4f   : > { %10379 = dma.done.wait (%p52_p1), [#allocation16], 64  }
  0x50   : > { %10381 = vsyncadd (%p52_p1), [#allocation16], 4294967232  ;;  %v6636_v1 = vld [vmem:[#allocation6 + $0x1c0] sm:$0xf]  ;;  %v9295_v3 = vld [vmem:[#allocation6 + $0x1c4] sm:$0xf] }
  0x51   : > { %v9299_v2 = vld [vmem:[#allocation6 + $0x1dc] sm:$0xf0]  ;;  %v6638_v5 = vld [vmem:[#allocation6 + $0x1e0] sm:$0xf0]  ;;  %v6644_v6 = vld [vmem:[#allocation6 + $0x1c8] sm:$0xf] }
  0x52   : > { %v10632_v4 = vor.u32 %v9299_v2, %v6636_v1  ;;  %v9300_v7 = vld [vmem:[#allocation6 + $0x1e4] sm:$0xf0]  ;;  %v10634_v8 = vor.u32 %v9295_v3, %v6638_v5  ;;  %v9296_v10 = vld [vmem:[#allocation6 + $0x1cc] sm:$0xf]  ;;  %v6604_v12 = vld [vmem:[#allocation6 + $0x180] sm:$0xf] }
  0x53   : > { %v10636_v9 = vor.u32 %v9300_v7, %v6644_v6  ;;  %v6646_v11 = vld [vmem:[#allocation6 + $0x1e8] sm:$0xf0]  ;;  %v9291_v14 = vld [vmem:[#allocation6 + $0x19c] sm:$0xf0]  ;;  %v9287_v15 = vld [vmem:[#allocation6 + $0x184] sm:$0xf] }
  0x54   : > { %876 = vmatpush.bf16.msra.mxu0 %v10632_v4  ;;  %v10639_v13 = vor.u32 %v9296_v10, %v6646_v11  ;;  %v6606_v16 = vld [vmem:[#allocation6 + $0x1a0] sm:$0xf0]  ;;  %890 = vmatpush.bf16.msra.mxu1 %v10634_v8  ;;  %v10643_v17 = vor.u32 %v9291_v14, %v6604_v12  ;;  %v6612_v19 = vld [vmem:[#allocation6 + $0x188] sm:$0xf]  ;;  %v9288_v21 = vld [vmem:[#allocation6 + $0x18c] sm:$0xf] }
  0x55   : > { %904 = vmatpush.bf16.msra.mxu2 %v10636_v9  ;;  %v10645_v18 = vor.u32 %v9287_v15, %v6606_v16  ;;  %v9292_v20 = vld [vmem:[#allocation6 + $0x1a4] sm:$0xf0]  ;;  %v6614_v23 = vld [vmem:[#allocation6 + $0x1a8] sm:$0xf0]  ;;  %v6572_v24 = vld [vmem:[#allocation6 + $0x140] sm:$0xf] }
  0x56   : > { %918 = vmatpush.bf16.msra.mxu3 %v10639_v13  ;;  %v10648_v22 = vor.u32 %v9292_v20, %v6612_v19  ;;  %v9283_v25 = vld [vmem:[#allocation6 + $0x15c] sm:$0xf0]  ;;  %v10650_v26 = vor.u32 %v9288_v21, %v6614_v23  ;;  %v9279_v27 = vld [vmem:[#allocation6 + $0x144] sm:$0xf]  ;;  %v6580_v29 = vld [vmem:[#allocation6 + $0x148] sm:$0xf] }
  0x57   : > { %v6574_v28 = vld [vmem:[#allocation6 + $0x160] sm:$0xf0]  ;;  %v10653_v30 = vor.u32 %v9283_v25, %v6572_v24  ;;  %v9284_v31 = vld [vmem:[#allocation6 + $0x164] sm:$0xf0]  ;;  %v9280_v32 = vld [vmem:[#allocation6 + $0x14c] sm:$0xf] }
  0x58   : > { %877 = vmatpush.bf16.msra.mxu0 %v10643_v17  ;;  %v6582_v33 = vld [vmem:[#allocation6 + $0x168] sm:$0xf0]  ;;  %891 = vmatpush.bf16.msra.mxu1 %v10645_v18  ;;  %v10657_v34 = vor.u32 %v9279_v27, %v6574_v28  ;;  %v10659_v35 = vor.u32 %v9284_v31, %v6580_v29  ;;  %v6540_v36 = vld [vmem:[#allocation6 + $0x100] sm:$0xf]  ;;  %v9271_v38 = vld [vmem:[#allocation6 + $0x104] sm:$0xf] }
  0x59   : > { %905 = vmatpush.bf16.msra.mxu2 %v10648_v22  ;;  %v9275_v37 = vld [vmem:[#allocation6 + $0x11c] sm:$0xf0]  ;;  %v10662_v39 = vor.u32 %v9280_v32, %v6582_v33  ;;  %v6542_v40 = vld [vmem:[#allocation6 + $0x120] sm:$0xf0]  ;;  %v6548_v41 = vld [vmem:[#allocation6 + $0x108] sm:$0xf] }
  0x5a   : > { %919 = vmatpush.bf16.msra.mxu3 %v10650_v26  ;;  %v9276_v42 = vld [vmem:[#allocation6 + $0x124] sm:$0xf0]  ;;  %v9272_v43 = vld [vmem:[#allocation6 + $0x10c] sm:$0xf]  ;;  %v10665_v45 = vor.u32 %v9275_v37, %v6540_v36  ;;  %v10669_v46 = vor.u32 %v9271_v38, %v6542_v40  ;;  %v6508_v48 = vld [vmem:[#allocation6 + $0xc0] sm:$0xf] }
  0x5b   : > { %v6550_v44 = vld [vmem:[#allocation6 + $0x128] sm:$0xf0]  ;;  %v10671_v47 = vor.u32 %v9276_v42, %v6548_v41  ;;  %v9267_v49 = vld [vmem:[#allocation6 + $0xdc] sm:$0xf0]  ;;  %v9263_v50 = vld [vmem:[#allocation6 + $0xc4] sm:$0xf] }
  0x5c   : > { %878 = vmatpush.bf16.msra.mxu0 %v10653_v30  ;;  %892 = vmatpush.bf16.msra.mxu1 %v10657_v34  ;;  %v10674_v51 = vor.u32 %v9272_v43, %v6550_v44  ;;  %v6510_v52 = vld [vmem:[#allocation6 + $0xe0] sm:$0xf0]  ;;  %v6516_v53 = vld [vmem:[#allocation6 + $0xc8] sm:$0xf]  ;;  %v9264_v55 = vld [vmem:[#allocation6 + $0xcc] sm:$0xf]  ;;  %v10677_v57 = vor.u32 %v9267_v49, %v6508_v48 }
  0x5d   : > { %906 = vmatpush.bf16.msra.mxu2 %v10659_v35  ;;  %v9268_v54 = vld [vmem:[#allocation6 + $0xe4] sm:$0xf0]  ;;  %v6518_v56 = vld [vmem:[#allocation6 + $0xe8] sm:$0xf0]  ;;  %v10681_v58 = vor.u32 %v9263_v50, %v6510_v52  ;;  %v6476_v60 = vld [vmem:[#allocation6 + $0x80] sm:$0xf] }
  0x5e   : > { %920 = vmatpush.bf16.msra.mxu3 %v10662_v39  ;;  %v10683_v59 = vor.u32 %v9268_v54, %v6516_v53  ;;  %v9259_v61 = vld [vmem:[#allocation6 + $0x9c] sm:$0xf0]  ;;  %v9255_v62 = vld [vmem:[#allocation6 + $0x84] sm:$0xf]  ;;  %v10686_v63 = vor.u32 %v9264_v55, %v6518_v56  ;;  %v6484_v1 = vld [vmem:[#allocation6 + $0x88] sm:$0xf] }
  0x5f   : > { %v6478_v0 = vld [vmem:[#allocation6 + $0xa0] sm:$0xf0]  ;;  %v9260_v2 = vld [vmem:[#allocation6 + $0xa4] sm:$0xf0]  ;;  %v9256_v3 = vld [vmem:[#allocation6 + $0x8c] sm:$0xf]  ;;  %v10689_v6 = vor.u32 %v9259_v61, %v6476_v60 }
  0x60   : > { %879 = vmatpush.bf16.msra.mxu0 %v10665_v45  ;;  %893 = vmatpush.bf16.msra.mxu1 %v10669_v46  ;;  %v6486_v5 = vld [vmem:[#allocation6 + $0xa8] sm:$0xf0]  ;;  %v10693_v7 = vor.u32 %v9255_v62, %v6478_v0  ;;  %v10695_v10 = vor.u32 %v9260_v2, %v6484_v1  ;;  %v6444_v11 = vld [vmem:[#allocation6 + $0x40] sm:$0xf]  ;;  %v9247_v14 = vld [vmem:[#allocation6 + $0x44] sm:$0xf] }
  0x61   : > { %907 = vmatpush.bf16.msra.mxu2 %v10671_v47  ;;  %v9251_v12 = vld [vmem:[#allocation6 + $0x5c] sm:$0xf0]  ;;  %v10698_v15 = vor.u32 %v9256_v3, %v6486_v5  ;;  %v6446_v16 = vld [vmem:[#allocation6 + $0x60] sm:$0xf0]  ;;  %v6452_v19 = vld [vmem:[#allocation6 + $0x48] sm:$0xf] }
  0x62   : > { %921 = vmatpush.bf16.msra.mxu3 %v10674_v51  ;;  %v9252_v20 = vld [vmem:[#allocation6 + $0x64] sm:$0xf0]  ;;  %v9248_v21 = vld [vmem:[#allocation6 + $0x4c] sm:$0xf]  ;;  %v10701_v24 = vor.u32 %v9251_v12, %v6444_v11  ;;  %v6412_v25 = vld [vmem:[#allocation6] sm:$0xf]  ;;  %v10705_v28 = vor.u32 %v9247_v14, %v6446_v16 }
  0x63   : > { %v6454_v23 = vld [vmem:[#allocation6 + $0x68] sm:$0xf0]  ;;  %v9243_v27 = vld [vmem:[#allocation6 + $0x1c] sm:$0xf0]  ;;  %v10707_v29 = vor.u32 %v9252_v20, %v6452_v19  ;;  %v9239_v31 = vld [vmem:[#allocation6 + $0x4] sm:$0xf] }
  0x64   : > { %880 = vmatpush.bf16.msra.mxu0 %v10677_v57  ;;  %894 = vmatpush.bf16.msra.mxu1 %v10681_v58  ;;  %v6414_v32 = vld [vmem:[#allocation6 + $0x20] sm:$0xf0]  ;;  %v6420_v33 = vld [vmem:[#allocation6 + $0x8] sm:$0xf]  ;;  %v10710_v36 = vor.u32 %v9248_v21, %v6454_v23  ;;  %v9240_v38 = vld [vmem:[#allocation6 + $0xc] sm:$0xf]  ;;  %v10713_v44 = vor.u32 %v9243_v27, %v6412_v25 }
  0x65   : > { %908 = vmatpush.bf16.msra.mxu2 %v10683_v59  ;;  %v9244_v37 = vld [vmem:[#allocation6 + $0x24] sm:$0xf0]  ;;  %v6422_v40 = vld [vmem:[#allocation6 + $0x28] sm:$0xf0]  ;;  %v6652_v41 = vld [vmem:[#allocation6 + $0x1d0] sm:$0xf]  ;;  %v10717_v52 = vor.u32 %v9239_v31, %v6414_v32 }
  0x66   : > { %922 = vmatpush.bf16.msra.mxu3 %v10686_v63  ;;  %v9301_v42 = vld [vmem:[#allocation6 + $0x1ec] sm:$0xf0]  ;;  %v9297_v43 = vld [vmem:[#allocation6 + $0x1d4] sm:$0xf]  ;;  %v6660_v49 = vld [vmem:[#allocation6 + $0x1d8] sm:$0xf]  ;;  %v10719_v53 = vor.u32 %v9244_v37, %v6420_v33  ;;  %v10722_v56 = vor.u32 %v9240_v38, %v6422_v40 }
  0x67   : > { %v6654_v48 = vld [vmem:[#allocation6 + $0x1f0] sm:$0xf0]  ;;  %v9302_v50 = vld [vmem:[#allocation6 + $0x1f4] sm:$0xf0]  ;;  %v9298_v54 = vld [vmem:[#allocation6 + $0x1dc] sm:$0xf]  ;;  %v10724_v60 = vor.u32 %v9301_v42, %v6652_v41 }
  0x68   : > { %881 = vmatpush.bf16.msra.mxu0 %v10689_v6  ;;  %895 = vmatpush.bf16.msra.mxu1 %v10693_v7  ;;  %v6662_v55 = vld [vmem:[#allocation6 + $0x1f8] sm:$0xf0]  ;;  %v10726_v61 = vor.u32 %v9297_v43, %v6654_v48  ;;  %v10728_v62 = vor.u32 %v9302_v50, %v6660_v49  ;;  %v6620_v0 = vld [vmem:[#allocation6 + $0x190] sm:$0xf]  ;;  %v9289_v2 = vld [vmem:[#allocation6 + $0x194] sm:$0xf] }
  0x69   : > { %909 = vmatpush.bf16.msra.mxu2 %v10695_v10  ;;  %v9293_v1 = vld [vmem:[#allocation6 + $0x1ac] sm:$0xf0]  ;;  %v10731_v3 = vor.u32 %v9298_v54, %v6662_v55  ;;  %v6622_v5 = vld [vmem:[#allocation6 + $0x1b0] sm:$0xf0]  ;;  %v6628_v11 = vld [vmem:[#allocation6 + $0x198] sm:$0xf] }
  0x6a   : > { %923 = vmatpush.bf16.msra.mxu3 %v10698_v15  ;;  %v9294_v12 = vld [vmem:[#allocation6 + $0x1b4] sm:$0xf0]  ;;  %v9290_v14 = vld [vmem:[#allocation6 + $0x19c] sm:$0xf]  ;;  %v10737_v19 = vor.u32 %v9293_v1, %v6620_v0  ;;  %v6588_v20 = vld [vmem:[#allocation6 + $0x150] sm:$0xf]  ;;  %v10741_v23 = vor.u32 %v9289_v2, %v6622_v5 }
  0x6b   : > { %v6630_v16 = vld [vmem:[#allocation6 + $0x1b8] sm:$0xf0]  ;;  %v9285_v21 = vld [vmem:[#allocation6 + $0x16c] sm:$0xf0]  ;;  %v10743_v25 = vor.u32 %v9294_v12, %v6628_v11  ;;  %v9281_v27 = vld [vmem:[#allocation6 + $0x154] sm:$0xf] }
  0x6c   : > { %882 = vmatpush.bf16.msra.mxu0 %v10701_v24  ;;  %896 = vmatpush.bf16.msra.mxu1 %v10705_v28  ;;  %v6590_v31 = vld [vmem:[#allocation6 + $0x170] sm:$0xf0]  ;;  %v6408_v32 = vld [vmem:[%s10610_s1] sm:$0xf]  ;;  %v10747_v33 = vor.u32 %v9290_v14, %v6630_v16  ;;  %v6596_v37 = vld [vmem:[#allocation6 + $0x158] sm:$0xf]  ;;  %v10753_v48 = vor.u32 %v9285_v21, %v6588_v20 }
  0x6d   : > { %910 = vmatpush.bf16.msra.mxu2 %v10707_v29  ;;  %v9286_v38 = vld [vmem:[#allocation6 + $0x174] sm:$0xf0]  ;;  %v9282_v41 = vld [vmem:[#allocation6 + $0x15c] sm:$0xf]  ;;  %v10757_v49 = vor.u32 %v9281_v27, %v6590_v31  ;;  %v6556_v54 = vld [vmem:[#allocation6 + $0x110] sm:$0xf] }
  0x6e   : > { %924 = vmatpush.bf16.msra.mxu3 %v10710_v36  ;;  %v9238_v40 = vld [vmem:[%s10610_s1 + $0x4] sm:$0xf0]  ;;  %v6598_v42 = vld [vmem:[#allocation6 + $0x178] sm:$0xf0]  ;;  %v10759_v50 = vor.u32 %v9286_v38, %v6596_v37  ;;  %v9277_v55 = vld [vmem:[#allocation6 + $0x12c] sm:$0xf0] }
  0x6f   : > { %v10750_v43 = vor.u32 %v9238_v40, %v6408_v32  ;;  %v9273_v0 = vld [vmem:[#allocation6 + $0x114] sm:$0xf]  ;;  %v10762_v1 = vor.u32 %v9282_v41, %v6598_v42  ;;  %v6564_v5 = vld [vmem:[#allocation6 + $0x118] sm:$0xf]  ;;  %v9274_v12 = vld [vmem:[#allocation6 + $0x11c] sm:$0xf]  ;;  %v10768_v16 = vor.u32 %v9277_v55, %v6556_v54 }
  0x70   : > { %883 = vmatpush.bf16.msra.mxu0 %v10713_v44  ;;  %897 = vmatpush.bf16.msra.mxu1 %v10717_v52  ;;  %11360 = vst [vmem:[#allocation24_spill] sm:$0xff] %v10759_v50  ;;  %v6558_v2 = vld [vmem:[#allocation6 + $0x130] sm:$0xf0]  ;;  %v9278_v11 = vld [vmem:[#allocation6 + $0x134] sm:$0xf0]  ;;  %s9943_s18 = sshll.u32 %s10495_s17, 4 }
  0x71   : > { %911 = vmatpush.bf16.msra.mxu2 %v10719_v53  ;;  %11361 = vst [vmem:[#allocation25_spill] sm:$0xff] %v10762_v1  ;;  %v6566_v14 = vld [vmem:[#allocation6 + $0x138] sm:$0xf0]  ;;  %v6524_v20 = vld [vmem:[#allocation6 + $0xd0] sm:$0xf]  ;;  %v10773_v21 = vor.u32 %v9273_v0, %v6558_v2  ;;  %v10775_v27 = vor.u32 %v9278_v11, %v6564_v5  ;;  %s6238_s23 = scalar_lea.hbm %s11334_s9, %s9943_s18  ;;  %s463_s20 = scalar_lea.vmem [#allocation17], %s6397_s2 }
  0x72   : > { %925 = vmatpush.bf16.msra.mxu3 %v10722_v56  ;;  %11362 = vst [vmem:[#allocation26_spill] sm:$0xff] %v10768_v16  ;;  %v9269_v31 = vld [vmem:[#allocation6 + $0xec] sm:$0xf0]  ;;  %v9265_v32 = vld [vmem:[#allocation6 + $0xd4] sm:$0xf]  ;;  %v10778_v38 = vor.u32 %v9274_v12, %v6566_v14  ;;  %s6239_s26 = sshll.u32 %s463_s20, 4  ;;  %s6240_s26 = int_to_ptr.vmem [resolvable:$true] %s6239_s26 }
  0x73   : > { %884 = vmatmul.bf16.vlgmr.msra.gmra.mxu0 %v10750_v43  ;;  %898 = vmatmul.bf16.vlgmr.msra.gmra.mxu1 %v10750_v43  ;;  %11363 = vst [vmem:[#allocation27_spill] sm:$0xff] %v10773_v21  ;;  %v6526_v37 = vld [vmem:[#allocation6 + $0xf0] sm:$0xf0]  ;;  %v6532_v40 = vld [vmem:[#allocation6 + $0xd8] sm:$0xf]  ;;  %v10781_v55 = vor.u32 %v9269_v31, %v6524_v20  ;;  %s6241_s30 = sshll.u32 %s6238_s23, 4  ;;  %s6242_s30 = int_to_ptr.hbm [resolvable:$true] %s6241_s30 }
  0x74   : > { %932 = vmatpush.bf16.msrb.mxu0 %v10724_v60  ;;  %946 = vmatpush.bf16.msrb.mxu1 %v10726_v61  ;;  %11364 = vst [vmem:[#allocation28_spill] sm:$0xff] %v10775_v27  ;;  %v9270_v41 = vld [vmem:[#allocation6 + $0xf4] sm:$0xf0]  ;;  %v9266_v42 = vld [vmem:[#allocation6 + $0xdc] sm:$0xf]  ;;  %v10785_v0 = vor.u32 %v9265_v32, %v6526_v37  ;;  %s6227_s15 = scalar_lea.sflag [#allocation5], %s10604_s16 }
  0x75   : > { %960 = vmatpush.bf16.msrb.mxu2 %v10728_v62  ;;  %926 = vmatmul.bf16.vlgmr.msra.gmra.mxu3 %v10750_v43  ;;  %11365 = vst [vmem:[#allocation29_spill] sm:$0xff] %v10778_v38  ;;  %v6534_v54 = vld [vmem:[#allocation6 + $0xf8] sm:$0xf0]  ;;  %v10787_v2 = vor.u32 %v9270_v41, %v6532_v40  ;;  %v6492_v5 = vld [vmem:[#allocation6 + $0x90] sm:$0xf]  ;;  %s10332_s21 = sshra.s32 %s6242_s30, 4  ;;  %s10333_s21 = int_to_ptr.hbm [resolvable:$true] %s10332_s21 }
  0x76   : > { %974 = vmatpush.bf16.msrb.mxu3 %v10731_v3  ;;  %912 = vmatmul.bf16.vlgmr.msra.gmra.mxu2 %v10750_v43  ;;  %11366 = vst [vmem:[#allocation30_spill] sm:$0xff] %v10781_v55  ;;  %v9261_v11 = vld [vmem:[#allocation6 + $0xac] sm:$0xf0]  ;;  %v9257_v12 = vld [vmem:[#allocation6 + $0x94] sm:$0xf]  ;;  %v10790_v14 = vor.u32 %v9266_v42, %v6534_v54  ;;  %s10334_s10 = scalar_lea.hbm %s10333_s21, 16  ;;  %p10339_p13 = scmp.lt.s32.totalorder %s10333_s21, %s11334_s9 }
  0x77   : > { %11367 = vst [vmem:[#allocation31_spill] sm:$0xff] %v10785_v0  ;;  %v9258_v20 = vld [vmem:[#allocation6 + $0x9c] sm:$0xf]  ;;  %v6460_v40 = vld [vmem:[#allocation6 + $0x50] sm:$0xf]  ;;  %p10335_p1 = scmp.ne.s32.totalorder %s10333_s21, %s10334_s10  ;;  %s10338_s22 = scalar_lea.hbm %s11334_s9, 32 }
  0x78   : > { %933 = vmatpush.bf16.msrb.mxu0 %v10737_v19  ;;  %947 = vmatpush.bf16.msrb.mxu1 %v10741_v23  ;;  %11368 = vst [vmem:[#allocation32_spill] sm:$0xff] %v10787_v2  ;;  %v6502_v31 = vld [vmem:[#allocation6 + $0xb8] sm:$0xf0]  ;;  %v9253_v41 = vld [vmem:[#allocation6 + $0x6c] sm:$0xf0]  ;;  %p10340_p7 = scmp.lt.s32.totalorder %s10338_s22, %s10334_s10 }
  0x79   : > { %961 = vmatpush.bf16.msrb.mxu2 %v10743_v25  ;;  %11369 = vst [vmem:[#allocation33_spill] sm:$0xff] %v10790_v14  ;;  %v9249_v42 = vld [vmem:[#allocation6 + $0x54] sm:$0xf]  ;;  %v10802_v54 = vor.u32 %v9258_v20, %v6502_v31  ;;  %p10336_p3 = pnand %p10335_p1, %p10571_p0 }
  0x7a   : > { %975 = vmatpush.bf16.msrb.mxu3 %v10747_v33  ;;  %v9241_v20 = vld [vmem:[#allocation6 + $0x14] sm:$0xf]  ;;  %p10341_p8 = por %p10340_p7, %p10339_p13 }
  0x7b   : > { %p10337_p5 = pneg %p10336_p3 }
  0x7c   : > { %934 = vmatpush.bf16.msrb.mxu0 %v10753_v48  ;;  %948 = vmatpush.bf16.msrb.mxu1 %v10757_v49 }
  0x7d   : > { %962 = vmatpush.bf16.msrb.mxu2 %v10759_v50  ;;  %v6500_v50 = vld [vmem:[#allocation6 + $0x98] sm:$0xf]  ;;  %p10342_p9 = pnand %p10341_p8, %p10337_p5 }
  0x7e   : > { %976 = vmatpush.bf16.msrb.mxu3 %v10762_v1  ;;  %v6494_v1 = vld [vmem:[#allocation6 + $0xb0] sm:$0xf0] }
  0x7f   : > { %v10797_v32 = vor.u32 %v9257_v12, %v6494_v1  ;;  %v9245_v12 = vld [vmem:[#allocation6 + $0x2c] sm:$0xf0] }
  0x80   : > { %935 = vmatpush.bf16.msrb.mxu0 %v10768_v16  ;;  %949 = vmatpush.bf16.msrb.mxu1 %v10773_v21  ;;  %v9262_v16 = vld [vmem:[#allocation6 + $0xb4] sm:$0xf0]  ;;  %v10793_v21 = vor.u32 %v9261_v11, %v6492_v5  ;;  %v9250_v5 = vld [vmem:[#allocation6 + $0x5c] sm:$0xf] }
  0x81   : > { %963 = vmatpush.bf16.msrb.mxu2 %v10775_v27  ;;  %11371 = vst [vmem:[#allocation35_spill] sm:$0xff] %v10797_v32  ;;  %v10799_v37 = vor.u32 %v9262_v16, %v6500_v50  ;;  %v6468_v27 = vld [vmem:[#allocation6 + $0x58] sm:$0xf]  ;;  %v6470_v11 = vld [vmem:[#allocation6 + $0x78] sm:$0xf0] }
  0x82   : > { %977 = vmatpush.bf16.msrb.mxu3 %v10778_v38  ;;  %11370 = vst [vmem:[#allocation34_spill] sm:$0xff] %v10793_v21  ;;  %v6462_v38 = vld [vmem:[#allocation6 + $0x70] sm:$0xf0]  ;;  %v6428_v16 = vld [vmem:[#allocation6 + $0x10] sm:$0xf]  ;;  %v10814_v31 = vor.u32 %v9250_v5, %v6470_v11 }
  0x83   : > { %v10809_v50 = vor.u32 %v9249_v42, %v6462_v38  ;;  %v9609_v42 = vld [vmem:[#allocation9 + $0x98c] sm:$0xf0] }
  0x84   : > { %936 = vmatpush.bf16.msrb.mxu0 %v10781_v55  ;;  %950 = vmatpush.bf16.msrb.mxu1 %v10785_v0  ;;  %v9254_v55 = vld [vmem:[#allocation6 + $0x74] sm:$0xf0]  ;;  %v10805_v0 = vor.u32 %v9253_v41, %v6460_v40  ;;  %v9242_v40 = vld [vmem:[#allocation6 + $0x1c] sm:$0xf]  ;;  %v9645_v5 = vld [vmem:[#allocation9 + $0xaac] sm:$0xf0] }
  0x85   : > { %964 = vmatpush.bf16.msrb.mxu2 %v10787_v2  ;;  %v10811_v1 = vor.u32 %v9254_v55, %v6468_v27  ;;  %v6436_v2 = vld [vmem:[#allocation6 + $0x18] sm:$0xf]  ;;  %v6438_v41 = vld [vmem:[#allocation6 + $0x38] sm:$0xf0] }
  0x86   : > { %978 = vmatpush.bf16.msrb.mxu3 %v10790_v14  ;;  %v6430_v14 = vld [vmem:[#allocation6 + $0x30] sm:$0xf0]  ;;  %v10826_v55 = vor.u32 %v9242_v40, %v6438_v41  ;;  %v6848_v40 = vld [vmem:[#allocation9 + $0x960] sm:$0xf]  ;;  %v9605_v41 = vld [vmem:[#allocation9 + $0x96c] sm:$0xf0] }
  0x87   : > { %v10821_v27 = vor.u32 %v9241_v20, %v6430_v14  ;;  %v9577_v14 = vld [vmem:[#allocation9 + $0x88c] sm:$0xf0] }
  0x88   : > { %937 = vmatpush.bf16.msrb.mxu0 %v10793_v21  ;;  %951 = vmatpush.bf16.msrb.mxu1 %v10797_v32  ;;  %v9246_v21 = vld [vmem:[#allocation6 + $0x34] sm:$0xf0]  ;;  %v10817_v32 = vor.u32 %v9245_v12, %v6428_v16  ;;  %v9677_v16 = vld [vmem:[#allocation9 + $0xbac] sm:$0xf0]  ;;  %v6720_v12 = vld [vmem:[#allocation9 + $0x860] sm:$0xf] }
  0x89   : > { %965 = vmatpush.bf16.msrb.mxu2 %v10799_v37  ;;  %v10823_v38 = vor.u32 %v9246_v21, %v6436_v2  ;;  %v9681_v21 = vld [vmem:[#allocation9 + $0xbcc] sm:$0xf0]  ;;  %v6736_v2 = vld [vmem:[#allocation9 + $0x880] sm:$0xf] }
  0x8a   : > { %979 = vmatpush.bf16.msrb.mxu3 %v10802_v54 }
  0x8c   : > { %938 = vmatpush.bf16.msrb.mxu0 %v10805_v0  ;;  %952 = vmatpush.bf16.msrb.mxu1 %v10809_v50 }
  0x8d   : > { %966 = vmatpush.bf16.msrb.mxu2 %v10811_v1 }
  0x8e   : > { %980 = vmatpush.bf16.msrb.mxu3 %v10814_v31 }
  0x90   : > { %939 = vmatpush.bf16.msrb.mxu0 %v10817_v32  ;;  %953 = vmatpush.bf16.msrb.mxu1 %v10821_v27 }
  0x91   : > { %967 = vmatpush.bf16.msrb.mxu2 %v10823_v38 }
  0x92   : > { %981 = vmatpush.bf16.msrb.mxu3 %v10826_v55 }
  0x93   : > { %940 = vmatmul.bf16.vlgmr.msrb.gmra.mxu0 %v10750_v43  ;;  %954 = vmatmul.bf16.vlgmr.msrb.gmra.mxu1 %v10750_v43 }
  0x94   : > { %1290 = vmatpush.bf16.msra.mxu0 %v10632_v4  ;;  %1304 = vmatpush.bf16.msra.mxu1 %v10634_v8  ;;  %v9237_v4 = vld [vmem:[%s10610_s1 + $0x4] sm:$0xf]  ;;  %v6666_v8 = vld [vmem:[%s10610_s1 + $0x8] sm:$0xf0] }
  0x95   : > { %1318 = vmatpush.bf16.msra.mxu2 %v10636_v9  ;;  %982 = vmatmul.bf16.vlgmr.msrb.gmra.mxu3 %v10750_v43  ;;  %v10867_v9 = vor.u32 %v9237_v4, %v6666_v8  ;;  %v9641_v4 = vld [vmem:[#allocation9 + $0xa8c] sm:$0xf0]  ;;  %v7120_v8 = vld [vmem:[#allocation9 + $0xb80] sm:$0xf] }
  0x96   : > { %1332 = vmatpush.bf16.msra.mxu3 %v10639_v13  ;;  %968 = vmatmul.bf16.vlgmr.msrb.gmra.mxu2 %v10750_v43  ;;  %v11372_v13 = vld [vmem:[#allocation24_spill] sm:$0xff] }
  0x97   : > { %v9649_v43 = vld [vmem:[#allocation9 + $0xacc] sm:$0xf0] }
  0x98   : > { %1291 = vmatpush.bf16.msra.mxu0 %v10643_v17  ;;  %1305 = vmatpush.bf16.msra.mxu1 %v10645_v18  ;;  %v11373_v17 = vld [vmem:[#allocation25_spill] sm:$0xff]  ;;  %v11374_v18 = vld [vmem:[#allocation26_spill] sm:$0xff] }
  0x99   : > { %1319 = vmatpush.bf16.msra.mxu2 %v10648_v22  ;;  %v11375_v22 = vld [vmem:[#allocation27_spill] sm:$0xff] }
  0x9a   : > { %1333 = vmatpush.bf16.msra.mxu3 %v10650_v26  ;;  %v11376_v26 = vld [vmem:[#allocation28_spill] sm:$0xff] }
  0x9c   : > { %1292 = vmatpush.bf16.msra.mxu0 %v10653_v30  ;;  %1306 = vmatpush.bf16.msra.mxu1 %v10657_v34  ;;  %v11377_v30 = vld [vmem:[#allocation29_spill] sm:$0xff]  ;;  %v11378_v34 = vld [vmem:[#allocation30_spill] sm:$0xff] }
  0x9d   : > { %1320 = vmatpush.bf16.msra.mxu2 %v10659_v35  ;;  %v11379_v35 = vld [vmem:[#allocation31_spill] sm:$0xff] }
  0x9e   : > { %1334 = vmatpush.bf16.msra.mxu3 %v10662_v39  ;;  %v11380_v39 = vld [vmem:[#allocation32_spill] sm:$0xff] }
  0xa0   : > { %1293 = vmatpush.bf16.msra.mxu0 %v10665_v45  ;;  %1307 = vmatpush.bf16.msra.mxu1 %v10669_v46  ;;  %v11381_v45 = vld [vmem:[#allocation33_spill] sm:$0xff]  ;;  %v11382_v46 = vld [vmem:[#allocation34_spill] sm:$0xff] }
  0xa1   : > { %1321 = vmatpush.bf16.msra.mxu2 %v10671_v47  ;;  %v11383_v47 = vld [vmem:[#allocation35_spill] sm:$0xff] }
  0xa2   : > { %1335 = vmatpush.bf16.msra.mxu3 %v10674_v51  ;;  %v6784_v51 = vld [vmem:[#allocation9 + $0x8e0] sm:$0xf] }
  0xa4   : > { %1294 = vmatpush.bf16.msra.mxu0 %v10677_v57  ;;  %1308 = vmatpush.bf16.msra.mxu1 %v10681_v58  ;;  %v9589_v57 = vld [vmem:[#allocation9 + $0x8ec] sm:$0xf0]  ;;  %v6912_v58 = vld [vmem:[#allocation9 + $0x9e0] sm:$0xf] }
  0xa5   : > { %1322 = vmatpush.bf16.msra.mxu2 %v10683_v59  ;;  %v9621_v59 = vld [vmem:[#allocation9 + $0x9ec] sm:$0xf0] }
  0xa6   : > { %1336 = vmatpush.bf16.msra.mxu3 %v10686_v63  ;;  %v6785_v63 = vor.u32 %v9589_v57, %v6784_v51 }
  0xa8   : > { %1295 = vmatpush.bf16.msra.mxu0 %v10689_v6  ;;  %1309 = vmatpush.bf16.msra.mxu1 %v10693_v7  ;;  %v6768_v6 = vld [vmem:[#allocation9 + $0x8c0] sm:$0xf] }
  0xa9   : > { %1323 = vmatpush.bf16.msra.mxu2 %v10695_v10  ;;  %v7040_v7 = vld [vmem:[#allocation9 + $0xae0] sm:$0xf]  ;;  %v9653_v10 = vld [vmem:[#allocation9 + $0xaec] sm:$0xf0] }
  0xaa   : > { %1337 = vmatpush.bf16.msra.mxu3 %v10698_v15  ;;  %v6913_v15 = vor.u32 %v9621_v59, %v6912_v58  ;;  %v6688_v58 = vld [vmem:[#allocation9 + $0x820] sm:$0xf]  ;;  %v9565_v59 = vld [vmem:[#allocation9 + $0x82c] sm:$0xf0] }
  0xac   : > { %1296 = vmatpush.bf16.msra.mxu0 %v10701_v24  ;;  %1310 = vmatpush.bf16.msra.mxu1 %v10705_v28  ;;  %v9585_v24 = vld [vmem:[#allocation9 + $0x8cc] sm:$0xf0]  ;;  %v7168_v28 = vld [vmem:[#allocation9 + $0xbe0] sm:$0xf] }
  0xad   : > { %1324 = vmatpush.bf16.msra.mxu2 %v10707_v29  ;;  %v9685_v29 = vld [vmem:[#allocation9 + $0xbec] sm:$0xf0] }
  0xae   : > { %1338 = vmatpush.bf16.msra.mxu3 %v10710_v36  ;;  %v6896_v36 = vld [vmem:[#allocation9 + $0x9c0] sm:$0xf] }
  0xb0   : > { %1297 = vmatpush.bf16.msra.mxu0 %v10713_v44  ;;  %1311 = vmatpush.bf16.msra.mxu1 %v10717_v52  ;;  %v9617_v44 = vld [vmem:[#allocation9 + $0x9cc] sm:$0xf0]  ;;  %v7041_v52 = vor.u32 %v9653_v10, %v7040_v7 }
  0xb1   : > { %1325 = vmatpush.bf16.msra.mxu2 %v10719_v53  ;;  %v6769_v53 = vor.u32 %v9585_v24, %v6768_v6  ;;  %v6689_v6 = vor.u32 %v9565_v59, %v6688_v58  ;;  %v9597_v7 = vld [vmem:[#allocation9 + $0x92c] sm:$0xf0]  ;;  %v7376_v58 = vld [vmem:[#allocation9 + $0xd80] sm:$0xf] }
  0xb2   : > { %1339 = vmatpush.bf16.msra.mxu3 %v10722_v56  ;;  %v7169_v56 = vor.u32 %v9685_v29, %v7168_v28  ;;  %v9633_v24 = vld [vmem:[#allocation9 + $0xa4c] sm:$0xf0]  ;;  %v7088_v28 = vld [vmem:[#allocation9 + $0xb40] sm:$0xf] }
  0xb3   : > { %1298 = vmatmul.bf16.vlgmr.msra.gmra.mxu0 %v10867_v9  ;;  %1312 = vmatmul.bf16.vlgmr.msra.gmra.mxu1 %v10867_v9  ;;  %v9737_v59 = vld [vmem:[#allocation9 + $0xd8c] sm:$0xf0] }
  0xb4   : > { %1346 = vmatpush.bf16.msrb.mxu0 %v10724_v60  ;;  %1360 = vmatpush.bf16.msrb.mxu1 %v10726_v61  ;;  %v6897_v60 = vor.u32 %v9617_v44, %v6896_v36  ;;  %v6752_v61 = vld [vmem:[#allocation9 + $0x8a0] sm:$0xf]  ;;  %v9665_v36 = vld [vmem:[#allocation9 + $0xb4c] sm:$0xf0] }
  0xb5   : > { %1374 = vmatpush.bf16.msrb.mxu2 %v10728_v62  ;;  %1340 = vmatmul.bf16.vlgmr.msra.gmra.mxu3 %v10867_v9  ;;  %v9581_v62 = vld [vmem:[#allocation9 + $0x8ac] sm:$0xf0]  ;;  %v7089_v44 = vor.u32 %v9665_v36, %v7088_v28 }
  0xb6   : > { %1388 = vmatpush.bf16.msrb.mxu3 %v10731_v3  ;;  %1326 = vmatmul.bf16.vlgmr.msra.gmra.mxu2 %v10867_v9  ;;  %v6880_v3 = vld [vmem:[#allocation9 + $0x9a0] sm:$0xf]  ;;  %v9805_v28 = vld [vmem:[#allocation9 + $0xfac] sm:$0xf0] }
  0xb8   : > { %1347 = vmatpush.bf16.msrb.mxu0 %v10737_v19  ;;  %1361 = vmatpush.bf16.msrb.mxu1 %v10741_v23  ;;  %v9613_v19 = vld [vmem:[#allocation9 + $0x9ac] sm:$0xf0]  ;;  %v6753_v23 = vor.u32 %v9581_v62, %v6752_v61  ;;  %v7296_v62 = vld [vmem:[#allocation9 + $0xce0] sm:$0xf] }
  0xb9   : > { %1375 = vmatpush.bf16.msrb.mxu2 %v10743_v25  ;;  %v6881_v25 = vor.u32 %v9613_v19, %v6880_v3  ;;  %v9593_v61 = vld [vmem:[#allocation9 + $0x90c] sm:$0xf0] }
  0xba   : > { %1389 = vmatpush.bf16.msrb.mxu3 %v10747_v33  ;;  %v7024_v33 = vld [vmem:[#allocation9 + $0xac0] sm:$0xf]  ;;  %v9717_v19 = vld [vmem:[#allocation9 + $0xcec] sm:$0xf0] }
  0xbc   : > { %1348 = vmatpush.bf16.msrb.mxu0 %v10753_v48  ;;  %1362 = vmatpush.bf16.msrb.mxu1 %v10757_v49  ;;  %v7152_v48 = vld [vmem:[#allocation9 + $0xbc0] sm:$0xf]  ;;  %v7025_v49 = vor.u32 %v9649_v43, %v7024_v33  ;;  %v7297_v33 = vor.u32 %v9717_v19, %v7296_v62  ;;  %v9733_v62 = vld [vmem:[#allocation9 + $0xd6c] sm:$0xf0] }
  0xbd   : > { %1376 = vmatpush.bf16.msrb.mxu2 %v11372_v13  ;;  %v9673_v13 = vld [vmem:[#allocation9 + $0xb8c] sm:$0xf0] }
  0xbe   : > { %1390 = vmatpush.bf16.msrb.mxu3 %v11373_v17  ;;  %v6704_v17 = vld [vmem:[#allocation9 + $0x840] sm:$0xf] }
  0xc0   : > { %1349 = vmatpush.bf16.msrb.mxu0 %v11374_v18  ;;  %1363 = vmatpush.bf16.msrb.mxu1 %v11375_v22  ;;  %v9569_v18 = vld [vmem:[#allocation9 + $0x84c] sm:$0xf0]  ;;  %v7121_v22 = vor.u32 %v9673_v13, %v7120_v8 }
  0xc1   : > { %1377 = vmatpush.bf16.msrb.mxu2 %v11376_v26  ;;  %v6705_v26 = vor.u32 %v9569_v18, %v6704_v17  ;;  %v9813_v8 = vld [vmem:[#allocation9 + $0xfec] sm:$0xf0]  ;;  %v7392_v18 = vld [vmem:[#allocation9 + $0xda0] sm:$0xf] }
  0xc2   : > { %1391 = vmatpush.bf16.msrb.mxu3 %v11377_v30  ;;  %v6832_v30 = vld [vmem:[#allocation9 + $0x940] sm:$0xf]  ;;  %v9709_v17 = vld [vmem:[#allocation9 + $0xcac] sm:$0xf0] }
  0xc4   : > { %1350 = vmatpush.bf16.msrb.mxu0 %v11378_v34  ;;  %1364 = vmatpush.bf16.msrb.mxu1 %v11379_v35  ;;  %v9601_v34 = vld [vmem:[#allocation9 + $0x94c] sm:$0xf0]  ;;  %v6976_v35 = vld [vmem:[#allocation9 + $0xa60] sm:$0xf] }
  0xc5   : > { %1378 = vmatpush.bf16.msrb.mxu2 %v11380_v39  ;;  %v6833_v39 = vor.u32 %v9601_v34, %v6832_v30  ;;  %v7536_v30 = vld [vmem:[#allocation9 + $0xec0] sm:$0xf]  ;;  %v9777_v34 = vld [vmem:[#allocation9 + $0xecc] sm:$0xf0] }
  0xc6   : > { %1392 = vmatpush.bf16.msrb.mxu3 %v11381_v45  ;;  %v9637_v45 = vld [vmem:[#allocation9 + $0xa6c] sm:$0xf0] }
  0xc7   : > { %v6977_v51 = vor.u32 %v9637_v45, %v6976_v35  ;;  %v7664_v45 = vld [vmem:[#allocation9 + $0xfc0] sm:$0xf] }
  0xc8   : > { %1351 = vmatpush.bf16.msrb.mxu0 %v11382_v46  ;;  %1365 = vmatpush.bf16.msrb.mxu1 %v11383_v47  ;;  %v7104_v46 = vld [vmem:[#allocation9 + $0xb60] sm:$0xf]  ;;  %v9669_v47 = vld [vmem:[#allocation9 + $0xb6c] sm:$0xf0] }
  0xc9   : > { %1379 = vmatpush.bf16.msrb.mxu2 %v10799_v37  ;;  %v6737_v37 = vor.u32 %v9577_v14, %v6736_v2  ;;  %v7105_v57 = vor.u32 %v9669_v47, %v7104_v46  ;;  %v9661_v2 = vld [vmem:[#allocation9 + $0xb2c] sm:$0xf0]  ;;  %v7248_v47 = vld [vmem:[#allocation9 + $0xc80] sm:$0xf] }
  0xca   : > { %1393 = vmatpush.bf16.msrb.mxu3 %v10802_v54  ;;  %v7008_v54 = vld [vmem:[#allocation9 + $0xaa0] sm:$0xf]  ;;  %v9809_v46 = vld [vmem:[#allocation9 + $0xfcc] sm:$0xf0] }
  0xcc   : > { %1352 = vmatpush.bf16.msrb.mxu0 %v10805_v0  ;;  %1366 = vmatpush.bf16.msrb.mxu1 %v10809_v50  ;;  %v7153_v0 = vor.u32 %v9681_v21, %v7152_v48  ;;  %v7009_v50 = vor.u32 %v9645_v5, %v7008_v54  ;;  %v6944_v48 = vld [vmem:[#allocation9 + $0xa20] sm:$0xf]  ;;  %v9745_v5 = vld [vmem:[#allocation9 + $0xdcc] sm:$0xf0] }
  0xcd   : > { %1380 = vmatpush.bf16.msrb.mxu2 %v10811_v1  ;;  %v7136_v1 = vld [vmem:[#allocation9 + $0xba0] sm:$0xf] }
  0xce   : > { %1394 = vmatpush.bf16.msrb.mxu3 %v10814_v31  ;;  %v7137_v20 = vor.u32 %v9677_v16, %v7136_v1  ;;  %v9573_v31 = vld [vmem:[#allocation9 + $0x86c] sm:$0xf0]  ;;  %v7072_v21 = vld [vmem:[#allocation9 + $0xb20] sm:$0xf] }
  0xcf   : > { %v7073_v14 = vor.u32 %v9661_v2, %v7072_v21  ;;  %v7408_v54 = vld [vmem:[#allocation9 + $0xdc0] sm:$0xf]  ;;  %v9625_v1 = vld [vmem:[#allocation9 + $0xa0c] sm:$0xf0] }
  0xd0   : > { %1353 = vmatpush.bf16.msrb.mxu0 %v10817_v32  ;;  %1367 = vmatpush.bf16.msrb.mxu1 %v10821_v27  ;;  %v6864_v32 = vld [vmem:[#allocation9 + $0x980] sm:$0xf]  ;;  %v6721_v27 = vor.u32 %v9573_v31, %v6720_v12  ;;  %v9657_v12 = vld [vmem:[#allocation9 + $0xb0c] sm:$0xf0] }
  0xd1   : > { %1381 = vmatpush.bf16.msrb.mxu2 %v10823_v38  ;;  %v6865_v11 = vor.u32 %v9609_v42, %v6864_v32  ;;  %v6849_v38 = vor.u32 %v9605_v41, %v6848_v40  ;;  %v7280_v32 = vld [vmem:[#allocation9 + $0xcc0] sm:$0xf] }
  0xd2   : > { %1395 = vmatpush.bf16.msrb.mxu3 %v10826_v55  ;;  %v6992_v55 = vld [vmem:[#allocation9 + $0xa80] sm:$0xf] }
  0xd3   : > { %1354 = vmatmul.bf16.vlgmr.msrb.gmra.mxu0 %v10867_v9  ;;  %1368 = vmatmul.bf16.vlgmr.msrb.gmra.mxu1 %v10867_v9  ;;  %v7056_v16 = vld [vmem:[#allocation9 + $0xb00] sm:$0xf] }
  0xd4   : > { %2962 = vmatpush.bf16.msra.mxu0 %v6785_v63  ;;  %2976 = vmatpush.bf16.msra.mxu1 %v6913_v15  ;;  %v6816_v63 = vld [vmem:[#allocation9 + $0x920] sm:$0xf]  ;;  %v7057_v40 = vor.u32 %v9657_v12, %v7056_v16  ;;  %v9693_v12 = vld [vmem:[#allocation9 + $0xc2c] sm:$0xf0] }
  0xd5   : > { %1382 = vmatmul.bf16.vlgmr.msrb.gmra.mxu2 %v10867_v9  ;;  %1396 = vmatmul.bf16.vlgmr.msrb.gmra.mxu3 %v10867_v9  ;;  %v6993_v9 = vor.u32 %v9641_v4, %v6992_v55  ;;  %v6817_v10 = vor.u32 %v9597_v7, %v6816_v63  ;;  %v6960_v15 = vld [vmem:[#allocation9 + $0xa40] sm:$0xf] }
  0xd6   : > { %2990 = vmatpush.bf16.msra.mxu2 %v7041_v52  ;;  %3004 = vmatpush.bf16.msra.mxu3 %v7169_v56  ;;  %v6961_v29 = vor.u32 %v9633_v24, %v6960_v15  ;;  %v6672_v52 = vld [vmem:[#allocation9 + $0x800] sm:$0xf] }
  0xd7   : > { %v7552_v41 = vld [vmem:[#allocation9 + $0xee0] sm:$0xf] }
  0xd8   : > { %2963 = vmatpush.bf16.msra.mxu0 %v6769_v53  ;;  %2977 = vmatpush.bf16.msra.mxu1 %v6897_v60  ;;  %v9561_v53 = vld [vmem:[#allocation9 + $0x80c] sm:$0xf0]  ;;  %v6800_v60 = vld [vmem:[#allocation9 + $0x900] sm:$0xf] }
  0xd9   : > { %v6673_v56 = vor.u32 %v9561_v53, %v6672_v52  ;;  %v6801_v3 = vor.u32 %v9593_v61, %v6800_v60  ;;  %v7520_v7 = vld [vmem:[#allocation9 + $0xea0] sm:$0xf]  ;;  %v9701_v52 = vld [vmem:[#allocation9 + $0xc6c] sm:$0xf0] }
  0xda   : > { %2991 = vmatpush.bf16.msra.mxu2 %v7025_v49  ;;  %3005 = vmatpush.bf16.msra.mxu3 %v7153_v0  ;;  %v9629_v49 = vld [vmem:[#allocation9 + $0xa2c] sm:$0xf0]  ;;  %v7648_v15 = vld [vmem:[#allocation9 + $0xfa0] sm:$0xf] }
  0xdb   : > { %v6945_v0 = vor.u32 %v9629_v49, %v6944_v48  ;;  %v7649_v36 = vor.u32 %v9805_v28, %v7648_v15  ;;  %v7360_v53 = vld [vmem:[#allocation9 + $0xd60] sm:$0xf]  ;;  %v9801_v48 = vld [vmem:[#allocation9 + $0xf8c] sm:$0xf0] }
  0xdc   : > { %2964 = vmatpush.bf16.msra.mxu0 %v6753_v23  ;;  %2978 = vmatpush.bf16.msra.mxu1 %v6881_v25  ;;  %v7424_v23 = vld [vmem:[#allocation9 + $0xde0] sm:$0xf]  ;;  %v9749_v25 = vld [vmem:[#allocation9 + $0xdec] sm:$0xf0]  ;;  %v7361_v19 = vor.u32 %v9733_v62, %v7360_v53 }
  0xdd   : > { %v7425_v43 = vor.u32 %v9749_v25, %v7424_v23  ;;  %v7504_v23 = vld [vmem:[#allocation9 + $0xe80] sm:$0xf]  ;;  %v9769_v25 = vld [vmem:[#allocation9 + $0xe8c] sm:$0xf0] }
  0xde   : > { %2992 = vmatpush.bf16.msra.mxu2 %v7009_v50  ;;  %3006 = vmatpush.bf16.msra.mxu3 %v7137_v20  ;;  %v7409_v50 = vor.u32 %v9745_v5, %v7408_v54  ;;  %v7216_v21 = vld [vmem:[#allocation9 + $0xc40] sm:$0xf]  ;;  %v9765_v54 = vld [vmem:[#allocation9 + $0xe6c] sm:$0xf0] }
  0xdf   : > { %v7344_v2 = vld [vmem:[#allocation9 + $0xd40] sm:$0xf] }
  0xe0   : > { %2965 = vmatpush.bf16.msra.mxu0 %v6737_v37  ;;  %2979 = vmatpush.bf16.msra.mxu1 %v6865_v11  ;;  %v9713_v37 = vld [vmem:[#allocation9 + $0xccc] sm:$0xf0]  ;;  %v6928_v11 = vld [vmem:[#allocation9 + $0xa00] sm:$0xf] }
  0xe1   : > { %v7281_v42 = vor.u32 %v9713_v37, %v7280_v32  ;;  %v6929_v31 = vor.u32 %v9625_v1, %v6928_v11  ;;  %v9729_v32 = vld [vmem:[#allocation9 + $0xd4c] sm:$0xf0]  ;;  %v7616_v11 = vld [vmem:[#allocation9 + $0xf60] sm:$0xf] }
  0xe2   : > { %2993 = vmatpush.bf16.msra.mxu2 %v6993_v9  ;;  %3007 = vmatpush.bf16.msra.mxu3 %v7121_v22  ;;  %v7264_v9 = vld [vmem:[#allocation9 + $0xca0] sm:$0xf]  ;;  %v7345_v37 = vor.u32 %v9729_v32, %v7344_v2 }
  0xe3   : > { %v7265_v22 = vor.u32 %v9709_v17, %v7264_v9  ;;  %v7200_v16 = vld [vmem:[#allocation9 + $0xc20] sm:$0xf] }
  0xe4   : > { %2966 = vmatpush.bf16.msra.mxu0 %v6721_v27  ;;  %2980 = vmatpush.bf16.msra.mxu1 %v6849_v38  ;;  %v9781_v27 = vld [vmem:[#allocation9 + $0xeec] sm:$0xf0]  ;;  %v7680_v38 = vld [vmem:[#allocation9 + $0xfe0] sm:$0xf] }
  0xe5   : > { %v7553_v4 = vor.u32 %v9781_v27, %v7552_v41  ;;  %v7681_v13 = vor.u32 %v9813_v8, %v7680_v38  ;;  %v9725_v41 = vld [vmem:[#allocation9 + $0xd2c] sm:$0xf0]  ;;  %v7568_v15 = vld [vmem:[#allocation9 + $0xf00] sm:$0xf] }
  0xe6   : > { %2994 = vmatpush.bf16.msra.mxu2 %v6977_v51  ;;  %3008 = vmatpush.bf16.msra.mxu3 %v7105_v57  ;;  %v7665_v51 = vor.u32 %v9809_v46, %v7664_v45  ;;  %v9705_v57 = vld [vmem:[#allocation9 + $0xc8c] sm:$0xf0] }
  0xe7   : > { %v7249_v63 = vor.u32 %v9705_v57, %v7248_v47  ;;  %v9761_v8 = vld [vmem:[#allocation9 + $0xe4c] sm:$0xf0] }
  0xe8   : > { %2967 = vmatpush.bf16.msra.mxu0 %v6705_v26  ;;  %2981 = vmatpush.bf16.msra.mxu1 %v6833_v39  ;;  %v9741_v26 = vld [vmem:[#allocation9 + $0xdac] sm:$0xf0]  ;;  %v7537_v39 = vor.u32 %v9777_v34, %v7536_v30  ;;  %v7184_v34 = vld [vmem:[#allocation9 + $0xc00] sm:$0xf] }
  0xe9   : > { %v7393_v35 = vor.u32 %v9741_v26, %v7392_v18  ;;  %v7600_v18 = vld [vmem:[#allocation9 + $0xf40] sm:$0xf]  ;;  %v9721_v46 = vld [vmem:[#allocation9 + $0xd0c] sm:$0xf0] }
  0xea   : > { %2995 = vmatpush.bf16.msra.mxu2 %v6961_v29  ;;  %3009 = vmatpush.bf16.msra.mxu3 %v7089_v44  ;;  %v7232_v44 = vld [vmem:[#allocation9 + $0xc60] sm:$0xf]  ;;  %v9757_v57 = vld [vmem:[#allocation9 + $0xe2c] sm:$0xf0] }
  0xeb   : > { %v7233_v61 = vor.u32 %v9701_v52, %v7232_v44 }
  0xec   : > { %2968 = vmatpush.bf16.msra.mxu0 %v6689_v6  ;;  %2982 = vmatpush.bf16.msra.mxu1 %v6817_v10  ;;  %v7377_v6 = vor.u32 %v9737_v59, %v7376_v58  ;;  %v9773_v10 = vld [vmem:[#allocation9 + $0xeac] sm:$0xf0]  ;;  %v7584_v59 = vld [vmem:[#allocation9 + $0xf20] sm:$0xf] }
  0xed   : > { %v7521_v24 = vor.u32 %v9773_v10, %v7520_v7  ;;  %v7440_v7 = vld [vmem:[#allocation9 + $0xe00] sm:$0xf]  ;;  %v9753_v10 = vld [vmem:[#allocation9 + $0xe0c] sm:$0xf0] }
  0xee   : > { %2996 = vmatpush.bf16.msra.mxu2 %v6945_v0  ;;  %3010 = vmatpush.bf16.msra.mxu3 %v7073_v14  ;;  %v9697_v0 = vld [vmem:[#allocation9 + $0xc4c] sm:$0xf0]  ;;  %v7441_v28 = vor.u32 %v9753_v10, %v7440_v7  ;;  %v7170_v7 = vld [vmem:[#allocation9 + $0xbf0] sm:$0xf0]  ;;  %v9579_v10 = vld [vmem:[#allocation9 + $0x8a4] sm:$0xf] }
  0xef   : > { %v7217_v14 = vor.u32 %v9697_v0, %v7216_v21 }
  0xf0   : > { %2969 = vmatpush.bf16.msra.mxu0 %v6673_v56  ;;  %2983 = vmatpush.bf16.msra.mxu1 %v6801_v3  ;;  %v10912_v20 = vpop.f32.mrf.mxu0  ;;  %v10914_v55 = vpop.f32.mrf.mxu1 }
  0xf2   : > { %2997 = vmatpush.bf16.msra.mxu2 %v6929_v31  ;;  %3011 = vmatpush.bf16.msra.mxu3 %v7057_v40  ;;  %v7201_v31 = vor.u32 %v9693_v12, %v7200_v16  ;;  %v7328_v40 = vld [vmem:[#allocation9 + $0xd20] sm:$0xf]  ;;  %v9619_v16 = vld [vmem:[#allocation9 + $0x9e4] sm:$0xf]  ;;  %v6914_v12 = vld [vmem:[#allocation9 + $0x9f0] sm:$0xf0] }
  0xf3   : > { %v7329_v38 = vor.u32 %v9725_v41, %v7328_v40 }
  0xf4   : > { %3018 = vmatpush.bf16.msrb.mxu0 %v7297_v33  ;;  %3032 = vmatpush.bf16.msrb.mxu1 %v7425_v43  ;;  %v7505_v33 = vor.u32 %v9769_v25, %v7504_v23  ;;  %v7632_v43 = vld [vmem:[#allocation9 + $0xf80] sm:$0xf]  ;;  %v10944_v23 = vld [vmem:[#allocation8 + $0x8] sm:$0xff] }
  0xf5   : > { %v7633_v49 = vor.u32 %v9801_v48, %v7632_v43  ;;  %v1271_v48 = vperm.slane %v10944_v23, 1 }
  0xf6   : > { %3046 = vmatpush.bf16.msrb.mxu2 %v7553_v4  ;;  %3060 = vmatpush.bf16.msrb.mxu3 %v7681_v13  ;;  %v7472_v4 = vld [vmem:[#allocation9 + $0xe40] sm:$0xf] }
  0xf7   : > { %v7473_v17 = vor.u32 %v9761_v8, %v7472_v4  ;;  %v6917_v8 = vor.u32 %v9619_v16, %v6914_v12 }
  0xf8   : > { %3019 = vmatpush.bf16.msrb.mxu0 %v7281_v42  ;;  %3033 = vmatpush.bf16.msrb.mxu1 %v7409_v50  ;;  %v10918_v56 = vpop.f32.mrf.mxu3  ;;  %v10920_v60 = vpop.f32.mrf.mxu0  ;;  %v7488_v42 = vld [vmem:[#allocation9 + $0xe60] sm:$0xf]  ;;  %v9797_v50 = vld [vmem:[#allocation9 + $0xf6c] sm:$0xf0] }
  0xf9   : > { %v10916_v29 = vpop.f32.mrf.mxu2  ;;  %v10922_v3 = vpop.f32.mrf.mxu1  ;;  %v7489_v5 = vor.u32 %v9765_v54, %v7488_v42  ;;  %v7617_v1 = vor.u32 %v9797_v50, %v7616_v11  ;;  %v9587_v54 = vld [vmem:[#allocation9 + $0x8e4] sm:$0xf]  ;;  %v1272_v50 = vperm.slane %v10944_v23, 2 }
  0xfa   : > { %3047 = vmatpush.bf16.msrb.mxu2 %v7537_v39  ;;  %3061 = vmatpush.bf16.msrb.mxu3 %v7665_v51  ;;  %v7312_v39 = vld [vmem:[#allocation9 + $0xd00] sm:$0xf] }
  0xfb   : > { %v7313_v47 = vor.u32 %v9721_v46, %v7312_v39  ;;  %v7456_v51 = vld [vmem:[#allocation9 + $0xe20] sm:$0xf] }
  0xfc   : > { %3020 = vmatpush.bf16.msrb.mxu0 %v7265_v22  ;;  %3034 = vmatpush.bf16.msrb.mxu1 %v7393_v35  ;;  %v9793_v22 = vld [vmem:[#allocation9 + $0xf4c] sm:$0xf0]  ;;  %v7457_v58 = vor.u32 %v9757_v57, %v7456_v51  ;;  %v9651_v57 = vld [vmem:[#allocation9 + $0xae4] sm:$0xf] }
  0xfd   : > { %v7601_v30 = vor.u32 %v9793_v22, %v7600_v18  ;;  %v9689_v35 = vld [vmem:[#allocation9 + $0xc0c] sm:$0xf0]  ;;  %v6770_v18 = vld [vmem:[#allocation9 + $0x8d0] sm:$0xf0] }
  0xfe   : > { %3048 = vmatpush.bf16.msrb.mxu2 %v7521_v24  ;;  %3062 = vmatpush.bf16.msrb.mxu3 %v7649_v36  ;;  %v7185_v45 = vor.u32 %v9689_v35, %v7184_v34  ;;  %v9785_v36 = vld [vmem:[#allocation9 + $0xf0c] sm:$0xf0]  ;;  %v9615_v34 = vld [vmem:[#allocation9 + $0x9c4] sm:$0xf]  ;;  %v6898_v35 = vld [vmem:[#allocation9 + $0x9d0] sm:$0xf0] }
  0xff   : > { %v7569_v53 = vor.u32 %v9785_v36, %v7568_v15  ;;  %v6754_v15 = vld [vmem:[#allocation9 + $0x8b0] sm:$0xf0] }
 0x100   : > { %3021 = vmatpush.bf16.msrb.mxu0 %v7249_v63  ;;  %3035 = vmatpush.bf16.msrb.mxu1 %v7377_v6  ;;  %v10926_v9 = vpop.f32.mrf.mxu3  ;;  %v9789_v63 = vld [vmem:[#allocation9 + $0xf2c] sm:$0xf0] }
 0x101   : > { %v10924_v27 = vpop.f32.mrf.mxu2  ;;  %v7585_v6 = vor.u32 %v9789_v63, %v7584_v59  ;;  %v9683_v59 = vld [vmem:[#allocation9 + $0xbe4] sm:$0xf] }
 0x102   : > { %3049 = vmatpush.bf16.msrb.mxu2 %v7505_v33  ;;  %3063 = vmatpush.bf16.msrb.mxu3 %v7633_v49  ;;  %v1270_v33 = vperm.slane %v10944_v23, 0 }
 0x104   : > { %3022 = vmatpush.bf16.msrb.mxu0 %v7233_v61  ;;  %3036 = vmatpush.bf16.msrb.mxu1 %v7361_v19 }
 0x106   : > { %3050 = vmatpush.bf16.msrb.mxu2 %v7489_v5  ;;  %3064 = vmatpush.bf16.msrb.mxu3 %v7617_v1  ;;  %v6786_v5 = vld [vmem:[#allocation9 + $0x8f0] sm:$0xf0] }
 0x108   : > { %3023 = vmatpush.bf16.msrb.mxu0 %v7217_v14  ;;  %3037 = vmatpush.bf16.msrb.mxu1 %v7345_v37 }
 0x10a   : > { %3051 = vmatpush.bf16.msrb.mxu2 %v7473_v17  ;;  %3065 = vmatpush.bf16.msrb.mxu3 %v7601_v30  ;;  %v9583_v17 = vld [vmem:[#allocation9 + $0x8c4] sm:$0xf] }
 0x10b   : > { %v6773_v51 = vor.u32 %v9583_v17, %v6770_v18  ;;  %v7138_v17 = vld [vmem:[#allocation9 + $0xbb0] sm:$0xf0]  ;;  %v9571_v18 = vld [vmem:[#allocation9 + $0x864] sm:$0xf] }
 0x10c   : > { %3024 = vmatpush.bf16.msrb.mxu0 %v7201_v31  ;;  %3038 = vmatpush.bf16.msrb.mxu1 %v7329_v38  ;;  %v1273_v31 = vperm.slane %v10944_v23, 3  ;;  %v6789_v38 = vor.u32 %v9587_v54, %v6786_v5  ;;  %v7154_v54 = vld [vmem:[#allocation9 + $0xbd0] sm:$0xf0]  ;;  %v9575_v5 = vld [vmem:[#allocation9 + $0x884] sm:$0xf] }
 0x10e   : > { %3052 = vmatpush.bf16.msrb.mxu2 %v7457_v58  ;;  %3066 = vmatpush.bf16.msrb.mxu3 %v7585_v6  ;;  %v7042_v58 = vld [vmem:[#allocation9 + $0xaf0] sm:$0xf0]  ;;  %v6901_v6 = vor.u32 %v9615_v34, %v6898_v35  ;;  %v9603_v34 = vld [vmem:[#allocation9 + $0x964] sm:$0xf] }
 0x10f   : > { %v6850_v35 = vld [vmem:[#allocation9 + $0x970] sm:$0xf0] }
 0x110   : > { %v10928_v13 = vpop.f32.mrf.mxu0  ;;  %v10930_v26 = vpop.f32.mrf.mxu1  ;;  %3025 = vmatpush.bf16.msrb.mxu0 %v7185_v45  ;;  %3039 = vmatpush.bf16.msrb.mxu1 %v7313_v47 }
 0x112   : > { %3053 = vmatpush.bf16.msrb.mxu2 %v7441_v28  ;;  %3067 = vmatpush.bf16.msrb.mxu3 %v7569_v53  ;;  %v9611_v53 = vld [vmem:[#allocation9 + $0x9a4] sm:$0xf] }
 0x118   : > { %v10934_v44 = vpop.f32.mrf.mxu3  ;;  %v10936_v52 = vpop.f32.mrf.mxu0 }
 0x119   : > { %v10932_v24 = vpop.f32.mrf.mxu2  ;;  %v10938_v61 = vpop.f32.mrf.mxu1 }
 0x120   : > { %v10942_v19 = vpop.f32.mrf.mxu3 }
 0x121   : > { %v10940_v62 = vpop.f32.mrf.mxu2 }
 0x130   : > { %v1299_v25 = vpop.f32.mrf.mxu0  ;;  %v1313_v43 = vpop.f32.mrf.mxu1 }
 0x131   : > { %v1300_v49 = vadd.f32 %v1299_v25, %v1270_v33  ;;  %v1314_v21 = vadd.f32 %v1313_v43, %v1271_v48  ;;  %v6882_v25 = vld [vmem:[#allocation9 + $0x9b0] sm:$0xf0] }
 0x133   : > { %v1402_v32 = vmax.f32 %v1300_v49, 0.0  ;;  %v1403_v11 = vmax.f32 %v1314_v21, 0.0  ;;  %v7173_v21 = vor.u32 %v9683_v59, %v7170_v7  ;;  %v6853_v59 = vor.u32 %v9603_v34, %v6850_v35  ;;  %v6706_v7 = vld [vmem:[#allocation9 + $0x850] sm:$0xf0] }
 0x134   : > { %v6674_v35 = vld [vmem:[#allocation9 + $0x810] sm:$0xf0] }
 0x138   : > { %v1341_v2 = vpop.f32.mrf.mxu3  ;;  %v1301_v14 = vpop.f32.mrf.mxu0 }
 0x139   : > { %v1327_v0 = vpop.f32.mrf.mxu2  ;;  %v1302_v37 = vadd.f32 %v1301_v14, %v1270_v33  ;;  %v1315_v42 = vpop.f32.mrf.mxu1  ;;  %v1342_v39 = vadd.f32 %v1341_v2, %v1273_v31  ;;  %v9647_v2 = vld [vmem:[#allocation9 + $0xac4] sm:$0xf]  ;;  %v7026_v14 = vld [vmem:[#allocation9 + $0xad0] sm:$0xf0] }
 0x13a   : > { %v1316_v1 = vadd.f32 %v1315_v42, %v1271_v48  ;;  %v1328_v22 = vadd.f32 %v1327_v0, %v1272_v50  ;;  %v7045_v48 = vor.u32 %v9651_v57, %v7042_v58  ;;  %v6757_v0 = vor.u32 %v9579_v10, %v6754_v15  ;;  %v9671_v57 = vld [vmem:[#allocation9 + $0xb84] sm:$0xf] }
 0x13b   : > { %v1410_v40 = vmax.f32 %v1302_v37, 0.0  ;;  %v1405_v33 = vmax.f32 %v1342_v39, 0.0  ;;  %v6885_v42 = vor.u32 %v9611_v53, %v6882_v25  ;;  %v7029_v16 = vor.u32 %v9647_v2, %v7026_v14  ;;  %v7106_v14 = vld [vmem:[#allocation9 + $0xb70] sm:$0xf0] }
 0x13c   : > { %v1411_v41 = vmax.f32 %v1316_v1, 0.0  ;;  %v1404_v28 = vmax.f32 %v1328_v22, 0.0  ;;  %v6866_v1 = vld [vmem:[#allocation9 + $0x990] sm:$0xf0]  ;;  %v1274_v10 = vperm.slane %v10944_v23, 4  ;;  %v1275_v53 = vperm.slane %v10944_v23, 5 }
 0x13d   : > { %v10950_v4 = vpack.c.bf16 %v1410_v40, %v1402_v32  ;;  %v9679_v32 = vld [vmem:[#allocation9 + $0xbc4] sm:$0xf]  ;;  %v6722_v22 = vld [vmem:[#allocation9 + $0x870] sm:$0xf0] }
 0x13e   : > { %v10952_v30 = vpack.c.bf16 %v1411_v41, %v1403_v11  ;;  %v6738_v11 = vld [vmem:[#allocation9 + $0x890] sm:$0xf0]  ;;  %v7157_v12 = vor.u32 %v9679_v32, %v7154_v54  ;;  %v9643_v40 = vld [vmem:[#allocation9 + $0xaa4] sm:$0xf] }
 0x13f   : > { %2970 = vmatmul.bf16.vlgmr.msra.gmra.mxu0 %v10950_v4  ;;  %v7010_v41 = vld [vmem:[#allocation9 + $0xab0] sm:$0xf0]  ;;  %v9563_v32 = vld [vmem:[#allocation9 + $0x824] sm:$0xf] }
 0x140   : > { %v1343_v47 = vpop.f32.mrf.mxu3  ;;  %2984 = vmatmul.bf16.vlgmr.msra.gmra.mxu1 %v10952_v30  ;;  %3074 = vmatpush.bf16.msra.mxu0 %v6789_v38  ;;  %v9675_v38 = vld [vmem:[#allocation9 + $0xba4] sm:$0xf]  ;;  %v7013_v39 = vor.u32 %v9643_v40, %v7010_v41 }
 0x141   : > { %v1329_v45 = vpop.f32.mrf.mxu2  ;;  %v1344_v63 = vadd.f32 %v1343_v47, %v1273_v31  ;;  %3088 = vmatpush.bf16.msra.mxu1 %v6917_v8  ;;  %v6741_v31 = vor.u32 %v9575_v5, %v6738_v11  ;;  %v9639_v47 = vld [vmem:[#allocation9 + $0xa84] sm:$0xf]  ;;  %v6818_v11 = vld [vmem:[#allocation9 + $0x930] sm:$0xf0] }
 0x142   : > { %v1330_v46 = vadd.f32 %v1329_v45, %v1272_v50  ;;  %v9607_v50 = vld [vmem:[#allocation9 + $0x984] sm:$0xf]  ;;  %v7141_v45 = vor.u32 %v9675_v38, %v7138_v17 }
 0x143   : > { %v1413_v43 = vmax.f32 %v1344_v63, 0.0  ;;  %v6869_v8 = vor.u32 %v9607_v50, %v6866_v1  ;;  %v7122_v63 = vld [vmem:[#allocation9 + $0xb90] sm:$0xf0]  ;;  %v9595_v5 = vld [vmem:[#allocation9 + $0x924] sm:$0xf] }
 0x144   : > { %v1412_v36 = vmax.f32 %v1330_v46, 0.0  ;;  %3075 = vmatpush.bf16.msra.mxu0 %v6773_v51  ;;  %v6725_v46 = vor.u32 %v9571_v18, %v6722_v22  ;;  %v6994_v51 = vld [vmem:[#allocation9 + $0xa90] sm:$0xf0]  ;;  %v9663_v38 = vld [vmem:[#allocation9 + $0xb44] sm:$0xf]  ;;  %v6821_v34 = vor.u32 %v9595_v5, %v6818_v11 }
 0x145   : > { %v10958_v37 = vpack.c.bf16 %v1413_v43, %v1405_v33  ;;  %3089 = vmatpush.bf16.msra.mxu1 %v6901_v6  ;;  %v9567_v6 = vld [vmem:[#allocation9 + $0x844] sm:$0xf]  ;;  %v6997_v25 = vor.u32 %v9639_v47, %v6994_v51  ;;  %v7125_v33 = vor.u32 %v9671_v57, %v7122_v63  ;;  %v1276_v63 = vperm.slane %v10944_v23, 6 }
 0x146   : > { %v10956_v49 = vpack.c.bf16 %v1412_v36, %v1404_v28  ;;  %v9599_v28 = vld [vmem:[#allocation9 + $0x944] sm:$0xf]  ;;  %v6834_v36 = vld [vmem:[#allocation9 + $0x950] sm:$0xf0]  ;;  %v6709_v43 = vor.u32 %v9567_v6, %v6706_v7 }
 0x147   : > { %3012 = vmatmul.bf16.vlgmr.msra.gmra.mxu3 %v10958_v37  ;;  %v6837_v2 = vor.u32 %v9599_v28, %v6834_v36  ;;  %v9559_v17 = vld [vmem:[#allocation9 + $0x804] sm:$0xf]  ;;  %v7426_v28 = vld [vmem:[#allocation9 + $0xdf0] sm:$0xf0]  ;;  %v1277_v36 = vperm.slane %v10944_v23, 7 }
 0x148   : > { %2998 = vmatmul.bf16.vlgmr.msra.gmra.mxu2 %v10956_v49  ;;  %3116 = vmatpush.bf16.msra.mxu3 %v7173_v21  ;;  %v6978_v21 = vld [vmem:[#allocation9 + $0xa70] sm:$0xf0]  ;;  %v9715_v57 = vld [vmem:[#allocation9 + $0xce4] sm:$0xf] }
 0x149   : > { %3102 = vmatpush.bf16.msra.mxu2 %v7045_v48  ;;  %3076 = vmatpush.bf16.msra.mxu0 %v6757_v0  ;;  %v9635_v48 = vld [vmem:[#allocation9 + $0xa64] sm:$0xf] }
 0x14a   : > { %3090 = vmatpush.bf16.msra.mxu1 %v6885_v42  ;;  %v9667_v0 = vld [vmem:[#allocation9 + $0xb64] sm:$0xf]  ;;  %v6690_v42 = vld [vmem:[#allocation9 + $0x830] sm:$0xf0]  ;;  %v6981_v1 = vor.u32 %v9635_v48, %v6978_v21 }
 0x14b   : > { %v7109_v40 = vor.u32 %v9667_v0, %v7106_v14  ;;  %v6693_v41 = vor.u32 %v9563_v32, %v6690_v42  ;;  %v9627_v48 = vld [vmem:[#allocation9 + $0xa24] sm:$0xf]  ;;  %v7074_v14 = vld [vmem:[#allocation9 + $0xb30] sm:$0xf0] }
 0x14c   : > { %3117 = vmatpush.bf16.msra.mxu3 %v7157_v12  ;;  %v6962_v12 = vld [vmem:[#allocation9 + $0xa50] sm:$0xf0]  ;;  %v9711_v11 = vld [vmem:[#allocation9 + $0xcc4] sm:$0xf] }
 0x14d   : > { %3103 = vmatpush.bf16.msra.mxu2 %v7029_v16  ;;  %3077 = vmatpush.bf16.msra.mxu0 %v6741_v31  ;;  %v9631_v16 = vld [vmem:[#allocation9 + $0xa44] sm:$0xf] }
 0x14e   : > { %3091 = vmatpush.bf16.msra.mxu1 %v6869_v8  ;;  %v7090_v8 = vld [vmem:[#allocation9 + $0xb50] sm:$0xf0]  ;;  %v6965_v7 = vor.u32 %v9631_v16, %v6962_v12 }
 0x150   : > { %v1355_v58 = vpop.f32.mrf.mxu0  ;;  %v1369_v15 = vpop.f32.mrf.mxu1  ;;  %3118 = vmatpush.bf16.msra.mxu3 %v7141_v45  ;;  %v6802_v45 = vld [vmem:[#allocation9 + $0x910] sm:$0xf0] }
 0x151   : > { %3104 = vmatpush.bf16.msra.mxu2 %v7013_v39  ;;  %3078 = vmatpush.bf16.msra.mxu0 %v6725_v46  ;;  %v1356_v54 = vadd.f32 %v1355_v58, %v1274_v10  ;;  %v1370_v50 = vadd.f32 %v1369_v15, %v1275_v53  ;;  %v9591_v39 = vld [vmem:[#allocation9 + $0x904] sm:$0xf]  ;;  %v7298_v58 = vld [vmem:[#allocation9 + $0xcf0] sm:$0xf0] }
 0x152   : > { %3092 = vmatpush.bf16.msra.mxu1 %v6853_v59  ;;  %v9747_v15 = vld [vmem:[#allocation9 + $0xde4] sm:$0xf]  ;;  %v6805_v0 = vor.u32 %v9591_v39, %v6802_v45  ;;  %v7554_v45 = vld [vmem:[#allocation9 + $0xef0] sm:$0xf0] }
 0x153   : > { %v1406_v46 = vmax.f32 %v1356_v54, 0.0  ;;  %v1407_v59 = vmax.f32 %v1370_v50, 0.0  ;;  %v7429_v23 = vor.u32 %v9747_v15, %v7426_v28  ;;  %v7282_v50 = vld [vmem:[#allocation9 + $0xcd0] sm:$0xf0] }
 0x154   : > { %3119 = vmatpush.bf16.msra.mxu3 %v7125_v33  ;;  %v7093_v33 = vor.u32 %v9663_v38, %v7090_v8  ;;  %v9623_v38 = vld [vmem:[#allocation9 + $0xa04] sm:$0xf]  ;;  %v6930_v8 = vld [vmem:[#allocation9 + $0xa10] sm:$0xf0] }
 0x155   : > { %3105 = vmatpush.bf16.msra.mxu2 %v6997_v25  ;;  %3079 = vmatpush.bf16.msra.mxu0 %v6709_v43  ;;  %v6677_v43 = vor.u32 %v9559_v17, %v6674_v35  ;;  %v9779_v35 = vld [vmem:[#allocation9 + $0xee4] sm:$0xf] }
 0x156   : > { %3093 = vmatpush.bf16.msra.mxu1 %v6837_v2  ;;  %v9659_v2 = vld [vmem:[#allocation9 + $0xb24] sm:$0xf] }
 0x158   : > { %v1383_v31 = vpop.f32.mrf.mxu2  ;;  %v1397_v18 = vpop.f32.mrf.mxu3  ;;  %3120 = vmatpush.bf16.msra.mxu3 %v7109_v40  ;;  %v7077_v40 = vor.u32 %v9659_v2, %v7074_v14  ;;  %v7538_v2 = vld [vmem:[#allocation9 + $0xed0] sm:$0xf0]  ;;  %v9807_v14 = vld [vmem:[#allocation9 + $0xfc4] sm:$0xf] }
 0x159   : > { %v1357_v22 = vpop.f32.mrf.mxu0  ;;  %v1371_v51 = vpop.f32.mrf.mxu1  ;;  %3106 = vmatpush.bf16.msra.mxu2 %v6981_v1  ;;  %3080 = vmatpush.bf16.msra.mxu0 %v6693_v41  ;;  %v1384_v42 = vadd.f32 %v1383_v31, %v1276_v63  ;;  %v9743_v1 = vld [vmem:[#allocation9 + $0xdc4] sm:$0xf]  ;;  %v1398_v16 = vadd.f32 %v1397_v18, %v1277_v36  ;;  %v7410_v41 = vld [vmem:[#allocation9 + $0xdd0] sm:$0xf0]  ;;  %v7285_v18 = vor.u32 %v9711_v11, %v7282_v50 }
 0x15a   : > { %v1358_v47 = vadd.f32 %v1357_v22, %v1274_v10  ;;  %v1372_v6 = vadd.f32 %v1371_v51, %v1275_v53  ;;  %v6946_v10 = vld [vmem:[#allocation9 + $0xa30] sm:$0xf0]  ;;  %3094 = vmatpush.bf16.msra.mxu1 %v6821_v34  ;;  %v7301_v53 = vor.u32 %v9715_v57, %v7298_v58  ;;  %v9655_v31 = vld [vmem:[#allocation9 + $0xb04] sm:$0xf]  ;;  %v7413_v58 = vor.u32 %v9743_v1, %v7410_v41 }
 0x15b   : > { %v6949_v5 = vor.u32 %v9627_v48, %v6946_v10  ;;  %v7058_v34 = vld [vmem:[#allocation9 + $0xb10] sm:$0xf0]  ;;  %v1408_v51 = vmax.f32 %v1384_v42, 0.0  ;;  %v9735_v11 = vld [vmem:[#allocation9 + $0xd84] sm:$0xf] }
 0x15c   : > { %v1414_v25 = vmax.f32 %v1358_v47, 0.0  ;;  %v1415_v21 = vmax.f32 %v1372_v6, 0.0  ;;  %3121 = vmatpush.bf16.msra.mxu3 %v7093_v33  ;;  %v7682_v47 = vld [vmem:[#allocation9 + $0xff0] sm:$0xf0]  ;;  %v7061_v28 = vor.u32 %v9655_v31, %v7058_v34  ;;  %v9731_v34 = vld [vmem:[#allocation9 + $0xd64] sm:$0xf] }
 0x15d   : > { %3107 = vmatpush.bf16.msra.mxu2 %v6965_v7  ;;  %3081 = vmatpush.bf16.msra.mxu0 %v6677_v43  ;;  %v7266_v6 = vld [vmem:[#allocation9 + $0xcb0] sm:$0xf0]  ;;  %v1409_v7 = vmax.f32 %v1398_v16, 0.0  ;;  %v7557_v43 = vor.u32 %v9779_v35, %v7554_v45  ;;  %v9767_v45 = vld [vmem:[#allocation9 + $0xe84] sm:$0xf] }
 0x15e   : > { %v10966_v32 = vpack.c.bf16 %v1414_v25, %v1406_v46  ;;  %v10968_v54 = vpack.c.bf16 %v1415_v21, %v1407_v59  ;;  %3095 = vmatpush.bf16.msra.mxu1 %v6805_v0  ;;  %v9811_v46 = vld [vmem:[#allocation9 + $0xfe4] sm:$0xf]  ;;  %v6933_v59 = vor.u32 %v9623_v38, %v6930_v8  ;;  %v7394_v25 = vld [vmem:[#allocation9 + $0xdb0] sm:$0xf0] }
 0x15f   : > { %v7685_v10 = vor.u32 %v9811_v46, %v7682_v47  ;;  %v9775_v0 = vld [vmem:[#allocation9 + $0xec4] sm:$0xf]  ;;  %v7666_v42 = vld [vmem:[#allocation9 + $0xfd0] sm:$0xf0] }
 0x160   : > { %v1385_v12 = vpop.f32.mrf.mxu2  ;;  %v1399_v22 = vpop.f32.mrf.mxu3  ;;  %3026 = vmatmul.bf16.vlgmr.msrb.gmra.mxu0 %v10966_v32  ;;  %3040 = vmatmul.bf16.vlgmr.msrb.gmra.mxu1 %v10968_v54  ;;  %v7378_v50 = vld [vmem:[#allocation9 + $0xd90] sm:$0xf0]  ;;  %v7541_v1 = vor.u32 %v9775_v0, %v7538_v2  ;;  %v7669_v16 = vor.u32 %v9807_v14, %v7666_v42  ;;  %v9803_v8 = vld [vmem:[#allocation9 + $0xfa4] sm:$0xf] }
 0x161   : > { %v1386_v17 = vadd.f32 %v1385_v12, %v1276_v63  ;;  %v1400_v39 = vadd.f32 %v1399_v22, %v1277_v36  ;;  %3130 = vmatpush.bf16.msrb.mxu0 %v7301_v53  ;;  %3108 = vmatpush.bf16.msra.mxu2 %v6949_v5  ;;  %v9707_v63 = vld [vmem:[#allocation9 + $0xca4] sm:$0xf]  ;;  %v7250_v5 = vld [vmem:[#allocation9 + $0xc90] sm:$0xf0]  ;;  %v7381_v38 = vor.u32 %v9735_v11, %v7378_v50 }
 0x162   : > { %3144 = vmatpush.bf16.msrb.mxu1 %v7429_v23  ;;  %3122 = vmatpush.bf16.msra.mxu3 %v7077_v40  ;;  %v9739_v36 = vld [vmem:[#allocation9 + $0xda4] sm:$0xf]  ;;  %v7269_v21 = vor.u32 %v9707_v63, %v7266_v6  ;;  %v7522_v41 = vld [vmem:[#allocation9 + $0xeb0] sm:$0xf0] }
 0x163   : > { %v1416_v57 = vmax.f32 %v1386_v17, 0.0  ;;  %v1417_v15 = vmax.f32 %v1400_v39, 0.0  ;;  %v7397_v53 = vor.u32 %v9739_v36, %v7394_v25  ;;  %v9703_v23 = vld [vmem:[#allocation9 + $0xc84] sm:$0xf]  ;;  %v7650_v17 = vld [vmem:[#allocation9 + $0xfb0] sm:$0xf0] }
 0x164   : > { %v7253_v12 = vor.u32 %v9703_v23, %v7250_v5  ;;  %v9771_v40 = vld [vmem:[#allocation9 + $0xea4] sm:$0xf]  ;;  %v7234_v31 = vld [vmem:[#allocation9 + $0xc70] sm:$0xf0] }
 0x165   : > { %v10972_v33 = vpack.c.bf16 %v1416_v57, %v1408_v51  ;;  %v10974_v48 = vpack.c.bf16 %v1417_v15, %v1409_v7  ;;  %3131 = vmatpush.bf16.msrb.mxu0 %v7285_v18  ;;  %3109 = vmatpush.bf16.msra.mxu2 %v6933_v59  ;;  %v9699_v22 = vld [vmem:[#allocation9 + $0xc64] sm:$0xf]  ;;  %v7362_v35 = vld [vmem:[#allocation9 + $0xd70] sm:$0xf0]  ;;  %v7525_v39 = vor.u32 %v9771_v40, %v7522_v41 }
 0x166   : > { %3145 = vmatpush.bf16.msrb.mxu1 %v7413_v58  ;;  %3123 = vmatpush.bf16.msra.mxu3 %v7061_v28  ;;  %v7653_v18 = vor.u32 %v9803_v8, %v7650_v17  ;;  %v7506_v46 = vld [vmem:[#allocation9 + $0xe90] sm:$0xf0]  ;;  %v7237_v47 = vor.u32 %v9699_v22, %v7234_v31  ;;  %v7365_v51 = vor.u32 %v9731_v34, %v7362_v35  ;;  %v9799_v57 = vld [vmem:[#allocation9 + $0xf84] sm:$0xf]  ;;  %v6792_v22 = vld [vmem:[#allocation9 + $0x8e8] sm:$0xf] }
 0x167   : > { %3054 = vmatmul.bf16.vlgmr.msrb.gmra.mxu2 %v10972_v33  ;;  %3068 = vmatmul.bf16.vlgmr.msrb.gmra.mxu3 %v10974_v48  ;;  %v7634_v58 = vld [vmem:[#allocation9 + $0xf90] sm:$0xf0]  ;;  %v9695_v59 = vld [vmem:[#allocation9 + $0xc44] sm:$0xf]  ;;  %v7509_v15 = vor.u32 %v9767_v45, %v7506_v46  ;;  %v9590_v34 = vld [vmem:[#allocation9 + $0x8f4] sm:$0xf0] }
 0x168   : > { %v7218_v63 = vld [vmem:[#allocation9 + $0xc50] sm:$0xf0]  ;;  %v9727_v6 = vld [vmem:[#allocation9 + $0xd44] sm:$0xf]  ;;  %v7637_v28 = vor.u32 %v9799_v57, %v7634_v58  ;;  %v6920_v35 = vld [vmem:[#allocation9 + $0x9e8] sm:$0xf] }
 0x169   : > { %3158 = vmatpush.bf16.msrb.mxu2 %v7557_v43  ;;  %3132 = vmatpush.bf16.msrb.mxu0 %v7269_v21  ;;  %v7346_v7 = vld [vmem:[#allocation9 + $0xd50] sm:$0xf0]  ;;  %v9763_v36 = vld [vmem:[#allocation9 + $0xe64] sm:$0xf]  ;;  %v7221_v43 = vor.u32 %v9695_v59, %v7218_v63  ;;  %v6793_v59 = vor.u32 %v9590_v34, %v6792_v22  ;;  %v7160_v34 = vld [vmem:[#allocation9 + $0xbc8] sm:$0xf] }
 0x16a   : > { %3172 = vmatpush.bf16.msrb.mxu3 %v7685_v10  ;;  %3146 = vmatpush.bf16.msrb.mxu1 %v7397_v53  ;;  %v7490_v25 = vld [vmem:[#allocation9 + $0xe70] sm:$0xf0]  ;;  %v7349_v10 = vor.u32 %v9727_v6, %v7346_v7  ;;  %v9795_v21 = vld [vmem:[#allocation9 + $0xf64] sm:$0xf]  ;;  %v6776_v6 = vld [vmem:[#allocation9 + $0x8c8] sm:$0xf] }
 0x16b   : > { %v7618_v0 = vld [vmem:[#allocation9 + $0xf70] sm:$0xf0]  ;;  %v9691_v2 = vld [vmem:[#allocation9 + $0xc24] sm:$0xf]  ;;  %v7493_v23 = vor.u32 %v9763_v36, %v7490_v25  ;;  %v9618_v36 = vld [vmem:[#allocation9 + $0x9d4] sm:$0xf0] }
 0x16c   : > { %v7202_v14 = vld [vmem:[#allocation9 + $0xc30] sm:$0xf0]  ;;  %v9723_v53 = vld [vmem:[#allocation9 + $0xd24] sm:$0xf]  ;;  %v7621_v5 = vor.u32 %v9795_v21, %v7618_v0 }
 0x16d   : > { %3159 = vmatpush.bf16.msrb.mxu2 %v7541_v1  ;;  %3133 = vmatpush.bf16.msrb.mxu0 %v7253_v12  ;;  %v7330_v42 = vld [vmem:[#allocation9 + $0xd30] sm:$0xf0]  ;;  %v9759_v11 = vld [vmem:[#allocation9 + $0xe44] sm:$0xf] }
 0x16e   : > { %3173 = vmatpush.bf16.msrb.mxu3 %v7669_v16  ;;  %3147 = vmatpush.bf16.msrb.mxu1 %v7381_v38  ;;  %v7474_v50 = vld [vmem:[#allocation9 + $0xe50] sm:$0xf0]  ;;  %v9791_v1 = vld [vmem:[#allocation9 + $0xf44] sm:$0xf]  ;;  %v7205_v16 = vor.u32 %v9691_v2, %v7202_v14  ;;  %v7333_v12 = vor.u32 %v9723_v53, %v7330_v42  ;;  %v7048_v2 = vld [vmem:[#allocation9 + $0xae8] sm:$0xf] }
 0x16f   : > { %v7602_v40 = vld [vmem:[#allocation9 + $0xf50] sm:$0xf0]  ;;  %v9687_v41 = vld [vmem:[#allocation9 + $0xc04] sm:$0xf]  ;;  %v7477_v31 = vor.u32 %v9759_v11, %v7474_v50  ;;  %v9654_v14 = vld [vmem:[#allocation9 + $0xaf4] sm:$0xf0] }
 0x170   : > { %3082 = vmatmul.bf16.vlgmr.msra.gmra.mxu0 %v10950_v4  ;;  %3096 = vmatmul.bf16.vlgmr.msra.gmra.mxu1 %v10952_v30  ;;  %v7186_v38 = vld [vmem:[#allocation9 + $0xc10] sm:$0xf0]  ;;  %v9719_v8 = vld [vmem:[#allocation9 + $0xd04] sm:$0xf]  ;;  %v6760_v11 = vld [vmem:[#allocation9 + $0x8a8] sm:$0xf] }
 0x171   : > { %3160 = vmatpush.bf16.msrb.mxu2 %v7525_v39  ;;  %3134 = vmatpush.bf16.msrb.mxu0 %v7237_v47  ;;  %v7314_v17 = vld [vmem:[#allocation9 + $0xd10] sm:$0xf0]  ;;  %v9622_v39 = vld [vmem:[#allocation9 + $0x9f4] sm:$0xf0]  ;;  %v9755_v45 = vld [vmem:[#allocation9 + $0xe24] sm:$0xf]  ;;  %v7189_v47 = vor.u32 %v9687_v41, %v7186_v38  ;;  %v7049_v41 = vor.u32 %v9654_v14, %v7048_v2 }
 0x172   : > { %3174 = vmatpush.bf16.msrb.mxu3 %v7653_v18  ;;  %3148 = vmatpush.bf16.msrb.mxu1 %v7365_v51  ;;  %v7605_v18 = vor.u32 %v9791_v1, %v7602_v40  ;;  %v7458_v46 = vld [vmem:[#allocation9 + $0xe30] sm:$0xf0]  ;;  %v7317_v51 = vor.u32 %v9719_v8, %v7314_v17  ;;  %v9787_v57 = vld [vmem:[#allocation9 + $0xf24] sm:$0xf]  ;;  %v6921_v63 = vor.u32 %v9622_v39, %v6920_v35  ;;  %v9582_v1 = vld [vmem:[#allocation9 + $0x8b4] sm:$0xf0] }
 0x173   : > { %v7586_v58 = vld [vmem:[#allocation9 + $0xf30] sm:$0xf0]  ;;  %v7461_v7 = vor.u32 %v9755_v45, %v7458_v46  ;;  %v9783_v21 = vld [vmem:[#allocation9 + $0xf04] sm:$0xf]  ;;  %v7032_v8 = vld [vmem:[#allocation9 + $0xac8] sm:$0xf]  ;;  %v6761_v22 = vor.u32 %v9582_v1, %v6760_v11 }
 0x174   : > { %v7589_v25 = vor.u32 %v9787_v57, %v7586_v58  ;;  %v7570_v0 = vld [vmem:[#allocation9 + $0xf10] sm:$0xf0]  ;;  %v9650_v17 = vld [vmem:[#allocation9 + $0xad4] sm:$0xf0]  ;;  %v6744_v39 = vld [vmem:[#allocation9 + $0x888] sm:$0xf] }
 0x175   : > { %3161 = vmatpush.bf16.msrb.mxu2 %v7509_v15  ;;  %3135 = vmatpush.bf16.msrb.mxu0 %v7221_v43  ;;  %v9586_v15 = vld [vmem:[#allocation9 + $0x8d4] sm:$0xf0]  ;;  %v9751_v43 = vld [vmem:[#allocation9 + $0xe04] sm:$0xf]  ;;  %v7573_v40 = vor.u32 %v9783_v21, %v7570_v0  ;;  %v6872_v45 = vld [vmem:[#allocation9 + $0x988] sm:$0xf] }
 0x176   : > { %3175 = vmatpush.bf16.msrb.mxu3 %v7637_v28  ;;  %3149 = vmatpush.bf16.msrb.mxu1 %v7349_v10  ;;  %v6904_v28 = vld [vmem:[#allocation9 + $0x9c8] sm:$0xf]  ;;  %v7442_v10 = vld [vmem:[#allocation9 + $0xe10] sm:$0xf0]  ;;  %v6777_v53 = vor.u32 %v9586_v15, %v6776_v6  ;;  %v9682_v35 = vld [vmem:[#allocation9 + $0xbd4] sm:$0xf0] }
 0x177   : > { %3110 = vmatmul.bf16.vlgmr.msra.gmra.mxu2 %v10956_v49  ;;  %3124 = vmatmul.bf16.vlgmr.msra.gmra.mxu3 %v10958_v37  ;;  %v6905_v42 = vor.u32 %v9618_v36, %v6904_v28  ;;  %v7445_v50 = vor.u32 %v9751_v43, %v7442_v10  ;;  %v9610_v46 = vld [vmem:[#allocation9 + $0x994] sm:$0xf0]  ;;  %v7016_v57 = vld [vmem:[#allocation9 + $0xaa8] sm:$0xf] }
 0x178   : > { %v9646_v58 = vld [vmem:[#allocation9 + $0xab4] sm:$0xf0]  ;;  %v7144_v6 = vld [vmem:[#allocation9 + $0xba8] sm:$0xf] }
 0x179   : > { %3162 = vmatpush.bf16.msrb.mxu2 %v7493_v23  ;;  %3136 = vmatpush.bf16.msrb.mxu0 %v7205_v16  ;;  %v7176_v23 = vld [vmem:[#allocation9 + $0xbe8] sm:$0xf]  ;;  %v9574_v28 = vld [vmem:[#allocation9 + $0x874] sm:$0xf0]  ;;  %v7017_v43 = vor.u32 %v9646_v58, %v7016_v57 }
 0x17a   : > { %3176 = vmatpush.bf16.msrb.mxu3 %v7621_v5  ;;  %3150 = vmatpush.bf16.msrb.mxu1 %v7333_v12  ;;  %v9686_v5 = vld [vmem:[#allocation9 + $0xbf4] sm:$0xf0]  ;;  %v6888_v16 = vld [vmem:[#allocation9 + $0x9a8] sm:$0xf] }
 0x17b   : > { %v9614_v12 = vld [vmem:[#allocation9 + $0x9b4] sm:$0xf0]  ;;  %v7177_v38 = vor.u32 %v9686_v5, %v7176_v23  ;;  %v6728_v15 = vld [vmem:[#allocation9 + $0x868] sm:$0xf] }
 0x17c   : > { %v6856_v36 = vld [vmem:[#allocation9 + $0x968] sm:$0xf]  ;;  %v9642_v0 = vld [vmem:[#allocation9 + $0xa94] sm:$0xf0]  ;;  %v6729_v2 = vor.u32 %v9574_v28, %v6728_v15 }
 0x17d   : > { %3163 = vmatpush.bf16.msrb.mxu2 %v7477_v31  ;;  %3137 = vmatpush.bf16.msrb.mxu0 %v7189_v47  ;;  %v6889_v31 = vor.u32 %v9614_v12, %v6888_v16  ;;  %v7033_v47 = vor.u32 %v9650_v17, %v7032_v8  ;;  %v7000_v21 = vld [vmem:[#allocation9 + $0xa88] sm:$0xf]  ;;  %v9570_v5 = vld [vmem:[#allocation9 + $0x854] sm:$0xf0] }
 0x17e   : > { %3177 = vmatpush.bf16.msrb.mxu3 %v7605_v18  ;;  %3151 = vmatpush.bf16.msrb.mxu1 %v7317_v51  ;;  %v9578_v18 = vld [vmem:[#allocation9 + $0x894] sm:$0xf0]  ;;  %v7161_v51 = vor.u32 %v9682_v35, %v7160_v34  ;;  %v6712_v23 = vld [vmem:[#allocation9 + $0x848] sm:$0xf]  ;;  %v7001_v1 = vor.u32 %v9642_v0, %v7000_v21 }
 0x17f   : > { %v6840_v11 = vld [vmem:[#allocation9 + $0x948] sm:$0xf]  ;;  %v9670_v17 = vld [vmem:[#allocation9 + $0xb74] sm:$0xf0] }
 0x180   : > { %3138 = vmatmul.bf16.vlgmr.msrb.gmra.mxu0 %v10966_v32  ;;  %v6984_v12 = vld [vmem:[#allocation9 + $0xa68] sm:$0xf]  ;;  %v9598_v35 = vld [vmem:[#allocation9 + $0x934] sm:$0xf0] }
 0x181   : > { %3186 = vmatpush.bf16.msra.mxu0 %v6793_v59  ;;  %3164 = vmatpush.bf16.msrb.mxu2 %v7461_v7  ;;  %v6745_v59 = vor.u32 %v9578_v18, %v6744_v39  ;;  %v9678_v7 = vld [vmem:[#allocation9 + $0xbb4] sm:$0xf0]  ;;  %v7112_v8 = vld [vmem:[#allocation9 + $0xb68] sm:$0xf] }
 0x182   : > { %3200 = vmatpush.bf16.msra.mxu1 %v6921_v63  ;;  %3178 = vmatpush.bf16.msrb.mxu3 %v7589_v25  ;;  %v6873_v63 = vor.u32 %v9610_v46, %v6872_v45  ;;  %v9606_v25 = vld [vmem:[#allocation9 + $0x974] sm:$0xf0]  ;;  %v7145_v10 = vor.u32 %v9678_v7, %v7144_v6  ;;  %v6824_v34 = vld [vmem:[#allocation9 + $0x928] sm:$0xf]  ;;  %v7113_v18 = vor.u32 %v9670_v17, %v7112_v8 }
 0x183   : > { %3152 = vmatmul.bf16.vlgmr.msrb.gmra.mxu1 %v10968_v54  ;;  %v6857_v14 = vor.u32 %v9606_v25, %v6856_v36  ;;  %v6968_v45 = vld [vmem:[#allocation9 + $0xa48] sm:$0xf]  ;;  %v9634_v46 = vld [vmem:[#allocation9 + $0xa54] sm:$0xf0]  ;;  %v6825_v57 = vor.u32 %v9598_v35, %v6824_v34 }
 0x184   : > { %v9666_v58 = vld [vmem:[#allocation9 + $0xb54] sm:$0xf0]  ;;  %v6808_v6 = vld [vmem:[#allocation9 + $0x908] sm:$0xf]  ;;  %v6969_v28 = vor.u32 %v9634_v46, %v6968_v45 }
 0x185   : > { %3187 = vmatpush.bf16.msra.mxu0 %v6777_v53  ;;  %3165 = vmatpush.bf16.msrb.mxu2 %v7445_v50  ;;  %v7128_v53 = vld [vmem:[#allocation9 + $0xb88] sm:$0xf]  ;;  %v9602_v50 = vld [vmem:[#allocation9 + $0x954] sm:$0xf0] }
 0x186   : > { %3201 = vmatpush.bf16.msra.mxu1 %v6905_v42  ;;  %3179 = vmatpush.bf16.msrb.mxu3 %v7573_v40  ;;  %v9674_v42 = vld [vmem:[#allocation9 + $0xb94] sm:$0xf0]  ;;  %v7304_v15 = vld [vmem:[#allocation9 + $0xce8] sm:$0xf] }
 0x187   : > { %v7129_v16 = vor.u32 %v9674_v42, %v7128_v53  ;;  %v9638_v40 = vld [vmem:[#allocation9 + $0xa74] sm:$0xf0]  ;;  %v7432_v25 = vld [vmem:[#allocation9 + $0xde8] sm:$0xf] }
 0x188   : > { %3166 = vmatmul.bf16.vlgmr.msrb.gmra.mxu2 %v10972_v33  ;;  %v6985_v39 = vor.u32 %v9638_v40, %v6984_v12  ;;  %v9594_v7 = vld [vmem:[#allocation9 + $0x914] sm:$0xf0]  ;;  %v6952_v21 = vld [vmem:[#allocation9 + $0xa28] sm:$0xf] }
 0x189   : > { %3214 = vmatpush.bf16.msra.mxu2 %v7049_v41  ;;  %3188 = vmatpush.bf16.msra.mxu0 %v6761_v22  ;;  %v6713_v41 = vor.u32 %v9570_v5, %v6712_v23  ;;  %v6696_v22 = vld [vmem:[#allocation9 + $0x828] sm:$0xf]  ;;  %v9718_v36 = vld [vmem:[#allocation9 + $0xcf4] sm:$0xf0] }
 0x18a   : > { %3228 = vmatpush.bf16.msra.mxu3 %v7177_v38  ;;  %3202 = vmatpush.bf16.msra.mxu1 %v6889_v31  ;;  %v6841_v38 = vor.u32 %v9602_v50, %v6840_v11  ;;  %v9566_v31 = vld [vmem:[#allocation9 + $0x834] sm:$0xf0]  ;;  %v7080_v53 = vld [vmem:[#allocation9 + $0xb28] sm:$0xf]  ;;  %v7305_v23 = vor.u32 %v9718_v36, %v7304_v15 }
 0x18b   : > { %3180 = vmatmul.bf16.vlgmr.msrb.gmra.mxu3 %v10974_v48  ;;  %v9630_v0 = vld [vmem:[#allocation9 + $0xa34] sm:$0xf0]  ;;  %v7288_v11 = vld [vmem:[#allocation9 + $0xcc8] sm:$0xf] }
 0x18c   : > { %v9662_v42 = vld [vmem:[#allocation9 + $0xb34] sm:$0xf0]  ;;  %v6953_v50 = vor.u32 %v9630_v0, %v6952_v21  ;;  %v7064_v8 = vld [vmem:[#allocation9 + $0xb08] sm:$0xf] }
 0x18d   : > { %3215 = vmatpush.bf16.msra.mxu2 %v7033_v47  ;;  %3189 = vmatpush.bf16.msra.mxu0 %v6745_v59  ;;  %v7096_v47 = vld [vmem:[#allocation9 + $0xb48] sm:$0xf]  ;;  %v9746_v12 = vld [vmem:[#allocation9 + $0xdd4] sm:$0xf0]  ;;  %v7081_v40 = vor.u32 %v9662_v42, %v7080_v53 }
 0x18e   : > { %3229 = vmatpush.bf16.msra.mxu3 %v7161_v51  ;;  %3203 = vmatpush.bf16.msra.mxu1 %v6873_v63  ;;  %v6697_v51 = vor.u32 %v9566_v31, %v6696_v22  ;;  %v6680_v59 = vld [vmem:[#allocation9 + $0x808] sm:$0xf]  ;;  %v9562_v63 = vld [vmem:[#allocation9 + $0x814] sm:$0xf0] }
 0x18f   : > { %v9658_v17 = vld [vmem:[#allocation9 + $0xb14] sm:$0xf0]  ;;  %v7560_v22 = vld [vmem:[#allocation9 + $0xee8] sm:$0xf] }
 0x190   : > { %v9782_v31 = vld [vmem:[#allocation9 + $0xef4] sm:$0xf0]  ;;  %v7272_v46 = vld [vmem:[#allocation9 + $0xca8] sm:$0xf] }
 0x191   : > { %3216 = vmatpush.bf16.msra.mxu2 %v7017_v43  ;;  %3190 = vmatpush.bf16.msra.mxu0 %v6729_v2  ;;  %v9750_v43 = vld [vmem:[#allocation9 + $0xdf4] sm:$0xf0]  ;;  %v6681_v2 = vor.u32 %v9562_v63, %v6680_v59  ;;  %v7384_v0 = vld [vmem:[#allocation9 + $0xd88] sm:$0xf] }
 0x192   : > { %3230 = vmatpush.bf16.msra.mxu3 %v7145_v10  ;;  %3204 = vmatpush.bf16.msra.mxu1 %v6857_v14  ;;  %v7097_v10 = vor.u32 %v9666_v58, %v7096_v47  ;;  %v6809_v14 = vor.u32 %v9594_v7, %v6808_v6  ;;  %v7433_v5 = vor.u32 %v9750_v43, %v7432_v25  ;;  %v9710_v47 = vld [vmem:[#allocation9 + $0xcb4] sm:$0xf0]  ;;  %v7400_v58 = vld [vmem:[#allocation9 + $0xda8] sm:$0xf] }
 0x193   : > { %v9742_v59 = vld [vmem:[#allocation9 + $0xdb4] sm:$0xf0]  ;;  %v7544_v6 = vld [vmem:[#allocation9 + $0xec8] sm:$0xf]  ;;  %v7273_v15 = vor.u32 %v9710_v47, %v7272_v46 }
 0x194   : > { %v9778_v7 = vld [vmem:[#allocation9 + $0xed4] sm:$0xf0]  ;;  %v7401_v25 = vor.u32 %v9742_v59, %v7400_v58  ;;  %v7256_v43 = vld [vmem:[#allocation9 + $0xc88] sm:$0xf] }
 0x195   : > { %3217 = vmatpush.bf16.msra.mxu2 %v7001_v1  ;;  %3191 = vmatpush.bf16.msra.mxu0 %v6713_v41  ;;  %v9714_v1 = vld [vmem:[#allocation9 + $0xcd4] sm:$0xf0]  ;;  %v6936_v41 = vld [vmem:[#allocation9 + $0xa08] sm:$0xf]  ;;  %v7545_v21 = vor.u32 %v9778_v7, %v7544_v6 }
 0x196   : > { %3231 = vmatpush.bf16.msra.mxu3 %v7129_v16  ;;  %3205 = vmatpush.bf16.msra.mxu1 %v6841_v38  ;;  %v7416_v16 = vld [vmem:[#allocation9 + $0xdc8] sm:$0xf]  ;;  %v9626_v38 = vld [vmem:[#allocation9 + $0xa14] sm:$0xf0]  ;;  %v7289_v34 = vor.u32 %v9714_v1, %v7288_v11 }
 0x197   : > { %v7417_v35 = vor.u32 %v9746_v12, %v7416_v16  ;;  %v6937_v45 = vor.u32 %v9626_v38, %v6936_v41  ;;  %v9810_v36 = vld [vmem:[#allocation9 + $0xfd4] sm:$0xf0]  ;;  %v7528_v53 = vld [vmem:[#allocation9 + $0xea8] sm:$0xf] }
 0x198   : > { %v9774_v42 = vld [vmem:[#allocation9 + $0xeb4] sm:$0xf0]  ;;  %v7240_v1 = vld [vmem:[#allocation9 + $0xc68] sm:$0xf] }
 0x199   : > { %3218 = vmatpush.bf16.msra.mxu2 %v6985_v39  ;;  %3192 = vmatpush.bf16.msra.mxu0 %v6697_v51  ;;  %v7688_v39 = vld [vmem:[#allocation9 + $0xfe8] sm:$0xf]  ;;  %v7065_v51 = vor.u32 %v9658_v17, %v7064_v8  ;;  %v9806_v11 = vld [vmem:[#allocation9 + $0xfb4] sm:$0xf0]  ;;  %v7529_v12 = vor.u32 %v9774_v42, %v7528_v53 }
 0x19a   : > { %3232 = vmatpush.bf16.msra.mxu3 %v7113_v18  ;;  %3206 = vmatpush.bf16.msra.mxu1 %v6825_v57  ;;  %v9814_v18 = vld [vmem:[#allocation9 + $0xff4] sm:$0xf0]  ;;  %v7561_v57 = vor.u32 %v9782_v31, %v7560_v22  ;;  %v7512_v8 = vld [vmem:[#allocation9 + $0xe88] sm:$0xf] }
 0x19b   : > { %v7689_v63 = vor.u32 %v9814_v18, %v7688_v39  ;;  %v9702_v16 = vld [vmem:[#allocation9 + $0xc74] sm:$0xf0]  ;;  %v7640_v31 = vld [vmem:[#allocation9 + $0xf88] sm:$0xf] }
 0x19c   : > { %v9734_v41 = vld [vmem:[#allocation9 + $0xd74] sm:$0xf0]  ;;  %v7241_v22 = vor.u32 %v9702_v16, %v7240_v1  ;;  %v7224_v39 = vld [vmem:[#allocation9 + $0xc48] sm:$0xf]  ;;  %v9588_v16 = vld [vmem:[#allocation9 + $0x8ec] sm:$0xf] }
 0x19d   : > { %3219 = vmatpush.bf16.msra.mxu2 %v6969_v28  ;;  %3193 = vmatpush.bf16.msra.mxu0 %v6681_v2  ;;  %v7672_v28 = vld [vmem:[#allocation9 + $0xfc8] sm:$0xf]  ;;  %v9738_v2 = vld [vmem:[#allocation9 + $0xd94] sm:$0xf0] }
 0x19e   : > { %3233 = vmatpush.bf16.msra.mxu3 %v7097_v10  ;;  %3207 = vmatpush.bf16.msra.mxu1 %v6809_v14  ;;  %v9706_v10 = vld [vmem:[#allocation9 + $0xc94] sm:$0xf0]  ;;  %v7673_v14 = vor.u32 %v9810_v36, %v7672_v28  ;;  %v7352_v46 = vld [vmem:[#allocation9 + $0xd48] sm:$0xf] }
 0x19f   : > { %v9770_v17 = vld [vmem:[#allocation9 + $0xe94] sm:$0xf0]  ;;  %v7192_v42 = vld [vmem:[#allocation9 + $0xc08] sm:$0xf] }
 0x1a0   : > { %3194 = vmatmul.bf16.vlgmr.msra.gmra.mxu0 %v10950_v4  ;;  %v9698_v18 = vld [vmem:[#allocation9 + $0xc54] sm:$0xf0] }
 0x1a1   : > { %3242 = vmatpush.bf16.msrb.mxu0 %v7305_v23  ;;  %3220 = vmatpush.bf16.msra.mxu2 %v6953_v50  ;;  %v7257_v23 = vor.u32 %v9706_v10, %v7256_v43  ;;  %v7385_v50 = vor.u32 %v9738_v2, %v7384_v0  ;;  %v9730_v47 = vld [vmem:[#allocation9 + $0xd54] sm:$0xf0]  ;;  %v7225_v59 = vor.u32 %v9698_v18, %v7224_v39  ;;  %v9584_v18 = vld [vmem:[#allocation9 + $0x8cc] sm:$0xf] }
 0x1a2   : > { %3256 = vmatpush.bf16.msrb.mxu1 %v7433_v5  ;;  %3234 = vmatpush.bf16.msra.mxu3 %v7081_v40  ;;  %v7656_v5 = vld [vmem:[#allocation9 + $0xfa8] sm:$0xf]  ;;  %v9766_v58 = vld [vmem:[#allocation9 + $0xe74] sm:$0xf0]  ;;  %v7353_v7 = vor.u32 %v9730_v47, %v7352_v46  ;;  %v6778_v47 = vld [vmem:[#allocation9 + $0x8d8] sm:$0xf0] }
 0x1a3   : > { %3208 = vmatmul.bf16.vlgmr.msra.gmra.mxu1 %v10952_v30  ;;  %v7368_v40 = vld [vmem:[#allocation9 + $0xd68] sm:$0xf]  ;;  %v7657_v38 = vor.u32 %v9806_v11, %v7656_v5  ;;  %v9798_v6 = vld [vmem:[#allocation9 + $0xf74] sm:$0xf0] }
 0x1a4   : > { %v9694_v28 = vld [vmem:[#allocation9 + $0xc34] sm:$0xf0]  ;;  %v7320_v11 = vld [vmem:[#allocation9 + $0xd08] sm:$0xf] }
 0x1a5   : > { %3243 = vmatpush.bf16.msrb.mxu0 %v7289_v34  ;;  %3221 = vmatpush.bf16.msra.mxu2 %v6937_v45  ;;  %v9802_v34 = vld [vmem:[#allocation9 + $0xf94] sm:$0xf0]  ;;  %v7513_v45 = vor.u32 %v9770_v17, %v7512_v8  ;;  %v7464_v8 = vld [vmem:[#allocation9 + $0xe28] sm:$0xf] }
 0x1a6   : > { %3257 = vmatpush.bf16.msrb.mxu1 %v7417_v35  ;;  %3235 = vmatpush.bf16.msra.mxu3 %v7065_v51  ;;  %v7369_v35 = vor.u32 %v9734_v41, %v7368_v40  ;;  %v7641_v51 = vor.u32 %v9802_v34, %v7640_v31  ;;  %v9726_v43 = vld [vmem:[#allocation9 + $0xd34] sm:$0xf0]  ;;  %v9620_v40 = vld [vmem:[#allocation9 + $0x9ec] sm:$0xf]  ;;  %v7592_v31 = vld [vmem:[#allocation9 + $0xf28] sm:$0xf] }
 0x1a7   : > { %v9762_v0 = vld [vmem:[#allocation9 + $0xe54] sm:$0xf0] }
 0x1a8   : > { %3222 = vmatmul.bf16.vlgmr.msra.gmra.mxu2 %v10956_v49  ;;  %v9794_v53 = vld [vmem:[#allocation9 + $0xf54] sm:$0xf0] }
 0x1a9   : > { %3270 = vmatpush.bf16.msrb.mxu2 %v7561_v57  ;;  %3244 = vmatpush.bf16.msrb.mxu0 %v7273_v15  ;;  %v7496_v57 = vld [vmem:[#allocation9 + $0xe68] sm:$0xf]  ;;  %v9690_v5 = vld [vmem:[#allocation9 + $0xc14] sm:$0xf0] }
 0x1aa   : > { %3284 = vmatpush.bf16.msrb.mxu3 %v7689_v63  ;;  %3258 = vmatpush.bf16.msrb.mxu1 %v7401_v25  ;;  %v7624_v63 = vld [vmem:[#allocation9 + $0xf68] sm:$0xf]  ;;  %v7497_v36 = vor.u32 %v9766_v58, %v7496_v57  ;;  %v9758_v17 = vld [vmem:[#allocation9 + $0xe34] sm:$0xf0]  ;;  %v6906_v57 = vld [vmem:[#allocation9 + $0x9d8] sm:$0xf0] }
 0x1ab   : > { %3236 = vmatmul.bf16.vlgmr.msra.gmra.mxu3 %v10958_v37  ;;  %v7208_v15 = vld [vmem:[#allocation9 + $0xc28] sm:$0xf]  ;;  %v7625_v10 = vor.u32 %v9798_v6, %v7624_v63  ;;  %v9790_v34 = vld [vmem:[#allocation9 + $0xf34] sm:$0xf0]  ;;  %v7465_v46 = vor.u32 %v9758_v17, %v7464_v8 }
 0x1ac   : > { %v7336_v25 = vld [vmem:[#allocation9 + $0xd28] sm:$0xf]  ;;  %v7209_v2 = vor.u32 %v9694_v28, %v7208_v15  ;;  %v7593_v58 = vor.u32 %v9790_v34, %v7592_v31  ;;  %v9754_v63 = vld [vmem:[#allocation9 + $0xe14] sm:$0xf0]  ;;  %v9652_v15 = vld [vmem:[#allocation9 + $0xaec] sm:$0xf] }
 0x1ad   : > { %3271 = vmatpush.bf16.msrb.mxu2 %v7545_v21  ;;  %3245 = vmatpush.bf16.msrb.mxu0 %v7257_v23  ;;  %v7480_v21 = vld [vmem:[#allocation9 + $0xe48] sm:$0xf]  ;;  %v7337_v23 = vor.u32 %v9726_v43, %v7336_v25  ;;  %v7050_v28 = vld [vmem:[#allocation9 + $0xaf8] sm:$0xf0]  ;;  %v9684_v25 = vld [vmem:[#allocation9 + $0xbec] sm:$0xf] }
 0x1ae   : > { %3285 = vmatpush.bf16.msrb.mxu3 %v7673_v14  ;;  %3259 = vmatpush.bf16.msrb.mxu1 %v7385_v50  ;;  %v7608_v14 = vld [vmem:[#allocation9 + $0xf48] sm:$0xf]  ;;  %v9722_v50 = vld [vmem:[#allocation9 + $0xd14] sm:$0xf0]  ;;  %v7481_v1 = vor.u32 %v9762_v0, %v7480_v21  ;;  %v7178_v43 = vld [vmem:[#allocation9 + $0xbf8] sm:$0xf0] }
 0x1af   : > { %v7609_v41 = vor.u32 %v9794_v53, %v7608_v14  ;;  %v7576_v6 = vld [vmem:[#allocation9 + $0xf08] sm:$0xf]  ;;  %v9580_v0 = vld [vmem:[#allocation9 + $0x8ac] sm:$0xf]  ;;  %v7053_v53 = vor.u32 %v9652_v15, %v7050_v28  ;;  %v6874_v31 = vld [vmem:[#allocation9 + $0x998] sm:$0xf0] }
 0x1b0   : > { %v9640_v28 = vld [vmem:[#allocation9 + $0xa8c] sm:$0xf] }
 0x1b1   : > { %3272 = vmatpush.bf16.msrb.mxu2 %v7529_v12  ;;  %3246 = vmatpush.bf16.msrb.mxu0 %v7241_v22  ;;  %v6794_v12 = vld [vmem:[#allocation9 + $0x8f8] sm:$0xf0]  ;;  %v7193_v22 = vor.u32 %v9690_v5, %v7192_v42  ;;  %v9612_v42 = vld [vmem:[#allocation9 + $0x9ac] sm:$0xf]  ;;  %v7181_v5 = vor.u32 %v9684_v25, %v7178_v43 }
 0x1b2   : > { %3286 = vmatpush.bf16.msrb.mxu3 %v7657_v38  ;;  %3260 = vmatpush.bf16.msrb.mxu1 %v7369_v35  ;;  %v6922_v38 = vld [vmem:[#allocation9 + $0x9f8] sm:$0xf0]  ;;  %v7321_v35 = vor.u32 %v9722_v50, %v7320_v11  ;;  %v6797_v39 = vor.u32 %v9588_v16, %v6794_v12  ;;  %v9648_v11 = vld [vmem:[#allocation9 + $0xacc] sm:$0xf] }
 0x1b3   : > { %v7034_v50 = vld [vmem:[#allocation9 + $0xad8] sm:$0xf0]  ;;  %v9680_v16 = vld [vmem:[#allocation9 + $0xbcc] sm:$0xf] }
 0x1b4   : > { %v7162_v12 = vld [vmem:[#allocation9 + $0xbd8] sm:$0xf0]  ;;  %v7037_v17 = vor.u32 %v9648_v11, %v7034_v50  ;;  %v9672_v43 = vld [vmem:[#allocation9 + $0xb8c] sm:$0xf] }
 0x1b5   : > { %3273 = vmatpush.bf16.msrb.mxu2 %v7513_v45  ;;  %3247 = vmatpush.bf16.msrb.mxu0 %v7225_v59  ;;  %v6925_v45 = vor.u32 %v9620_v40, %v6922_v38  ;;  %v7448_v59 = vld [vmem:[#allocation9 + $0xe08] sm:$0xf]  ;;  %v6746_v38 = vld [vmem:[#allocation9 + $0x898] sm:$0xf0] }
 0x1b6   : > { %3287 = vmatpush.bf16.msrb.mxu3 %v7641_v51  ;;  %3261 = vmatpush.bf16.msrb.mxu1 %v7353_v7  ;;  %v9616_v51 = vld [vmem:[#allocation9 + $0x9cc] sm:$0xf]  ;;  %v9786_v7 = vld [vmem:[#allocation9 + $0xf14] sm:$0xf0]  ;;  %v7449_v21 = vor.u32 %v9754_v63, %v7448_v59  ;;  %v6730_v59 = vld [vmem:[#allocation9 + $0x878] sm:$0xf0] }
 0x1b7   : > { %v7577_v14 = vor.u32 %v9786_v7, %v7576_v6  ;;  %v9604_v6 = vld [vmem:[#allocation9 + $0x96c] sm:$0xf]  ;;  %v6858_v7 = vld [vmem:[#allocation9 + $0x978] sm:$0xf0] }
 0x1b8   : > { %v6986_v11 = vld [vmem:[#allocation9 + $0xa78] sm:$0xf0] }
 0x1b9   : > { %3274 = vmatpush.bf16.msrb.mxu2 %v7497_v36  ;;  %3248 = vmatpush.bf16.msrb.mxu0 %v7209_v2  ;;  %v6781_v36 = vor.u32 %v9584_v18, %v6778_v47  ;;  %v6762_v2 = vld [vmem:[#allocation9 + $0x8b8] sm:$0xf0]  ;;  %v9676_v47 = vld [vmem:[#allocation9 + $0xbac] sm:$0xf] }
 0x1ba   : > { %3288 = vmatpush.bf16.msrb.mxu3 %v7625_v10  ;;  %3262 = vmatpush.bf16.msrb.mxu1 %v7337_v23  ;;  %v6909_v10 = vor.u32 %v9616_v51, %v6906_v57  ;;  %v6890_v23 = vld [vmem:[#allocation9 + $0x9b8] sm:$0xf0] }
 0x1bb   : > { %v6893_v40 = vor.u32 %v9612_v42, %v6890_v23  ;;  %v7018_v18 = vld [vmem:[#allocation9 + $0xab8] sm:$0xf0] }
 0x1bc   : > { %v2971_v8 = vpop.f32.mrf.mxu0  ;;  %v7146_v51 = vld [vmem:[#allocation9 + $0xbb8] sm:$0xf0] }
 0x1bd   : > { %3275 = vmatpush.bf16.msrb.mxu2 %v7481_v1  ;;  %3249 = vmatpush.bf16.msrb.mxu0 %v7193_v22  ;;  %v6765_v1 = vor.u32 %v9580_v0, %v6762_v2  ;;  %v9608_v22 = vld [vmem:[#allocation9 + $0x98c] sm:$0xf]  ;;  %v2985_v34 = vpop.f32.mrf.mxu1  ;;  %v7149_v15 = vor.u32 %v9676_v47, %v7146_v51  ;;  %v6714_v2 = vld [vmem:[#allocation9 + $0x858] sm:$0xf0] }
 0x1be   : > { %3289 = vmatpush.bf16.msrb.mxu3 %v7609_v41  ;;  %3263 = vmatpush.bf16.msrb.mxu1 %v7321_v35  ;;  %v9576_v41 = vld [vmem:[#allocation9 + $0x88c] sm:$0xf]  ;;  %v7165_v35 = vor.u32 %v9680_v16, %v7162_v12  ;;  %v6877_v57 = vor.u32 %v9608_v22, %v6874_v31  ;;  %v6842_v42 = vld [vmem:[#allocation9 + $0x958] sm:$0xf0] }
 0x1bf   : > { %v9568_v0 = vld [vmem:[#allocation9 + $0x84c] sm:$0xf]  ;;  %v7114_v16 = vld [vmem:[#allocation9 + $0xb78] sm:$0xf0] }
 0x1c0   : > { %3250 = vmatmul.bf16.vlgmr.msrb.gmra.mxu0 %v10966_v32  ;;  %v6717_v50 = vor.u32 %v9568_v0, %v6714_v2  ;;  %v7098_v47 = vld [vmem:[#allocation9 + $0xb58] sm:$0xf0]  ;;  %v9560_v51 = vld [vmem:[#allocation9 + $0x80c] sm:$0xf] }
 0x1c1   : > { %3298 = vmatpush.bf16.msra.mxu0 %v6797_v39  ;;  %3276 = vmatpush.bf16.msrb.mxu2 %v7465_v46  ;;  %v9644_v39 = vld [vmem:[#allocation9 + $0xaac] sm:$0xf]  ;;  %v6749_v46 = vor.u32 %v9576_v41, %v6746_v38  ;;  %v6698_v41 = vld [vmem:[#allocation9 + $0x838] sm:$0xf0] }
 0x1c2   : > { %3312 = vmatpush.bf16.msra.mxu1 %v6925_v45  ;;  %3290 = vmatpush.bf16.msrb.mxu3 %v7593_v58  ;;  %v2986_v45 = vadd.f32 %v2985_v34, %v2971_v8  ;;  %v9572_v58 = vld [vmem:[#allocation9 + $0x86c] sm:$0xf]  ;;  %v7021_v63 = vor.u32 %v9644_v39, %v7018_v18 }
 0x1c3   : > { %3264 = vmatmul.bf16.vlgmr.msrb.gmra.mxu1 %v10968_v54  ;;  %v6733_v25 = vor.u32 %v9572_v58, %v6730_v59  ;;  %v9596_v8 = vld [vmem:[#allocation9 + $0x92c] sm:$0xf]  ;;  %v6682_v59 = vld [vmem:[#allocation9 + $0x818] sm:$0xf0] }
 0x1c4   : > { %v9632_v34 = vld [vmem:[#allocation9 + $0xa4c] sm:$0xf]  ;;  %v6685_v0 = vor.u32 %v9560_v51, %v6682_v59 }
 0x1c5   : > { %3299 = vmatpush.bf16.msra.mxu0 %v6781_v36  ;;  %3277 = vmatpush.bf16.msrb.mxu2 %v7449_v21  ;;  %v7002_v36 = vld [vmem:[#allocation9 + $0xa98] sm:$0xf0]  ;;  %v6861_v21 = vor.u32 %v9604_v6, %v6858_v7  ;;  %v9660_v2 = vld [vmem:[#allocation9 + $0xb2c] sm:$0xf] }
 0x1c6   : > { %3313 = vmatpush.bf16.msra.mxu1 %v6909_v10  ;;  %3291 = vmatpush.bf16.msrb.mxu3 %v7577_v14  ;;  %v7130_v10 = vld [vmem:[#allocation9 + $0xb98] sm:$0xf0]  ;;  %v7005_v14 = vor.u32 %v9640_v28, %v7002_v36  ;;  %v9716_v28 = vld [vmem:[#allocation9 + $0xcec] sm:$0xf] }
 0x1c7   : > { %v7133_v23 = vor.u32 %v9672_v43, %v7130_v10  ;;  %v6810_v6 = vld [vmem:[#allocation9 + $0x918] sm:$0xf0]  ;;  %v9628_v10 = vld [vmem:[#allocation9 + $0xa2c] sm:$0xf] }
 0x1c8   : > { %3278 = vmatmul.bf16.vlgmr.msrb.gmra.mxu2 %v10972_v33  ;;  %v7306_v36 = vld [vmem:[#allocation9 + $0xcf8] sm:$0xf0]  ;;  %v9708_v51 = vld [vmem:[#allocation9 + $0xcac] sm:$0xf] }
 0x1c9   : > { %3326 = vmatpush.bf16.msra.mxu2 %v7053_v53  ;;  %3300 = vmatpush.bf16.msra.mxu0 %v6765_v1  ;;  %v9600_v53 = vld [vmem:[#allocation9 + $0x94c] sm:$0xf] }
 0x1ca   : > { %3340 = vmatpush.bf16.msra.mxu3 %v7181_v5  ;;  %3314 = vmatpush.bf16.msra.mxu1 %v6893_v40  ;;  %v9636_v5 = vld [vmem:[#allocation9 + $0xa6c] sm:$0xf]  ;;  %v6845_v12 = vor.u32 %v9600_v53, %v6842_v42  ;;  %v7309_v42 = vor.u32 %v9716_v28, %v7306_v36  ;;  %v7546_v36 = vld [vmem:[#allocation9 + $0xed8] sm:$0xf0] }
 0x1cb   : > { %3292 = vmatmul.bf16.vlgmr.msrb.gmra.mxu3 %v10974_v48  ;;  %v9668_v1 = vld [vmem:[#allocation9 + $0xb6c] sm:$0xf]  ;;  %v6989_v38 = vor.u32 %v9636_v5, %v6986_v11  ;;  %v2999_v22 = vpop.f32.mrf.mxu2 }
 0x1cc   : > { %v9564_v40 = vld [vmem:[#allocation9 + $0x82c] sm:$0xf]  ;;  %v7117_v31 = vor.u32 %v9668_v1, %v7114_v16  ;;  %v3000_v39 = vadd.f32 %v2999_v22, %v2986_v45  ;;  %v7434_v45 = vld [vmem:[#allocation9 + $0xdf8] sm:$0xf0] }
 0x1cd   : > { %3327 = vmatpush.bf16.msra.mxu2 %v7037_v17  ;;  %3301 = vmatpush.bf16.msra.mxu0 %v6749_v46  ;;  %v6826_v17 = vld [vmem:[#allocation9 + $0x938] sm:$0xf0]  ;;  %v6701_v18 = vor.u32 %v9564_v40, %v6698_v41  ;;  %v9664_v46 = vld [vmem:[#allocation9 + $0xb4c] sm:$0xf] }
 0x1ce   : > { %3341 = vmatpush.bf16.msra.mxu3 %v7165_v35  ;;  %3315 = vmatpush.bf16.msra.mxu1 %v6877_v57  ;;  %v6970_v35 = vld [vmem:[#allocation9 + $0xa58] sm:$0xf0]  ;;  %v3013_v57 = vpop.f32.mrf.mxu3  ;;  %v6829_v58 = vor.u32 %v9596_v8, %v6826_v17  ;;  %v7101_v43 = vor.u32 %v9664_v46, %v7098_v47  ;;  %v9744_v1 = vld [vmem:[#allocation9 + $0xdcc] sm:$0xf]  ;;  %v10996_v8 = vpop.f32.mrf.mxu0 }
 0x1cf   : > { %v10994_v7 = vadd.f32 %v3013_v57, %v3000_v39  ;;  %v7418_v16 = vld [vmem:[#allocation9 + $0xdd8] sm:$0xf0]  ;;  %v9624_v40 = vld [vmem:[#allocation9 + $0xa0c] sm:$0xf] }
 0x1d0   : > { %v6938_v41 = vld [vmem:[#allocation9 + $0xa18] sm:$0xf0]  ;;  %v9780_v22 = vld [vmem:[#allocation9 + $0xeec] sm:$0xf]  ;;  %v7421_v46 = vor.u32 %v9744_v1, %v7418_v16 }
 0x1d1   : > { %3328 = vmatpush.bf16.msra.mxu2 %v7021_v63  ;;  %3302 = vmatpush.bf16.msra.mxu0 %v6733_v25  ;;  %v9592_v63 = vld [vmem:[#allocation9 + $0x90c] sm:$0xf]  ;;  %v7066_v17 = vld [vmem:[#allocation9 + $0xb18] sm:$0xf0]  ;;  %v6941_v47 = vor.u32 %v9624_v40, %v6938_v41 }
 0x1d2   : > { %3342 = vmatpush.bf16.msra.mxu3 %v7149_v15  ;;  %3316 = vmatpush.bf16.msra.mxu1 %v6861_v21  ;;  %v6973_v15 = vor.u32 %v9632_v34, %v6970_v35  ;;  %v9748_v25 = vld [vmem:[#allocation9 + $0xdec] sm:$0xf]  ;;  %v6954_v21 = vld [vmem:[#allocation9 + $0xa38] sm:$0xf0]  ;;  %v6813_v53 = vor.u32 %v9592_v63, %v6810_v6  ;;  %v10998_v34 = vpop.f32.mrf.mxu1 }
 0x1d3   : > { %v7437_v5 = vor.u32 %v9748_v25, %v7434_v45  ;;  %v6957_v11 = vor.u32 %v9628_v10, %v6954_v21  ;;  %v9812_v39 = vld [vmem:[#allocation9 + $0xfec] sm:$0xf]  ;;  %v7274_v57 = vld [vmem:[#allocation9 + $0xcb8] sm:$0xf0] }
 0x1d4   : > { %v9740_v63 = vld [vmem:[#allocation9 + $0xdac] sm:$0xf]  ;;  %v7402_v6 = vld [vmem:[#allocation9 + $0xdb8] sm:$0xf0]  ;;  %v7277_v25 = vor.u32 %v9708_v51, %v7274_v57 }
 0x1d5   : > { %3329 = vmatpush.bf16.msra.mxu2 %v7005_v14  ;;  %3303 = vmatpush.bf16.msra.mxu0 %v6717_v50  ;;  %v7082_v14 = vld [vmem:[#allocation9 + $0xb38] sm:$0xf0]  ;;  %v9776_v28 = vld [vmem:[#allocation9 + $0xecc] sm:$0xf]  ;;  %v7405_v10 = vor.u32 %v9740_v63, %v7402_v6 }
 0x1d6   : > { %3343 = vmatpush.bf16.msra.mxu3 %v7133_v23  ;;  %3317 = vmatpush.bf16.msra.mxu1 %v6845_v12  ;;  %v9712_v23 = vld [vmem:[#allocation9 + $0xccc] sm:$0xf]  ;;  %v7290_v50 = vld [vmem:[#allocation9 + $0xcd8] sm:$0xf0]  ;;  %v7085_v12 = vor.u32 %v9660_v2, %v7082_v14 }
 0x1d7   : > { %v7293_v35 = vor.u32 %v9712_v23, %v7290_v50  ;;  %v7674_v45 = vld [vmem:[#allocation9 + $0xfd8] sm:$0xf0]  ;;  %v9704_v21 = vld [vmem:[#allocation9 + $0xc8c] sm:$0xf] }
 0x1d8   : > { %v9736_v2 = vld [vmem:[#allocation9 + $0xd8c] sm:$0xf]  ;;  %v7386_v14 = vld [vmem:[#allocation9 + $0xd98] sm:$0xf0] }
 0x1d9   : > { %3330 = vmatpush.bf16.msra.mxu2 %v6989_v38  ;;  %3304 = vmatpush.bf16.msra.mxu0 %v6701_v18  ;;  %v9656_v38 = vld [vmem:[#allocation9 + $0xb0c] sm:$0xf]  ;;  %v7690_v18 = vld [vmem:[#allocation9 + $0xff8] sm:$0xf0] }
 0x1da   : > { %3344 = vmatpush.bf16.msra.mxu3 %v7117_v31  ;;  %3318 = vmatpush.bf16.msra.mxu1 %v6829_v58  ;;  %v7562_v31 = vld [vmem:[#allocation9 + $0xef8] sm:$0xf0]  ;;  %v7069_v58 = vor.u32 %v9656_v38, %v7066_v17  ;;  %v9804_v1 = vld [vmem:[#allocation9 + $0xfac] sm:$0xf] }
 0x1db   : > { %v7565_v59 = vor.u32 %v9780_v22, %v7562_v31  ;;  %v7530_v23 = vld [vmem:[#allocation9 + $0xeb8] sm:$0xf0]  ;;  %v9700_v40 = vld [vmem:[#allocation9 + $0xc6c] sm:$0xf] }
 0x1dc   : > { %v7658_v16 = vld [vmem:[#allocation9 + $0xfb8] sm:$0xf0]  ;;  %v9732_v22 = vld [vmem:[#allocation9 + $0xd6c] sm:$0xf] }
 0x1dd   : > { %3331 = vmatpush.bf16.msra.mxu2 %v6973_v15  ;;  %3305 = vmatpush.bf16.msra.mxu0 %v6685_v0  ;;  %v7693_v15 = vor.u32 %v9812_v39, %v7690_v18  ;;  %v7258_v0 = vld [vmem:[#allocation9 + $0xc98] sm:$0xf0]  ;;  %v9696_v57 = vld [vmem:[#allocation9 + $0xc4c] sm:$0xf] }
 0x1de   : > { %3345 = vmatpush.bf16.msra.mxu3 %v7101_v43  ;;  %3319 = vmatpush.bf16.msra.mxu1 %v6813_v53  ;;  %v9808_v43 = vld [vmem:[#allocation9 + $0xfcc] sm:$0xf]  ;;  %v3027_v53 = vpop.f32.mrf.mxu0  ;;  %v7261_v50 = vor.u32 %v9704_v21, %v7258_v0  ;;  %v7242_v41 = vld [vmem:[#allocation9 + $0xc78] sm:$0xf0] }
 0x1df   : > { %v7370_v31 = vld [vmem:[#allocation9 + $0xd78] sm:$0xf0]  ;;  %v7245_v18 = vor.u32 %v9700_v40, %v7242_v41  ;;  %v9728_v63 = vld [vmem:[#allocation9 + $0xd4c] sm:$0xf] }
 0x1e0   : > { %3306 = vmatmul.bf16.vlgmr.msra.gmra.mxu0 %v10950_v4  ;;  %v7549_v4 = vor.u32 %v9776_v28, %v7546_v36  ;;  %v7514_v39 = vld [vmem:[#allocation9 + $0xe98] sm:$0xf0]  ;;  %v7373_v51 = vor.u32 %v9732_v22, %v7370_v31  ;;  %v9764_v36 = vld [vmem:[#allocation9 + $0xe6c] sm:$0xf] }
 0x1e1   : > { %3354 = vmatpush.bf16.msrb.mxu0 %v7309_v42  ;;  %3332 = vmatpush.bf16.msra.mxu2 %v6957_v11  ;;  %v9772_v42 = vld [vmem:[#allocation9 + $0xeac] sm:$0xf]  ;;  %v3041_v11 = vpop.f32.mrf.mxu1  ;;  %v7354_v6 = vld [vmem:[#allocation9 + $0xd58] sm:$0xf0] }
 0x1e2   : > { %3368 = vmatpush.bf16.msrb.mxu1 %v7437_v5  ;;  %3346 = vmatpush.bf16.msra.mxu3 %v7085_v12  ;;  %v3028_v5 = vadd.f32 %v3027_v53, %v10994_v7  ;;  %v7389_v12 = vor.u32 %v9736_v2, %v7386_v14  ;;  %v7533_v17 = vor.u32 %v9772_v42, %v7530_v23  ;;  %v11005_v7 = vpop.f32.mrf.mxu2  ;;  %v7626_v21 = vld [vmem:[#allocation9 + $0xf78] sm:$0xf0]  ;;  %v9724_v53 = vld [vmem:[#allocation9 + $0xd2c] sm:$0xf] }
 0x1e3   : > { %3320 = vmatmul.bf16.vlgmr.msra.gmra.mxu1 %v10952_v30  ;;  %v7677_v30 = vor.u32 %v9808_v43, %v7674_v45  ;;  %v7357_v0 = vor.u32 %v9728_v63, %v7354_v6  ;;  %v7210_v2 = vld [vmem:[#allocation9 + $0xc38] sm:$0xf0]  ;;  %v9760_v23 = vld [vmem:[#allocation9 + $0xe4c] sm:$0xf] }
 0x1e4   : > { %v3042_v38 = vadd.f32 %v3041_v11, %v3028_v5  ;;  %v7482_v5 = vld [vmem:[#allocation9 + $0xe58] sm:$0xf0]  ;;  %v9720_v31 = vld [vmem:[#allocation9 + $0xd0c] sm:$0xf] }
 0x1e5   : > { %3355 = vmatpush.bf16.msrb.mxu0 %v7293_v35  ;;  %3333 = vmatpush.bf16.msra.mxu2 %v6941_v47  ;;  %v9768_v35 = vld [vmem:[#allocation9 + $0xe8c] sm:$0xf]  ;;  %v7642_v47 = vld [vmem:[#allocation9 + $0xf98] sm:$0xf0] }
 0x1e6   : > { %3369 = vmatpush.bf16.msrb.mxu1 %v7421_v46  ;;  %3347 = vmatpush.bf16.msra.mxu3 %v7069_v58  ;;  %v9800_v46 = vld [vmem:[#allocation9 + $0xf8c] sm:$0xf]  ;;  %v7226_v58 = vld [vmem:[#allocation9 + $0xc58] sm:$0xf0] }
 0x1e7   : > { %v7645_v28 = vor.u32 %v9800_v46, %v7642_v47  ;;  %v7229_v45 = vor.u32 %v9696_v57, %v7226_v58  ;;  %v7194_v22 = vld [vmem:[#allocation9 + $0xc18] sm:$0xf0]  ;;  %v7936_v46 = vld [vmem:[#allocation9 + $0x1e0] sm:$0xf]  ;;  %v9365_v58 = vld [vmem:[#allocation9 + $0x1ec] sm:$0xf0] }
 0x1e8   : > { %3334 = vmatmul.bf16.vlgmr.msra.gmra.mxu2 %v10956_v49  ;;  %v7661_v49 = vor.u32 %v9804_v1, %v7658_v16  ;;  %v9792_v1 = vld [vmem:[#allocation9 + $0xf4c] sm:$0xf]  ;;  %v7610_v16 = vld [vmem:[#allocation9 + $0xf58] sm:$0xf0] }
 0x1e9   : > { %3382 = vmatpush.bf16.msrb.mxu2 %v7565_v59  ;;  %3356 = vmatpush.bf16.msrb.mxu0 %v7277_v25  ;;  %v7517_v59 = vor.u32 %v9768_v35, %v7514_v39  ;;  %v7498_v25 = vld [vmem:[#allocation9 + $0xe78] sm:$0xf0]  ;;  %v11011_v43 = vpop.f32.mrf.mxu1  ;;  %v7485_v35 = vor.u32 %v9760_v23, %v7482_v5  ;;  %v7808_v39 = vld [vmem:[#allocation9 + $0xe0] sm:$0xf]  ;;  %v7613_v57 = vor.u32 %v9792_v1, %v7610_v16  ;;  %v9784_v5 = vld [vmem:[#allocation9 + $0xf0c] sm:$0xf] }
 0x1ea   : > { %3396 = vmatpush.bf16.msrb.mxu3 %v7693_v15  ;;  %3370 = vmatpush.bf16.msrb.mxu1 %v7405_v10  ;;  %v11009_v15 = vpop.f32.mrf.mxu0  ;;  %v9796_v10 = vld [vmem:[#allocation9 + $0xf6c] sm:$0xf]  ;;  %v7501_v14 = vor.u32 %v9764_v36, %v7498_v25  ;;  %v3055_v11 = vpop.f32.mrf.mxu2  ;;  %v7466_v63 = vld [vmem:[#allocation9 + $0xe38] sm:$0xf0]  ;;  %v8064_v1 = vld [vmem:[#allocation9 + $0x2e0] sm:$0xf] }
 0x1eb   : > { %3348 = vmatmul.bf16.vlgmr.msra.gmra.mxu3 %v10958_v37  ;;  %v11007_v37 = vpop.f32.mrf.mxu3  ;;  %v7629_v42 = vor.u32 %v9796_v10, %v7626_v21  ;;  %v3056_v40 = vadd.f32 %v3055_v11, %v3042_v38  ;;  %v7594_v36 = vld [vmem:[#allocation9 + $0xf38] sm:$0xf0]  ;;  %v7792_v21 = vld [vmem:[#allocation9 + $0xc0] sm:$0xf]  ;;  %v9397_v16 = vld [vmem:[#allocation9 + $0x2ec] sm:$0xf0] }
 0x1ec   : > { %v7450_v23 = vld [vmem:[#allocation9 + $0xe18] sm:$0xf0] }
 0x1ed   : > { %3383 = vmatpush.bf16.msrb.mxu2 %v7549_v4  ;;  %3357 = vmatpush.bf16.msrb.mxu0 %v7261_v50  ;;  %v9692_v4 = vld [vmem:[#allocation9 + $0xc2c] sm:$0xf] }
 0x1ee   : > { %3397 = vmatpush.bf16.msrb.mxu3 %v7677_v30  ;;  %3371 = vmatpush.bf16.msrb.mxu1 %v7389_v12  ;;  %v7338_v30 = vld [vmem:[#allocation9 + $0xd38] sm:$0xf0]  ;;  %v7213_v50 = vor.u32 %v9692_v4, %v7210_v2  ;;  %v9688_v12 = vld [vmem:[#allocation9 + $0xc0c] sm:$0xf]  ;;  %v9329_v2 = vld [vmem:[#allocation9 + $0xcc] sm:$0xf0] }
 0x1ef   : > { %v7197_v6 = vor.u32 %v9688_v12, %v7194_v22 }
 0x1f1   : > { %3384 = vmatpush.bf16.msrb.mxu2 %v7533_v17  ;;  %3358 = vmatpush.bf16.msrb.mxu0 %v7245_v18  ;;  %v7341_v17 = vor.u32 %v9724_v53, %v7338_v30  ;;  %v9333_v18 = vld [vmem:[#allocation9 + $0xec] sm:$0xf0]  ;;  %v3097_v38 = vpop.f32.mrf.mxu1 }
 0x1f2   : > { %3398 = vmatpush.bf16.msrb.mxu3 %v7661_v49  ;;  %3372 = vmatpush.bf16.msrb.mxu1 %v7373_v51  ;;  %v7322_v49 = vld [vmem:[#allocation9 + $0xd18] sm:$0xf0]  ;;  %v3083_v51 = vpop.f32.mrf.mxu0  ;;  %v7809_v10 = vor.u32 %v9333_v18, %v7808_v39  ;;  %v9361_v53 = vld [vmem:[#allocation9 + $0x1cc] sm:$0xf0]  ;;  %v11017_v11 = vpop.f32.mrf.mxu2 }
 0x1f3   : > { %v3069_v41 = vpop.f32.mrf.mxu3  ;;  %v11015_v25 = vadd.f32 %v3097_v38, %v3083_v51  ;;  %v7904_v51 = vld [vmem:[#allocation9 + $0x1a0] sm:$0xf]  ;;  %v9393_v38 = vld [vmem:[#allocation9 + $0x2cc] sm:$0xf0] }
 0x1f4   : > { %v11013_v47 = vadd.f32 %v3069_v41, %v3056_v40  ;;  %v7793_v40 = vor.u32 %v9329_v2, %v7792_v21  ;;  %v8192_v41 = vld [vmem:[#allocation9 + $0x3e0] sm:$0xf] }
 0x1f5   : > { %3385 = vmatpush.bf16.msrb.mxu2 %v7517_v59  ;;  %3359 = vmatpush.bf16.msrb.mxu0 %v7229_v45  ;;  %v9756_v59 = vld [vmem:[#allocation9 + $0xe2c] sm:$0xf]  ;;  %v7325_v45 = vor.u32 %v9720_v31, %v7322_v49  ;;  %v7776_v49 = vld [vmem:[#allocation9 + $0xa0] sm:$0xf] }
 0x1f6   : > { %3399 = vmatpush.bf16.msrb.mxu3 %v7645_v28  ;;  %3373 = vmatpush.bf16.msrb.mxu1 %v7357_v0  ;;  %v9788_v28 = vld [vmem:[#allocation9 + $0xf2c] sm:$0xf]  ;;  %v7937_v0 = vor.u32 %v9365_v58, %v7936_v46  ;;  %v7469_v4 = vor.u32 %v9756_v59, %v7466_v63  ;;  %v8065_v46 = vor.u32 %v9397_v16, %v8064_v1  ;;  %v8048_v63 = vld [vmem:[#allocation9 + $0x2c0] sm:$0xf] }
 0x1f7   : > { %v7597_v30 = vor.u32 %v9788_v28, %v7594_v36  ;;  %v8176_v28 = vld [vmem:[#allocation9 + $0x3c0] sm:$0xf]  ;;  %v9425_v36 = vld [vmem:[#allocation9 + $0x3cc] sm:$0xf0]  ;;  %v8049_v21 = vor.u32 %v9393_v38, %v8048_v63 }
 0x1f8   : > { %v8177_v2 = vor.u32 %v9425_v36, %v8176_v28  ;;  %v7744_v16 = vld [vmem:[#allocation9 + $0x60] sm:$0xf]  ;;  %v9313_v28 = vld [vmem:[#allocation9 + $0x4c] sm:$0xf0] }
 0x1f9   : > { %3386 = vmatpush.bf16.msrb.mxu2 %v7501_v14  ;;  %3360 = vmatpush.bf16.msrb.mxu0 %v7213_v50  ;;  %v7920_v14 = vld [vmem:[#allocation9 + $0x1c0] sm:$0xf]  ;;  %v7578_v50 = vld [vmem:[#allocation9 + $0xf18] sm:$0xf0]  ;;  %v11025_v58 = vpop.f32.mrf.mxu1 }
 0x1fa   : > { %3400 = vmatpush.bf16.msrb.mxu3 %v7629_v42  ;;  %3374 = vmatpush.bf16.msrb.mxu1 %v7341_v17  ;;  %v9752_v42 = vld [vmem:[#allocation9 + $0xe0c] sm:$0xf]  ;;  %v9429_v17 = vld [vmem:[#allocation9 + $0x3ec] sm:$0xf0]  ;;  %v7921_v22 = vor.u32 %v9361_v53, %v7920_v14  ;;  %v11022_v39 = vpop.f32.mrf.mxu0  ;;  %v7581_v18 = vor.u32 %v9784_v5, %v7578_v50  ;;  %v8032_v14 = vld [vmem:[#allocation9 + $0x2a0] sm:$0xf] }
 0x1fb   : > { %v11019_v12 = vpop.f32.mrf.mxu3  ;;  %v7453_v31 = vor.u32 %v9752_v42, %v7450_v23  ;;  %v8193_v59 = vor.u32 %v9429_v17, %v8192_v41  ;;  %v9389_v53 = vld [vmem:[#allocation9 + $0x2ac] sm:$0xf0]  ;;  %v8160_v5 = vld [vmem:[#allocation9 + $0x3a0] sm:$0xf] }
 0x1fc   : > { %v9421_v50 = vld [vmem:[#allocation9 + $0x3ac] sm:$0xf0] }
 0x1fd   : > { %3387 = vmatpush.bf16.msrb.mxu2 %v7485_v35  ;;  %3361 = vmatpush.bf16.msrb.mxu0 %v7197_v6  ;;  %v9325_v35 = vld [vmem:[#allocation9 + $0xac] sm:$0xf0] }
 0x1fe   : > { %3401 = vmatpush.bf16.msrb.mxu3 %v7613_v57  ;;  %3375 = vmatpush.bf16.msrb.mxu1 %v7325_v45  ;;  %v9357_v57 = vld [vmem:[#allocation9 + $0x1ac] sm:$0xf0]  ;;  %v7777_v6 = vor.u32 %v9325_v35, %v7776_v49  ;;  %v7760_v45 = vld [vmem:[#allocation9 + $0x80] sm:$0xf]  ;;  %v8161_v35 = vor.u32 %v9421_v50, %v8160_v5 }
 0x1ff   : > { %v11030_v41 = vld [vmem:[#allocation8] sm:$0xff]  ;;  %v7712_v50 = vld [vmem:[#allocation9 + $0x20] sm:$0xf] }
 0x200   : > { %3362 = vmatmul.bf16.vlgmr.msrb.gmra.mxu0 %v10966_v32  ;;  %v7905_v32 = vor.u32 %v9357_v57, %v7904_v51  ;;  %v534_v49 = vperm.slane %v11030_v41, 0  ;;  %v8144_v57 = vld [vmem:[#allocation9 + $0x380] sm:$0xf] }
 0x201   : > { %4690 = vmatpush.bf16.msra.mxu0 %v7809_v10  ;;  %3388 = vmatpush.bf16.msrb.mxu2 %v7469_v4  ;;  %v9321_v10 = vld [vmem:[#allocation9 + $0x8c] sm:$0xf0]  ;;  %v3153_v63 = vpop.f32.mrf.mxu1 }
 0x202   : > { %4704 = vmatpush.bf16.msra.mxu1 %v7937_v0  ;;  %3402 = vmatpush.bf16.msrb.mxu3 %v7597_v30  ;;  %v7888_v0 = vld [vmem:[#allocation9 + $0x180] sm:$0xf]  ;;  %v9353_v4 = vld [vmem:[#allocation9 + $0x18c] sm:$0xf0]  ;;  %v7761_v23 = vor.u32 %v9321_v10, %v7760_v45 }
 0x203   : > { %3376 = vmatmul.bf16.vlgmr.msrb.gmra.mxu1 %v10968_v54  ;;  %v3111_v54 = vpop.f32.mrf.mxu2  ;;  %v3125_v42 = vpop.f32.mrf.mxu3  ;;  %v7889_v1 = vor.u32 %v9353_v4, %v7888_v0  ;;  %v7856_v45 = vld [vmem:[#allocation9 + $0x140] sm:$0xf]  ;;  %v9345_v10 = vld [vmem:[#allocation9 + $0x14c] sm:$0xf0] }
 0x204   : > { %v3112_v30 = vadd.f32 %v3111_v54, %v11015_v25  ;;  %v9349_v25 = vld [vmem:[#allocation9 + $0x16c] sm:$0xf0]  ;;  %v8000_v54 = vld [vmem:[#allocation9 + $0x260] sm:$0xf]  ;;  %v7857_v5 = vor.u32 %v9345_v10, %v7856_v45 }
 0x205   : > { %4691 = vmatpush.bf16.msra.mxu0 %v7793_v40  ;;  %3389 = vmatpush.bf16.msrb.mxu2 %v7453_v31  ;;  %v9317_v40 = vld [vmem:[#allocation9 + $0x6c] sm:$0xf0]  ;;  %v7872_v31 = vld [vmem:[#allocation9 + $0x160] sm:$0xf] }
 0x206   : > { %4705 = vmatpush.bf16.msra.mxu1 %v7921_v22  ;;  %3403 = vmatpush.bf16.msrb.mxu3 %v7581_v18  ;;  %v3126_v17 = vadd.f32 %v3125_v42, %v3112_v30  ;;  %v8033_v22 = vor.u32 %v9389_v53, %v8032_v14  ;;  %v8016_v18 = vld [vmem:[#allocation9 + $0x280] sm:$0xf]  ;;  %v7873_v38 = vor.u32 %v9349_v25, %v7872_v31  ;;  %v535_v14 = vperm.slane %v11030_v41, 1 }
 0x207   : > { %v8128_v42 = vld [vmem:[#allocation9 + $0x360] sm:$0xf]  ;;  %v537_v31 = vperm.slane %v11030_v41, 3 }
 0x208   : > { %3390 = vmatmul.bf16.vlgmr.msrb.gmra.mxu2 %v10972_v33  ;;  %v3139_v33 = vpop.f32.mrf.mxu0  ;;  %v8320_v10 = vld [vmem:[#allocation9 + $0x4e0] sm:$0xf] }
 0x209   : > { %4718 = vmatpush.bf16.msra.mxu2 %v8065_v46  ;;  %4692 = vmatpush.bf16.msra.mxu0 %v7777_v6  ;;  %v9385_v46 = vld [vmem:[#allocation9 + $0x28c] sm:$0xf0]  ;;  %v3140_v51 = vadd.f32 %v3139_v33, %v3126_v17  ;;  %v7728_v6 = vld [vmem:[#allocation9 + $0x40] sm:$0xf] }
 0x20a   : > { %4732 = vmatpush.bf16.msra.mxu3 %v8193_v59  ;;  %4706 = vmatpush.bf16.msra.mxu1 %v7905_v32  ;;  %v9417_v59 = vld [vmem:[#allocation9 + $0x38c] sm:$0xf0]  ;;  %v8017_v32 = vor.u32 %v9385_v46, %v8016_v18  ;;  %v7729_v30 = vor.u32 %v9313_v28, %v7728_v6  ;;  %v7984_v33 = vld [vmem:[#allocation9 + $0x240] sm:$0xf]  ;;  %v11047_v18 = vadd.f32 %v10914_v55, %v535_v14 }
 0x20b   : > { %3404 = vmatmul.bf16.vlgmr.msrb.gmra.mxu3 %v10974_v48  ;;  %v7745_v48 = vor.u32 %v9317_v40, %v7744_v16  ;;  %v11033_v36 = vadd.f32 %v3153_v63, %v3140_v51  ;;  %v11038_v0 = vpop.f32.mrf.mxu2  ;;  %v8145_v4 = vor.u32 %v9417_v59, %v8144_v57  ;;  %v11041_v53 = vpop.f32.mrf.mxu3  ;;  %v7840_v40 = vld [vmem:[#allocation9 + $0x120] sm:$0xf]  ;;  %v9341_v17 = vld [vmem:[#allocation9 + $0x12c] sm:$0xf0]  ;;  %v888_v46 = vadd.f32 %v10920_v60, %v534_v49 }
 0x20c   : > { %v9409_v57 = vld [vmem:[#allocation9 + $0x34c] sm:$0xf0]  ;;  %v7696_v59 = vld [vmem:[#allocation9] sm:$0xf]  ;;  %v902_v63 = vadd.f32 %v10922_v3, %v535_v14 }
 0x20d   : > { %4719 = vmatpush.bf16.msra.mxu2 %v8049_v21  ;;  %4693 = vmatpush.bf16.msra.mxu0 %v7761_v23  ;;  %v11036_v21 = vadd.f32 %v10912_v20, %v534_v49  ;;  %v9413_v23 = vld [vmem:[#allocation9 + $0x36c] sm:$0xf0]  ;;  %v536_v20 = vperm.slane %v11030_v41, 2  ;;  %v7824_v28 = vld [vmem:[#allocation9 + $0x100] sm:$0xf] }
 0x20e   : > { %4733 = vmatpush.bf16.msra.mxu3 %v8177_v2  ;;  %4707 = vmatpush.bf16.msra.mxu1 %v7889_v1  ;;  %v9381_v2 = vld [vmem:[#allocation9 + $0x26c] sm:$0xf0]  ;;  %v8129_v25 = vor.u32 %v9413_v23, %v8128_v42  ;;  %v8448_v55 = vld [vmem:[#allocation9 + $0x5e0] sm:$0xf]  ;;  %v996_v42 = vmax.f32 %v888_v46, 0.0 }
 0x20f   : > { %v9309_v1 = vld [vmem:[#allocation9 + $0x2c] sm:$0xf0]  ;;  %v8001_v16 = vor.u32 %v9381_v2, %v8000_v54  ;;  %v7968_v49 = vld [vmem:[#allocation9 + $0x220] sm:$0xf]  ;;  %v914_v46 = vadd.f32 %v10916_v29, %v536_v20 }
 0x210   : > { %v7713_v51 = vor.u32 %v9309_v1, %v7712_v50  ;;  %v9305_v6 = vld [vmem:[#allocation9 + $0xc] sm:$0xf0]  ;;  %v8096_v14 = vld [vmem:[#allocation9 + $0x320] sm:$0xf]  ;;  %v997_v50 = vmax.f32 %v902_v63, 0.0 }
 0x211   : > { %4720 = vmatpush.bf16.msra.mxu2 %v8033_v22  ;;  %4694 = vmatpush.bf16.msra.mxu0 %v7745_v48  ;;  %v988_v22 = vmax.f32 %v11036_v21, 0.0  ;;  %v8112_v48 = vld [vmem:[#allocation9 + $0x340] sm:$0xf]  ;;  %v9493_v60 = vld [vmem:[#allocation9 + $0x5ec] sm:$0xf0]  ;;  %v7697_v3 = vor.u32 %v9305_v6, %v7696_v59 }
 0x212   : > { %4734 = vmatpush.bf16.msra.mxu3 %v8161_v35  ;;  %4708 = vmatpush.bf16.msra.mxu1 %v7873_v38  ;;  %v9377_v35 = vld [vmem:[#allocation9 + $0x24c] sm:$0xf0]  ;;  %v7841_v38 = vor.u32 %v9341_v17, %v7840_v40  ;;  %v8113_v54 = vor.u32 %v9409_v57, %v8112_v48  ;;  %v8304_v17 = vld [vmem:[#allocation9 + $0x4c0] sm:$0xf] }
 0x213   : > { %v7985_v45 = vor.u32 %v9377_v35, %v7984_v33  ;;  %v9373_v2 = vld [vmem:[#allocation9 + $0x22c] sm:$0xf0]  ;;  %v3167_v23 = vpop.f32.mrf.mxu2  ;;  %v8449_v33 = vor.u32 %v9493_v60, %v8448_v55  ;;  %v8432_v57 = vld [vmem:[#allocation9 + $0x5c0] sm:$0xf]  ;;  %v11061_v29 = vpack.c.bf16 %v996_v42, %v988_v22 }
 0x214   : > { %v3168_v1 = vadd.f32 %v3167_v23, %v11033_v36  ;;  %v7969_v35 = vor.u32 %v9373_v2, %v7968_v49  ;;  %v9457_v48 = vld [vmem:[#allocation9 + $0x4cc] sm:$0xf0]  ;;  %v7952_v36 = vld [vmem:[#allocation9 + $0x200] sm:$0xf]  ;;  %v990_v49 = vmax.f32 %v914_v46, 0.0 }
 0x215   : > { %4721 = vmatpush.bf16.msra.mxu2 %v8017_v32  ;;  %4695 = vmatpush.bf16.msra.mxu0 %v7729_v30  ;;  %v9337_v32 = vld [vmem:[#allocation9 + $0x10c] sm:$0xf0]  ;;  %v989_v30 = vmax.f32 %v11047_v18, 0.0  ;;  %v8080_v6 = vld [vmem:[#allocation9 + $0x300] sm:$0xf] }
 0x216   : > { %4735 = vmatpush.bf16.msra.mxu3 %v8145_v4  ;;  %4709 = vmatpush.bf16.msra.mxu1 %v7857_v5  ;;  %v9461_v4 = vld [vmem:[#allocation9 + $0x4ec] sm:$0xf0]  ;;  %v8416_v42 = vld [vmem:[#allocation9 + $0x5a0] sm:$0xf] }
 0x217   : > { %v9405_v5 = vld [vmem:[#allocation9 + $0x32c] sm:$0xf0]  ;;  %v8321_v40 = vor.u32 %v9461_v4, %v8320_v10  ;;  %v8576_v10 = vld [vmem:[#allocation9 + $0x6e0] sm:$0xf] }
 0x218   : > { %v9489_v18 = vld [vmem:[#allocation9 + $0x5cc] sm:$0xf0]  ;;  %v8097_v63 = vor.u32 %v9405_v5, %v8096_v14  ;;  %v11066_v5 = vpop.f32.mrf.mxu0  ;;  %v8400_v46 = vld [vmem:[#allocation9 + $0x580] sm:$0xf] }
 0x219   : > { %4722 = vmatpush.bf16.msra.mxu2 %v8001_v16  ;;  %4696 = vmatpush.bf16.msra.mxu0 %v7713_v51  ;;  %v7825_v16 = vor.u32 %v9337_v32, %v7824_v28  ;;  %v916_v51 = vadd.f32 %v10924_v27, %v536_v20  ;;  %v928_v28 = vadd.f32 %v10918_v56, %v537_v31  ;;  %v9525_v4 = vld [vmem:[#allocation9 + $0x6ec] sm:$0xf0]  ;;  %v8704_v20 = vld [vmem:[#allocation9 + $0x7e0] sm:$0xf] }
 0x21a   : > { %4736 = vmatpush.bf16.msra.mxu3 %v8129_v25  ;;  %4710 = vmatpush.bf16.msra.mxu1 %v7841_v38  ;;  %v3181_v25 = vpop.f32.mrf.mxu3  ;;  %v9369_v38 = vld [vmem:[#allocation9 + $0x20c] sm:$0xf0]  ;;  %v930_v32 = vadd.f32 %v10926_v9, %v537_v31  ;;  %v8305_v27 = vor.u32 %v9457_v48, %v8304_v17  ;;  %v8433_v56 = vor.u32 %v9489_v18, %v8432_v57  ;;  %v8288_v9 = vld [vmem:[#allocation9 + $0x4a0] sm:$0xf] }
 0x21b   : > { %v11055_v59 = vadd.f32 %v3181_v25, %v3168_v1  ;;  %v9557_v55 = vld [vmem:[#allocation9 + $0x7ec] sm:$0xf0]  ;;  %v7953_v60 = vor.u32 %v9369_v38, %v7952_v36  ;;  %v998_v2 = vmax.f32 %v916_v51, 0.0  ;;  %v8577_v22 = vor.u32 %v9525_v4, %v8576_v10  ;;  %v8688_v17 = vld [vmem:[#allocation9 + $0x7c0] sm:$0xf] }
 0x21c   : > { %v9453_v31 = vld [vmem:[#allocation9 + $0x4ac] sm:$0xf0]  ;;  %v999_v14 = vmax.f32 %v930_v32, 0.0  ;;  %v8544_v38 = vld [vmem:[#allocation9 + $0x6a0] sm:$0xf] }
 0x21d   : > { %4723 = vmatpush.bf16.msra.mxu2 %v7985_v45  ;;  %4697 = vmatpush.bf16.msra.mxu0 %v7697_v3  ;;  %v9401_v45 = vld [vmem:[#allocation9 + $0x30c] sm:$0xf0]  ;;  %v991_v3 = vmax.f32 %v928_v28, 0.0  ;;  %v11071_v57 = vpack.c.bf16 %v998_v2, %v990_v49  ;;  %v8672_v32 = vld [vmem:[#allocation9 + $0x7a0] sm:$0xf] }
 0x21e   : > { %4737 = vmatpush.bf16.msra.mxu3 %v8113_v54  ;;  %4711 = vmatpush.bf16.msra.mxu1 %v7825_v16  ;;  %v11063_v54 = vpack.c.bf16 %v997_v50, %v989_v30  ;;  %v8081_v21 = vor.u32 %v9401_v45, %v8080_v6  ;;  %v9485_v23 = vld [vmem:[#allocation9 + $0x5ac] sm:$0xf0]  ;;  %v8705_v30 = vor.u32 %v9557_v55, %v8704_v20  ;;  %v8560_v50 = vld [vmem:[#allocation9 + $0x6c0] sm:$0xf]  ;;  %v11069_v16 = vpop.f32.mrf.mxu1 }
 0x21f   : > { %v9521_v1 = vld [vmem:[#allocation9 + $0x6cc] sm:$0xf0]  ;;  %v8256_v4 = vld [vmem:[#allocation9 + $0x460] sm:$0xf] }
 0x220   : > { %4698 = vmatmul.bf16.vlgmr.msra.gmra.mxu0 %v11061_v29  ;;  %v9553_v25 = vld [vmem:[#allocation9 + $0x7cc] sm:$0xf0]  ;;  %v8561_v18 = vor.u32 %v9521_v1, %v8560_v50  ;;  %v8384_v55 = vld [vmem:[#allocation9 + $0x560] sm:$0xf] }
 0x221   : > { %4746 = vmatpush.bf16.msrb.mxu0 %v8321_v40  ;;  %4724 = vmatpush.bf16.msra.mxu2 %v7969_v35  ;;  %v8289_v40 = vor.u32 %v9453_v31, %v8288_v9  ;;  %v8272_v35 = vld [vmem:[#allocation9 + $0x480] sm:$0xf]  ;;  %v9449_v48 = vld [vmem:[#allocation9 + $0x48c] sm:$0xf0]  ;;  %v8689_v36 = vor.u32 %v9553_v25, %v8688_v17  ;;  %v11077_v17 = vpop.f32.mrf.mxu2 }
 0x222   : > { %4760 = vmatpush.bf16.msrb.mxu1 %v8449_v33  ;;  %4738 = vmatpush.bf16.msra.mxu3 %v8097_v63  ;;  %v8417_v33 = vor.u32 %v9485_v23, %v8416_v42  ;;  %v9481_v51 = vld [vmem:[#allocation9 + $0x58c] sm:$0xf0]  ;;  %v11073_v63 = vpack.c.bf16 %v999_v14, %v991_v3  ;;  %v8273_v28 = vor.u32 %v9449_v48, %v8272_v35  ;;  %v8528_v31 = vld [vmem:[#allocation9 + $0x680] sm:$0xf]  ;;  %v538_v48 = vperm.slane %v11030_v41, 4 }
 0x223   : > { %4712 = vmatmul.bf16.vlgmr.msra.gmra.mxu1 %v11063_v54  ;;  %v9517_v6 = vld [vmem:[#allocation9 + $0x6ac] sm:$0xf0]  ;;  %v8401_v10 = vor.u32 %v9481_v51, %v8400_v46  ;;  %v8240_v14 = vld [vmem:[#allocation9 + $0x440] sm:$0xf] }
 0x224   : > { %v9549_v45 = vld [vmem:[#allocation9 + $0x7ac] sm:$0xf0]  ;;  %v8545_v20 = vor.u32 %v9517_v6, %v8544_v38  ;;  %v8368_v1 = vld [vmem:[#allocation9 + $0x540] sm:$0xf]  ;;  %v11081_v38 = vpop.f32.mrf.mxu3 }
 0x225   : > { %4747 = vmatpush.bf16.msrb.mxu0 %v8305_v27  ;;  %4725 = vmatpush.bf16.msra.mxu2 %v7953_v60  ;;  %v9445_v27 = vld [vmem:[#allocation9 + $0x46c] sm:$0xf0]  ;;  %v3195_v60 = vpop.f32.mrf.mxu0  ;;  %v8673_v9 = vor.u32 %v9549_v45, %v8672_v32  ;;  %v8640_v51 = vld [vmem:[#allocation9 + $0x760] sm:$0xf] }
 0x226   : > { %4761 = vmatpush.bf16.msrb.mxu1 %v8433_v56  ;;  %4739 = vmatpush.bf16.msra.mxu3 %v8081_v21  ;;  %v9477_v56 = vld [vmem:[#allocation9 + $0x56c] sm:$0xf0]  ;;  %v3209_v2 = vpop.f32.mrf.mxu1  ;;  %v8257_v21 = vor.u32 %v9445_v27, %v8256_v4  ;;  %v540_v27 = vperm.slane %v11030_v41, 6 }
 0x227   : > { %v9513_v49 = vld [vmem:[#allocation9 + $0x68c] sm:$0xf0]  ;;  %v3210_v23 = vadd.f32 %v3209_v2, %v3195_v60  ;;  %v8385_v3 = vor.u32 %v9477_v56, %v8384_v55  ;;  %v8496_v56 = vld [vmem:[#allocation9 + $0x640] sm:$0xf] }
 0x228   : > { %4726 = vmatmul.bf16.vlgmr.msra.gmra.mxu2 %v11071_v57  ;;  %v9545_v42 = vld [vmem:[#allocation9 + $0x78c] sm:$0xf0]  ;;  %v8529_v50 = vor.u32 %v9513_v49, %v8528_v31  ;;  %v8624_v2 = vld [vmem:[#allocation9 + $0x740] sm:$0xf] }
 0x229   : > { %4774 = vmatpush.bf16.msrb.mxu2 %v8577_v22  ;;  %4748 = vmatpush.bf16.msrb.mxu0 %v8289_v40  ;;  %v8656_v22 = vld [vmem:[#allocation9 + $0x780] sm:$0xf]  ;;  %v9473_v40 = vld [vmem:[#allocation9 + $0x54c] sm:$0xf0] }
 0x22a   : > { %4788 = vmatpush.bf16.msrb.mxu3 %v8705_v30  ;;  %4762 = vmatpush.bf16.msrb.mxu1 %v8417_v33  ;;  %v9441_v30 = vld [vmem:[#allocation9 + $0x44c] sm:$0xf0]  ;;  %v8657_v25 = vor.u32 %v9545_v42, %v8656_v22  ;;  %v8512_v33 = vld [vmem:[#allocation9 + $0x660] sm:$0xf]  ;;  %v8369_v6 = vor.u32 %v9473_v40, %v8368_v1  ;;  %v944_v42 = vadd.f32 %v10936_v52, %v538_v48  ;;  %v7810_v40 = vld [vmem:[#allocation9 + $0xf0] sm:$0xf0] }
 0x22b   : > { %4740 = vmatmul.bf16.vlgmr.msra.gmra.mxu3 %v11073_v63  ;;  %v9509_v35 = vld [vmem:[#allocation9 + $0x66c] sm:$0xf0]  ;;  %v8241_v46 = vor.u32 %v9441_v30, %v8240_v14  ;;  %v8208_v22 = vld [vmem:[#allocation9 + $0x400] sm:$0xf] }
 0x22c   : > { %v9437_v32 = vld [vmem:[#allocation9 + $0x42c] sm:$0xf0]  ;;  %v8513_v45 = vor.u32 %v9509_v35, %v8512_v33  ;;  %v8336_v30 = vld [vmem:[#allocation9 + $0x500] sm:$0xf]  ;;  %v7938_v35 = vld [vmem:[#allocation9 + $0x1f0] sm:$0xf0] }
 0x22d   : > { %4775 = vmatpush.bf16.msrb.mxu2 %v8561_v18  ;;  %4749 = vmatpush.bf16.msrb.mxu0 %v8273_v28  ;;  %v539_v18 = vperm.slane %v11030_v41, 5  ;;  %v8224_v28 = vld [vmem:[#allocation9 + $0x420] sm:$0xf]  ;;  %v9469_v4 = vld [vmem:[#allocation9 + $0x52c] sm:$0xf0] }
 0x22e   : > { %4789 = vmatpush.bf16.msrb.mxu3 %v8689_v36  ;;  %4763 = vmatpush.bf16.msrb.mxu1 %v8401_v10  ;;  %v9541_v36 = vld [vmem:[#allocation9 + $0x76c] sm:$0xf0]  ;;  %v8352_v10 = vld [vmem:[#allocation9 + $0x520] sm:$0xf]  ;;  %v8225_v49 = vor.u32 %v9437_v32, %v8224_v28  ;;  %v1000_v28 = vmax.f32 %v944_v42, 0.0 }
 0x22f   : > { %v8641_v55 = vor.u32 %v9541_v36, %v8640_v51  ;;  %v9505_v60 = vld [vmem:[#allocation9 + $0x64c] sm:$0xf0]  ;;  %v11087_v31 = vadd.f32 %v10930_v26, %v539_v18  ;;  %v9363_v26 = vld [vmem:[#allocation9 + $0x1e4] sm:$0xf]  ;;  %v8464_v42 = vld [vmem:[#allocation9 + $0x600] sm:$0xf] }
 0x230   : > { %v9433_v14 = vld [vmem:[#allocation9 + $0x40c] sm:$0xf0]  ;;  %v8497_v1 = vor.u32 %v9505_v60, %v8496_v56  ;;  %v7941_v60 = vor.u32 %v9363_v26, %v7938_v35  ;;  %v9427_v26 = vld [vmem:[#allocation9 + $0x3e4] sm:$0xf]  ;;  %v7778_v35 = vld [vmem:[#allocation9 + $0xb0] sm:$0xf0] }
 0x231   : > { %4776 = vmatpush.bf16.msrb.mxu2 %v8545_v20  ;;  %4750 = vmatpush.bf16.msrb.mxu0 %v8257_v21  ;;  %v541_v20 = vperm.slane %v11030_v41, 7  ;;  %v9537_v21 = vld [vmem:[#allocation9 + $0x74c] sm:$0xf0]  ;;  %v8353_v41 = vor.u32 %v9469_v4, %v8352_v10  ;;  %v993_v52 = vmax.f32 %v11087_v31, 0.0  ;;  %v7922_v31 = vld [vmem:[#allocation9 + $0x1d0] sm:$0xf0] }
 0x232   : > { %4790 = vmatpush.bf16.msrb.mxu3 %v8673_v9  ;;  %4764 = vmatpush.bf16.msrb.mxu1 %v8385_v3  ;;  %v942_v9 = vadd.f32 %v10928_v13, %v538_v48  ;;  %v958_v3 = vadd.f32 %v10938_v61, %v539_v18  ;;  %v9331_v13 = vld [vmem:[#allocation9 + $0xe4] sm:$0xf]  ;;  %v8625_v33 = vor.u32 %v9537_v21, %v8624_v2  ;;  %v9501_v51 = vld [vmem:[#allocation9 + $0x62c] sm:$0xf0]  ;;  %v8608_v18 = vld [vmem:[#allocation9 + $0x720] sm:$0xf] }
 0x233   : > { %v8209_v48 = vor.u32 %v9433_v14, %v8208_v22  ;;  %v7813_v4 = vor.u32 %v9331_v13, %v7810_v40  ;;  %v9359_v21 = vld [vmem:[#allocation9 + $0x1c4] sm:$0xf]  ;;  %v984_v14 = vadd.f32 %v10934_v44, %v541_v20  ;;  %v8066_v13 = vld [vmem:[#allocation9 + $0x2f0] sm:$0xf0] }
 0x234   : > { %v992_v36 = vmax.f32 %v942_v9, 0.0  ;;  %v1001_v32 = vmax.f32 %v958_v3, 0.0  ;;  %v7794_v9 = vld [vmem:[#allocation9 + $0xd0] sm:$0xf0]  ;;  %v9497_v3 = vld [vmem:[#allocation9 + $0x60c] sm:$0xf0] }
 0x235   : > { %4777 = vmatpush.bf16.msrb.mxu2 %v8529_v50  ;;  %4751 = vmatpush.bf16.msrb.mxu0 %v8241_v46  ;;  %v9465_v50 = vld [vmem:[#allocation9 + $0x50c] sm:$0xf0]  ;;  %v8480_v46 = vld [vmem:[#allocation9 + $0x620] sm:$0xf]  ;;  %v9323_v44 = vld [vmem:[#allocation9 + $0xa4] sm:$0xf] }
 0x236   : > { %4791 = vmatpush.bf16.msrb.mxu3 %v8657_v25  ;;  %4765 = vmatpush.bf16.msrb.mxu1 %v8369_v6  ;;  %v3223_v25 = vpop.f32.mrf.mxu2  ;;  %v9533_v6 = vld [vmem:[#allocation9 + $0x72c] sm:$0xf0]  ;;  %v8337_v10 = vor.u32 %v9465_v50, %v8336_v30  ;;  %v8481_v2 = vor.u32 %v9501_v51, %v8480_v46  ;;  %v986_v30 = vadd.f32 %v10942_v19, %v541_v20 }
 0x237   : > { %v3224_v61 = vadd.f32 %v3223_v25, %v3210_v23  ;;  %v970_v23 = vadd.f32 %v10932_v24, %v540_v27  ;;  %v8609_v22 = vor.u32 %v9533_v6, %v8608_v18  ;;  %v9529_v50 = vld [vmem:[#allocation9 + $0x70c] sm:$0xf0]  ;;  %v11098_v40 = vpack.c.bf16 %v1000_v28, %v992_v36  ;;  %v9355_v36 = vld [vmem:[#allocation9 + $0x1a4] sm:$0xf]  ;;  %v11103_v6 = vpop.f32.mrf.mxu0 }
 0x238   : > { %v7925_v25 = vor.u32 %v9359_v21, %v7922_v31  ;;  %v1003_v18 = vmax.f32 %v986_v30, 0.0  ;;  %v9391_v28 = vld [vmem:[#allocation9 + $0x2c4] sm:$0xf] }
 0x239   : > { %4778 = vmatpush.bf16.msrb.mxu2 %v8513_v45  ;;  %4752 = vmatpush.bf16.msrb.mxu0 %v8225_v49  ;;  %v3237_v45 = vpop.f32.mrf.mxu3  ;;  %v972_v49 = vadd.f32 %v10940_v62, %v540_v27  ;;  %v8194_v62 = vld [vmem:[#allocation9 + $0x3f0] sm:$0xf0]  ;;  %v11100_v27 = vpack.c.bf16 %v1001_v32, %v993_v52  ;;  %v994_v19 = vmax.f32 %v970_v23, 0.0  ;;  %v9351_v23 = vld [vmem:[#allocation9 + $0x184] sm:$0xf] }
 0x23a   : > { %4792 = vmatpush.bf16.msrb.mxu3 %v8641_v55  ;;  %4766 = vmatpush.bf16.msrb.mxu1 %v8353_v41  ;;  %v9327_v55 = vld [vmem:[#allocation9 + $0xc4] sm:$0xf]  ;;  %v11092_v56 = vadd.f32 %v3237_v45, %v3224_v61  ;;  %v8592_v41 = vld [vmem:[#allocation9 + $0x700] sm:$0xf]  ;;  %v7906_v61 = vld [vmem:[#allocation9 + $0x1b0] sm:$0xf0]  ;;  %v8197_v52 = vor.u32 %v9427_v26, %v8194_v62  ;;  %v7781_v45 = vor.u32 %v9323_v44, %v7778_v35 }
 0x23b   : > { %v7797_v24 = vor.u32 %v9327_v55, %v7794_v9  ;;  %v1002_v20 = vmax.f32 %v972_v49, 0.0  ;;  %v8593_v46 = vor.u32 %v9529_v50, %v8592_v41  ;;  %v8050_v32 = vld [vmem:[#allocation9 + $0x2d0] sm:$0xf0]  ;;  %v11106_v55 = vpop.f32.mrf.mxu1  ;;  %v9419_v30 = vld [vmem:[#allocation9 + $0x3a4] sm:$0xf] }
 0x23c   : > { %v7762_v9 = vld [vmem:[#allocation9 + $0x90] sm:$0xf0]  ;;  %v8053_v31 = vor.u32 %v9391_v28, %v8050_v32  ;;  %v9347_v62 = vld [vmem:[#allocation9 + $0x164] sm:$0xf] }
 0x23d   : > { %4779 = vmatpush.bf16.msrb.mxu2 %v8497_v1  ;;  %4753 = vmatpush.bf16.msrb.mxu0 %v8209_v48  ;;  %v9395_v1 = vld [vmem:[#allocation9 + $0x2e4] sm:$0xf]  ;;  %v995_v48 = vmax.f32 %v984_v14, 0.0  ;;  %v11108_v21 = vpack.c.bf16 %v1002_v20, %v994_v19  ;;  %v7890_v49 = vld [vmem:[#allocation9 + $0x190] sm:$0xf0] }
 0x23e   : > { %4793 = vmatpush.bf16.msrb.mxu3 %v8625_v33  ;;  %4767 = vmatpush.bf16.msrb.mxu1 %v8337_v10  ;;  %v8465_v33 = vor.u32 %v9497_v3, %v8464_v42  ;;  %v8069_v51 = vor.u32 %v9395_v1, %v8066_v13  ;;  %v9423_v10 = vld [vmem:[#allocation9 + $0x3c4] sm:$0xf]  ;;  %v8034_v41 = vld [vmem:[#allocation9 + $0x2b0] sm:$0xf0]  ;;  %v7893_v1 = vor.u32 %v9351_v23, %v7890_v49 }
 0x23f   : > { %v9387_v3 = vld [vmem:[#allocation9 + $0x2a4] sm:$0xf]  ;;  %v8162_v50 = vld [vmem:[#allocation9 + $0x3b0] sm:$0xf0] }
 0x240   : > { %4754 = vmatmul.bf16.vlgmr.msrb.gmra.mxu0 %v11098_v40  ;;  %v9315_v13 = vld [vmem:[#allocation9 + $0x64] sm:$0xf]  ;;  %v8037_v26 = vor.u32 %v9387_v3, %v8034_v41  ;;  %v8165_v44 = vor.u32 %v9419_v30, %v8162_v50  ;;  %v8018_v19 = vld [vmem:[#allocation9 + $0x290] sm:$0xf0] }
 0x241   : > { %4802 = vmatpush.bf16.msra.mxu0 %v7813_v4  ;;  %4780 = vmatpush.bf16.msrb.mxu2 %v8481_v2  ;;  %v8178_v4 = vld [vmem:[#allocation9 + $0x3d0] sm:$0xf0]  ;;  %v9319_v2 = vld [vmem:[#allocation9 + $0x84] sm:$0xf]  ;;  %v11117_v49 = vpop.f32.mrf.mxu3 }
 0x242   : > { %4816 = vmatpush.bf16.msra.mxu1 %v7941_v60  ;;  %4794 = vmatpush.bf16.msrb.mxu3 %v8609_v22  ;;  %v7909_v60 = vor.u32 %v9355_v36, %v7906_v61  ;;  %v11110_v22 = vpack.c.bf16 %v1003_v18, %v995_v48  ;;  %v8181_v42 = vor.u32 %v9423_v10, %v8178_v4  ;;  %v9383_v35 = vld [vmem:[#allocation9 + $0x284] sm:$0xf]  ;;  %v8146_v36 = vld [vmem:[#allocation9 + $0x390] sm:$0xf0]  ;;  %v11115_v4 = vpop.f32.mrf.mxu2 }
 0x243   : > { %4768 = vmatmul.bf16.vlgmr.msrb.gmra.mxu1 %v11100_v27  ;;  %v7765_v14 = vor.u32 %v9319_v2, %v7762_v9  ;;  %v3265_v61 = vpop.f32.mrf.mxu1  ;;  %v9311_v18 = vld [vmem:[#allocation9 + $0x44] sm:$0xf]  ;;  %v8021_v32 = vor.u32 %v9383_v35, %v8018_v19  ;;  %v7858_v10 = vld [vmem:[#allocation9 + $0x150] sm:$0xf0] }
 0x244   : > { %v9379_v2 = vld [vmem:[#allocation9 + $0x264] sm:$0xf]  ;;  %v8130_v23 = vld [vmem:[#allocation9 + $0x370] sm:$0xf0] }
 0x245   : > { %4803 = vmatpush.bf16.msra.mxu0 %v7797_v24  ;;  %4781 = vmatpush.bf16.msrb.mxu2 %v8465_v33  ;;  %v7746_v24 = vld [vmem:[#allocation9 + $0x70] sm:$0xf0]  ;;  %v3251_v33 = vpop.f32.mrf.mxu0  ;;  %v9307_v3 = vld [vmem:[#allocation9 + $0x24] sm:$0xf] }
 0x246   : > { %4817 = vmatpush.bf16.msra.mxu1 %v7925_v25  ;;  %4795 = vmatpush.bf16.msrb.mxu3 %v8593_v46  ;;  %v7874_v25 = vld [vmem:[#allocation9 + $0x170] sm:$0xf0]  ;;  %v3252_v20 = vadd.f32 %v3251_v33, %v11092_v56  ;;  %v7749_v46 = vor.u32 %v9315_v13, %v7746_v24  ;;  %v9339_v30 = vld [vmem:[#allocation9 + $0x124] sm:$0xf] }
 0x247   : > { %v7877_v48 = vor.u32 %v9347_v62, %v7874_v25  ;;  %v8002_v56 = vld [vmem:[#allocation9 + $0x270] sm:$0xf0]  ;;  %v9375_v13 = vld [vmem:[#allocation9 + $0x244] sm:$0xf] }
 0x248   : > { %4782 = vmatmul.bf16.vlgmr.msrb.gmra.mxu2 %v11108_v21  ;;  %v3266_v28 = vadd.f32 %v3265_v61, %v3252_v20  ;;  %v7714_v41 = vld [vmem:[#allocation9 + $0x30] sm:$0xf0]  ;;  %v9407_v62 = vld [vmem:[#allocation9 + $0x344] sm:$0xf] }
 0x249   : > { %4830 = vmatpush.bf16.msra.mxu2 %v8069_v51  ;;  %4804 = vmatpush.bf16.msra.mxu0 %v7781_v45  ;;  %v9415_v51 = vld [vmem:[#allocation9 + $0x384] sm:$0xf]  ;;  %v7842_v50 = vld [vmem:[#allocation9 + $0x130] sm:$0xf0] }
 0x24a   : > { %4844 = vmatpush.bf16.msra.mxu3 %v8197_v52  ;;  %4818 = vmatpush.bf16.msra.mxu1 %v7909_v60  ;;  %v7730_v52 = vld [vmem:[#allocation9 + $0x50] sm:$0xf0]  ;;  %v9343_v45 = vld [vmem:[#allocation9 + $0x144] sm:$0xf]  ;;  %v8149_v60 = vor.u32 %v9415_v51, %v8146_v36 }
 0x24b   : > { %4796 = vmatmul.bf16.vlgmr.msrb.gmra.mxu3 %v11110_v22  ;;  %v7733_v9 = vor.u32 %v9311_v18, %v7730_v52  ;;  %v7986_v24 = vld [vmem:[#allocation9 + $0x250] sm:$0xf0]  ;;  %v9303_v33 = vld [vmem:[#allocation9 + $0x4] sm:$0xf] }
 0x24c   : > { %v8114_v25 = vld [vmem:[#allocation9 + $0x350] sm:$0xf0]  ;;  %v9335_v19 = vld [vmem:[#allocation9 + $0x104] sm:$0xf] }
 0x24d   : > { %4831 = vmatpush.bf16.msra.mxu2 %v8053_v31  ;;  %4805 = vmatpush.bf16.msra.mxu0 %v7765_v14  ;;  %v9411_v31 = vld [vmem:[#allocation9 + $0x364] sm:$0xf]  ;;  %v8005_v14 = vor.u32 %v9379_v2, %v8002_v56  ;;  %v7698_v35 = vld [vmem:[#allocation9 + $0x10] sm:$0xf0]  ;;  %v8117_v18 = vor.u32 %v9407_v62, %v8114_v25 }
 0x24e   : > { %4845 = vmatpush.bf16.msra.mxu3 %v8181_v42  ;;  %4819 = vmatpush.bf16.msra.mxu1 %v7893_v1  ;;  %v7861_v42 = vor.u32 %v9343_v45, %v7858_v10  ;;  %v8133_v1 = vor.u32 %v9411_v31, %v8130_v23  ;;  %v7826_v20 = vld [vmem:[#allocation9 + $0x110] sm:$0xf0]  ;;  %v9459_v51 = vld [vmem:[#allocation9 + $0x4e4] sm:$0xf] }
 0x24f   : > { %v8322_v36 = vld [vmem:[#allocation9 + $0x4f0] sm:$0xf0]  ;;  %v9491_v61 = vld [vmem:[#allocation9 + $0x5e4] sm:$0xf]  ;;  %v7829_v31 = vor.u32 %v9335_v19, %v7826_v20 }
 0x250   : > { %v8450_v52 = vld [vmem:[#allocation9 + $0x5f0] sm:$0xf0]  ;;  %v9403_v2 = vld [vmem:[#allocation9 + $0x324] sm:$0xf]  ;;  %v8325_v23 = vor.u32 %v9459_v51, %v8322_v36 }
 0x251   : > { %4832 = vmatpush.bf16.msra.mxu2 %v8037_v26  ;;  %4806 = vmatpush.bf16.msra.mxu0 %v7749_v46  ;;  %v7717_v26 = vor.u32 %v9307_v3, %v7714_v41  ;;  %v7989_v46 = vor.u32 %v9375_v13, %v7986_v24  ;;  %v7970_v45 = vld [vmem:[#allocation9 + $0x230] sm:$0xf0]  ;;  %v8453_v41 = vor.u32 %v9491_v61, %v8450_v52  ;;  %v9523_v25 = vld [vmem:[#allocation9 + $0x6e4] sm:$0xf] }
 0x252   : > { %4846 = vmatpush.bf16.msra.mxu3 %v8165_v44  ;;  %4820 = vmatpush.bf16.msra.mxu1 %v7877_v48  ;;  %v7845_v44 = vor.u32 %v9339_v30, %v7842_v50  ;;  %v3279_v48 = vpop.f32.mrf.mxu2  ;;  %v8098_v56 = vld [vmem:[#allocation9 + $0x330] sm:$0xf0]  ;;  %v9487_v50 = vld [vmem:[#allocation9 + $0x5c4] sm:$0xf] }
 0x253   : > { %v3280_v10 = vadd.f32 %v3279_v48, %v3266_v28  ;;  %v8306_v30 = vld [vmem:[#allocation9 + $0x4d0] sm:$0xf0]  ;;  %v8101_v13 = vor.u32 %v9403_v2, %v8098_v56  ;;  %v9367_v28 = vld [vmem:[#allocation9 + $0x204] sm:$0xf]  ;;  %v11125_v2 = vpop.f32.mrf.mxu1 }
 0x254   : > { %v7954_v24 = vld [vmem:[#allocation9 + $0x210] sm:$0xf0]  ;;  %v9451_v51 = vld [vmem:[#allocation9 + $0x4a4] sm:$0xf] }
 0x255   : > { %4833 = vmatpush.bf16.msra.mxu2 %v8021_v32  ;;  %4807 = vmatpush.bf16.msra.mxu0 %v7733_v9  ;;  %v9371_v32 = vld [vmem:[#allocation9 + $0x224] sm:$0xf]  ;;  %v3293_v9 = vpop.f32.mrf.mxu3  ;;  %v8082_v62 = vld [vmem:[#allocation9 + $0x310] sm:$0xf0] }
 0x256   : > { %4847 = vmatpush.bf16.msra.mxu3 %v8149_v60  ;;  %4821 = vmatpush.bf16.msra.mxu1 %v7861_v42  ;;  %v7701_v60 = vor.u32 %v9303_v33, %v7698_v35  ;;  %v9455_v42 = vld [vmem:[#allocation9 + $0x4c4] sm:$0xf]  ;;  %v11119_v3 = vadd.f32 %v3293_v9, %v3280_v10  ;;  %v8578_v33 = vld [vmem:[#allocation9 + $0x6f0] sm:$0xf0] }
 0x257   : > { %v9555_v35 = vld [vmem:[#allocation9 + $0x7e4] sm:$0xf]  ;;  %v8706_v19 = vld [vmem:[#allocation9 + $0x7f0] sm:$0xf0]  ;;  %v8581_v48 = vor.u32 %v9523_v25, %v8578_v33 }
 0x258   : > { %11384 = vst [vmem:[#allocation24_spill] sm:$0xff] %v11119_v3  ;;  %v8290_v36 = vld [vmem:[#allocation9 + $0x4b0] sm:$0xf0]  ;;  %v9519_v10 = vld [vmem:[#allocation9 + $0x6c4] sm:$0xf] }
 0x259   : > { %4834 = vmatpush.bf16.msra.mxu2 %v8005_v14  ;;  %4808 = vmatpush.bf16.msra.mxu0 %v7717_v26  ;;  %v7973_v14 = vor.u32 %v9371_v32, %v7970_v45  ;;  %v9399_v26 = vld [vmem:[#allocation9 + $0x304] sm:$0xf]  ;;  %v8418_v52 = vld [vmem:[#allocation9 + $0x5b0] sm:$0xf0]  ;;  %v11122_v32 = vpop.f32.mrf.mxu0  ;;  %v8709_v45 = vor.u32 %v9555_v35, %v8706_v19  ;;  %v8293_v56 = vor.u32 %v9451_v51, %v8290_v36 }
 0x25a   : > { %4848 = vmatpush.bf16.msra.mxu3 %v8133_v1  ;;  %4822 = vmatpush.bf16.msra.mxu1 %v7845_v44  ;;  %v8434_v1 = vld [vmem:[#allocation9 + $0x5d0] sm:$0xf0]  ;;  %v8309_v44 = vor.u32 %v9455_v42, %v8306_v30  ;;  %v8085_v61 = vor.u32 %v9399_v26, %v8082_v62  ;;  %v9551_v9 = vld [vmem:[#allocation9 + $0x7c4] sm:$0xf] }
 0x25b   : > { %v8437_v20 = vor.u32 %v9487_v50, %v8434_v1  ;;  %v9447_v42 = vld [vmem:[#allocation9 + $0x484] sm:$0xf]  ;;  %v8402_v50 = vld [vmem:[#allocation9 + $0x590] sm:$0xf0] }
 0x25c   : > { %v9479_v30 = vld [vmem:[#allocation9 + $0x584] sm:$0xf]  ;;  %v8674_v62 = vld [vmem:[#allocation9 + $0x7b0] sm:$0xf0] }
 0x25d   : > { %4835 = vmatpush.bf16.msra.mxu2 %v7989_v46  ;;  %4809 = vmatpush.bf16.msra.mxu0 %v7701_v60  ;;  %v7957_v46 = vor.u32 %v9367_v28, %v7954_v24  ;;  %v8562_v60 = vld [vmem:[#allocation9 + $0x6d0] sm:$0xf0]  ;;  %v9547_v26 = vld [vmem:[#allocation9 + $0x7a4] sm:$0xf]  ;;  %v8405_v25 = vor.u32 %v9479_v30, %v8402_v50 }
 0x25e   : > { %4849 = vmatpush.bf16.msra.mxu3 %v8117_v18  ;;  %4823 = vmatpush.bf16.msra.mxu1 %v7829_v31  ;;  %v9483_v18 = vld [vmem:[#allocation9 + $0x5a4] sm:$0xf]  ;;  %v8690_v31 = vld [vmem:[#allocation9 + $0x7d0] sm:$0xf0]  ;;  %v8677_v51 = vor.u32 %v9547_v26, %v8674_v62 }
 0x25f   : > { %v8693_v1 = vor.u32 %v9551_v9, %v8690_v31  ;;  %v8546_v28 = vld [vmem:[#allocation9 + $0x6b0] sm:$0xf0]  ;;  %v9443_v33 = vld [vmem:[#allocation9 + $0x464] sm:$0xf] }
 0x260   : > { %4810 = vmatmul.bf16.vlgmr.msra.gmra.mxu0 %v11061_v29  ;;  %v9475_v19 = vld [vmem:[#allocation9 + $0x564] sm:$0xf]  ;;  %v8242_v9 = vld [vmem:[#allocation9 + $0x450] sm:$0xf0] }
 0x261   : > { %4858 = vmatpush.bf16.msrb.mxu0 %v8325_v23  ;;  %4836 = vmatpush.bf16.msra.mxu2 %v7973_v14  ;;  %v8421_v23 = vor.u32 %v9483_v18, %v8418_v52  ;;  %v8565_v14 = vor.u32 %v9519_v10, %v8562_v60  ;;  %v9511_v36 = vld [vmem:[#allocation9 + $0x684] sm:$0xf]  ;;  %v8514_v50 = vld [vmem:[#allocation9 + $0x670] sm:$0xf0] }
 0x262   : > { %4872 = vmatpush.bf16.msrb.mxu1 %v8453_v41  ;;  %4850 = vmatpush.bf16.msra.mxu3 %v8101_v13  ;;  %v8274_v41 = vld [vmem:[#allocation9 + $0x490] sm:$0xf0]  ;;  %v9515_v13 = vld [vmem:[#allocation9 + $0x6a4] sm:$0xf] }
 0x263   : > { %4824 = vmatmul.bf16.vlgmr.msra.gmra.mxu1 %v11063_v54  ;;  %v8277_v24 = vor.u32 %v9447_v42, %v8274_v41  ;;  %v8549_v35 = vor.u32 %v9515_v13, %v8546_v28  ;;  %v9543_v52 = vld [vmem:[#allocation9 + $0x784] sm:$0xf]  ;;  %v8370_v42 = vld [vmem:[#allocation9 + $0x550] sm:$0xf0]  ;;  %v11129_v41 = vpop.f32.mrf.mxu2 }
 0x264   : > { %v9507_v30 = vld [vmem:[#allocation9 + $0x664] sm:$0xf]  ;;  %v8642_v28 = vld [vmem:[#allocation9 + $0x770] sm:$0xf0] }
 0x265   : > { %4859 = vmatpush.bf16.msrb.mxu0 %v8309_v44  ;;  %4837 = vmatpush.bf16.msra.mxu2 %v7957_v46  ;;  %v8258_v44 = vld [vmem:[#allocation9 + $0x470] sm:$0xf0]  ;;  %v3307_v46 = vpop.f32.mrf.mxu0  ;;  %v9539_v13 = vld [vmem:[#allocation9 + $0x764] sm:$0xf] }
 0x266   : > { %4873 = vmatpush.bf16.msrb.mxu1 %v8437_v20  ;;  %4851 = vmatpush.bf16.msra.mxu3 %v8085_v61  ;;  %v8386_v20 = vld [vmem:[#allocation9 + $0x570] sm:$0xf0]  ;;  %v8261_v18 = vor.u32 %v9443_v33, %v8258_v44  ;;  %v9435_v62 = vld [vmem:[#allocation9 + $0x424] sm:$0xf]  ;;  %v8517_v33 = vor.u32 %v9507_v30, %v8514_v50  ;;  %v9366_v30 = vld [vmem:[#allocation9 + $0x1f4] sm:$0xf0] }
 0x267   : > { %v8530_v61 = vld [vmem:[#allocation9 + $0x690] sm:$0xf0]  ;;  %v8389_v60 = vor.u32 %v9475_v19, %v8386_v20  ;;  %v9467_v44 = vld [vmem:[#allocation9 + $0x524] sm:$0xf]  ;;  %v8645_v19 = vor.u32 %v9539_v13, %v8642_v28 }
 0x268   : > { %4838 = vmatmul.bf16.vlgmr.msra.gmra.mxu2 %v11071_v57  ;;  %v8533_v31 = vor.u32 %v9511_v36, %v8530_v61  ;;  %v9503_v20 = vld [vmem:[#allocation9 + $0x644] sm:$0xf]  ;;  %v8626_v61 = vld [vmem:[#allocation9 + $0x750] sm:$0xf0] }
 0x269   : > { %4886 = vmatpush.bf16.msrb.mxu2 %v8581_v48  ;;  %4860 = vmatpush.bf16.msrb.mxu0 %v8293_v56  ;;  %v3321_v48 = vpop.f32.mrf.mxu1  ;;  %v9439_v56 = vld [vmem:[#allocation9 + $0x444] sm:$0xf] }
 0x26a   : > { %4900 = vmatpush.bf16.msrb.mxu3 %v8709_v45  ;;  %4874 = vmatpush.bf16.msrb.mxu1 %v8421_v23  ;;  %v8658_v45 = vld [vmem:[#allocation9 + $0x790] sm:$0xf0]  ;;  %v3322_v10 = vadd.f32 %v3321_v48, %v3307_v46  ;;  %v9471_v23 = vld [vmem:[#allocation9 + $0x544] sm:$0xf] }
 0x26b   : > { %4852 = vmatmul.bf16.vlgmr.msra.gmra.mxu3 %v11073_v63  ;;  %v8373_v26 = vor.u32 %v9471_v23, %v8370_v42  ;;  %v8498_v46 = vld [vmem:[#allocation9 + $0x650] sm:$0xf0]  ;;  %v9535_v36 = vld [vmem:[#allocation9 + $0x744] sm:$0xf]  ;;  %v7944_v23 = vld [vmem:[#allocation9 + $0x1e8] sm:$0xf]  ;;  %v3335_v42 = vpop.f32.mrf.mxu2 }
 0x26c   : > { %v9431_v48 = vld [vmem:[#allocation9 + $0x404] sm:$0xf]  ;;  %v3336_v13 = vadd.f32 %v3335_v42, %v3322_v10  ;;  %v8072_v42 = vld [vmem:[#allocation9 + $0x2e8] sm:$0xf] }
 0x26d   : > { %4887 = vmatpush.bf16.msrb.mxu2 %v8565_v14  ;;  %4861 = vmatpush.bf16.msrb.mxu0 %v8277_v24  ;;  %v8661_v14 = vor.u32 %v9543_v52, %v8658_v45  ;;  %v11131_v24 = vpop.f32.mrf.mxu3  ;;  %v8210_v52 = vld [vmem:[#allocation9 + $0x410] sm:$0xf0]  ;;  %v9463_v45 = vld [vmem:[#allocation9 + $0x504] sm:$0xf] }
 0x26e   : > { %4901 = vmatpush.bf16.msrb.mxu3 %v8693_v1  ;;  %4875 = vmatpush.bf16.msrb.mxu1 %v8405_v25  ;;  %v8245_v1 = vor.u32 %v9439_v56, %v8242_v9  ;;  %11385 = vst [vmem:[#allocation25_spill] sm:$0xff] %v11131_v24  ;;  %v8226_v25 = vld [vmem:[#allocation9 + $0x430] sm:$0xf0]  ;;  %v8501_v56 = vor.u32 %v9503_v20, %v8498_v46  ;;  %v7816_v9 = vld [vmem:[#allocation9 + $0xe8] sm:$0xf] }
 0x26f   : > { %v9499_v50 = vld [vmem:[#allocation9 + $0x624] sm:$0xf]  ;;  %v8213_v28 = vor.u32 %v9431_v48, %v8210_v52  ;;  %v7945_v46 = vor.u32 %v9366_v30, %v7944_v23  ;;  %v9330_v24 = vld [vmem:[#allocation9 + $0xd4] sm:$0xf0]  ;;  %v8594_v52 = vld [vmem:[#allocation9 + $0x710] sm:$0xf0] }
 0x270   : > { %v9495_v10 = vld [vmem:[#allocation9 + $0x604] sm:$0xf]  ;;  %v7784_v23 = vld [vmem:[#allocation9 + $0xa8] sm:$0xf]  ;;  %v9326_v30 = vld [vmem:[#allocation9 + $0xb4] sm:$0xf0] }
 0x271   : > { %4888 = vmatpush.bf16.msrb.mxu2 %v8549_v35  ;;  %4862 = vmatpush.bf16.msrb.mxu0 %v8261_v18  ;;  %v8354_v35 = vld [vmem:[#allocation9 + $0x530] sm:$0xf0]  ;;  %v9527_v48 = vld [vmem:[#allocation9 + $0x704] sm:$0xf] }
 0x272   : > { %4902 = vmatpush.bf16.msrb.mxu3 %v8677_v51  ;;  %4876 = vmatpush.bf16.msrb.mxu1 %v8389_v60  ;;  %v8229_v51 = vor.u32 %v9435_v62, %v8226_v25  ;;  %v8357_v18 = vor.u32 %v9467_v44, %v8354_v35  ;;  %v8338_v60 = vld [vmem:[#allocation9 + $0x510] sm:$0xf0]  ;;  %v9531_v62 = vld [vmem:[#allocation9 + $0x724] sm:$0xf] }
 0x273   : > { %v8341_v44 = vor.u32 %v9463_v45, %v8338_v60  ;;  %v8200_v60 = vld [vmem:[#allocation9 + $0x3e8] sm:$0xf] }
 0x275   : > { %4889 = vmatpush.bf16.msrb.mxu2 %v8533_v31  ;;  %4863 = vmatpush.bf16.msrb.mxu0 %v8245_v1  ;;  %v9334_v31 = vld [vmem:[#allocation9 + $0xf4] sm:$0xf0]  ;;  %v8482_v1 = vld [vmem:[#allocation9 + $0x630] sm:$0xf0]  ;;  %v3349_v25 = vpop.f32.mrf.mxu3 }
 0x276   : > { %4903 = vmatpush.bf16.msrb.mxu3 %v8661_v14  ;;  %4877 = vmatpush.bf16.msrb.mxu1 %v8373_v26  ;;  %v8629_v14 = vor.u32 %v9535_v36, %v8626_v61  ;;  %v8610_v26 = vld [vmem:[#allocation9 + $0x730] sm:$0xf0]  ;;  %v7817_v35 = vor.u32 %v9334_v31, %v7816_v9  ;;  %v11133_v20 = vadd.f32 %v3349_v25, %v3336_v13  ;;  %v7928_v36 = vld [vmem:[#allocation9 + $0x1c8] sm:$0xf]  ;;  %v9362_v61 = vld [vmem:[#allocation9 + $0x1d4] sm:$0xf0] }
 0x277   : > { %v8613_v3 = vor.u32 %v9531_v62, %v8610_v26  ;;  %v9430_v9 = vld [vmem:[#allocation9 + $0x3f4] sm:$0xf0]  ;;  %v8056_v62 = vld [vmem:[#allocation9 + $0x2c8] sm:$0xf]  ;;  %v7785_v25 = vor.u32 %v9326_v30, %v7784_v23 }
 0x278   : > { %v9358_v13 = vld [vmem:[#allocation9 + $0x1b4] sm:$0xf0]  ;;  %v7880_v23 = vld [vmem:[#allocation9 + $0x168] sm:$0xf] }
 0x279   : > { %4890 = vmatpush.bf16.msrb.mxu2 %v8517_v33  ;;  %4864 = vmatpush.bf16.msrb.mxu0 %v8229_v51  ;;  %v7800_v33 = vld [vmem:[#allocation9 + $0xc8] sm:$0xf]  ;;  %v8466_v51 = vld [vmem:[#allocation9 + $0x610] sm:$0xf0]  ;;  %v9394_v26 = vld [vmem:[#allocation9 + $0x2d4] sm:$0xf0] }
 0x27a   : > { %4904 = vmatpush.bf16.msrb.mxu3 %v8645_v19  ;;  %4878 = vmatpush.bf16.msrb.mxu1 %v8357_v18  ;;  %v8485_v19 = vor.u32 %v9499_v50, %v8482_v1  ;;  %v9398_v18 = vld [vmem:[#allocation9 + $0x2f4] sm:$0xf0]  ;;  %v7801_v45 = vor.u32 %v9330_v24, %v7800_v33  ;;  %v8469_v31 = vor.u32 %v9495_v10, %v8466_v51  ;;  %v7912_v1 = vld [vmem:[#allocation9 + $0x1a8] sm:$0xf]  ;;  %v11139_v33 = vpop.f32.mrf.mxu1 }
 0x27b   : > { %v8073_v50 = vor.u32 %v9398_v18, %v8072_v42  ;;  %v8201_v24 = vor.u32 %v9430_v9, %v8200_v60  ;;  %11387 = vst [vmem:[#allocation27_spill] sm:$0xff] %v11139_v33  ;;  %v9354_v10 = vld [vmem:[#allocation9 + $0x194] sm:$0xf0]  ;;  %v8168_v18 = vld [vmem:[#allocation9 + $0x3a8] sm:$0xf] }
 0x27c   : > { %v7752_v9 = vld [vmem:[#allocation9 + $0x68] sm:$0xf]  ;;  %v9350_v30 = vld [vmem:[#allocation9 + $0x174] sm:$0xf0] }
 0x27d   : > { %4891 = vmatpush.bf16.msrb.mxu2 %v8501_v56  ;;  %4865 = vmatpush.bf16.msrb.mxu0 %v8213_v28  ;;  %v7929_v56 = vor.u32 %v9362_v61, %v7928_v36  ;;  %v11136_v28 = vpop.f32.mrf.mxu0  ;;  %v8057_v36 = vor.u32 %v9394_v26, %v8056_v62  ;;  %v7896_v61 = vld [vmem:[#allocation9 + $0x188] sm:$0xf]  ;;  %v9458_v33 = vld [vmem:[#allocation9 + $0x4d4] sm:$0xf0] }
 0x27e   : > { %4905 = vmatpush.bf16.msrb.mxu3 %v8629_v14  ;;  %4879 = vmatpush.bf16.msrb.mxu1 %v8341_v44  ;;  %v8597_v14 = vor.u32 %v9527_v48, %v8594_v52  ;;  %11386 = vst [vmem:[#allocation26_spill] sm:$0xff] %v11136_v28  ;;  %v8184_v44 = vld [vmem:[#allocation9 + $0x3c8] sm:$0xf]  ;;  %v9390_v52 = vld [vmem:[#allocation9 + $0x2b4] sm:$0xf0]  ;;  %v7897_v60 = vor.u32 %v9354_v10, %v7896_v61 }
 0x27f   : > { %v8040_v48 = vld [vmem:[#allocation9 + $0x2a8] sm:$0xf]  ;;  %v9346_v10 = vld [vmem:[#allocation9 + $0x154] sm:$0xf0] }
 0x280   : > { %4866 = vmatmul.bf16.vlgmr.msrb.gmra.mxu0 %v11098_v40  ;;  %v8152_v26 = vld [vmem:[#allocation9 + $0x388] sm:$0xf] }
 0x281   : > { %4914 = vmatpush.bf16.msra.mxu0 %v7817_v35  ;;  %4892 = vmatpush.bf16.msrb.mxu2 %v8485_v19  ;;  %v9426_v35 = vld [vmem:[#allocation9 + $0x3d4] sm:$0xf0]  ;;  %v7864_v61 = vld [vmem:[#allocation9 + $0x148] sm:$0xf] }
 0x282   : > { %4928 = vmatpush.bf16.msra.mxu1 %v7945_v46  ;;  %4906 = vmatpush.bf16.msrb.mxu3 %v8613_v3  ;;  %v7913_v3 = vor.u32 %v9358_v13, %v7912_v1  ;;  %v7768_v46 = vld [vmem:[#allocation9 + $0x88] sm:$0xf]  ;;  %v9322_v19 = vld [vmem:[#allocation9 + $0x94] sm:$0xf0]  ;;  %v8185_v51 = vor.u32 %v9426_v35, %v8184_v44  ;;  %v3377_v44 = vpop.f32.mrf.mxu1  ;;  %v7881_v35 = vor.u32 %v9350_v30, %v7880_v23 }
 0x283   : > { %4880 = vmatmul.bf16.vlgmr.msrb.gmra.mxu1 %v11100_v27  ;;  %v7769_v42 = vor.u32 %v9322_v19, %v7768_v46  ;;  %v8024_v1 = vld [vmem:[#allocation9 + $0x288] sm:$0xf]  ;;  %v9386_v13 = vld [vmem:[#allocation9 + $0x294] sm:$0xf0] }
 0x284   : > { %v9314_v46 = vld [vmem:[#allocation9 + $0x54] sm:$0xf0]  ;;  %v7848_v30 = vld [vmem:[#allocation9 + $0x128] sm:$0xf] }
 0x285   : > { %4915 = vmatpush.bf16.msra.mxu0 %v7801_v45  ;;  %4893 = vmatpush.bf16.msrb.mxu2 %v8469_v31  ;;  %v9422_v45 = vld [vmem:[#allocation9 + $0x3b4] sm:$0xf0]  ;;  %v8041_v31 = vor.u32 %v9390_v52, %v8040_v48  ;;  %v8008_v52 = vld [vmem:[#allocation9 + $0x268] sm:$0xf] }
 0x286   : > { %4929 = vmatpush.bf16.msra.mxu1 %v7929_v56  ;;  %4907 = vmatpush.bf16.msrb.mxu3 %v8597_v14  ;;  %v9318_v56 = vld [vmem:[#allocation9 + $0x74] sm:$0xf0]  ;;  %v3363_v14 = vpop.f32.mrf.mxu0 }
 0x287   : > { %v7753_v62 = vor.u32 %v9318_v56, %v7752_v9  ;;  %v11146_v9 = vpop.f32.mrf.mxu3  ;;  %v7720_v56 = vld [vmem:[#allocation9 + $0x28] sm:$0xf]  ;;  %v9310_v23 = vld [vmem:[#allocation9 + $0x34] sm:$0xf0] }
 0x288   : > { %4894 = vmatmul.bf16.vlgmr.msrb.gmra.mxu2 %v11108_v21  ;;  %11389 = vst [vmem:[#allocation29_spill] sm:$0xff] %v11146_v9  ;;  %v8104_v9 = vld [vmem:[#allocation9 + $0x328] sm:$0xf] }
 0x289   : > { %4942 = vmatpush.bf16.msra.mxu2 %v8073_v50  ;;  %4916 = vmatpush.bf16.msra.mxu0 %v7785_v25  ;;  %v8169_v50 = vor.u32 %v9422_v45, %v8168_v18  ;;  %v9418_v25 = vld [vmem:[#allocation9 + $0x394] sm:$0xf0]  ;;  %v8136_v18 = vld [vmem:[#allocation9 + $0x368] sm:$0xf] }
 0x28a   : > { %4956 = vmatpush.bf16.msra.mxu3 %v8201_v24  ;;  %4930 = vmatpush.bf16.msra.mxu1 %v7913_v3  ;;  %v3364_v24 = vadd.f32 %v3363_v14, %v11133_v20  ;;  %v7736_v3 = vld [vmem:[#allocation9 + $0x48] sm:$0xf]  ;;  %v8153_v48 = vor.u32 %v9418_v25, %v8152_v26  ;;  %v9382_v20 = vld [vmem:[#allocation9 + $0x274] sm:$0xf0] }
 0x28b   : > { %4908 = vmatmul.bf16.vlgmr.msrb.gmra.mxu3 %v11110_v22  ;;  %v9414_v45 = vld [vmem:[#allocation9 + $0x374] sm:$0xf0]  ;;  %v7704_v25 = vld [vmem:[#allocation9 + $0x8] sm:$0xf] }
 0x28c   : > { %v3378_v19 = vadd.f32 %v3377_v44, %v3364_v24  ;;  %v9342_v14 = vld [vmem:[#allocation9 + $0x134] sm:$0xf0]  ;;  %v7721_v24 = vor.u32 %v9310_v23, %v7720_v56 }
 0x28d   : > { %4943 = vmatpush.bf16.msra.mxu2 %v8057_v36  ;;  %4917 = vmatpush.bf16.msra.mxu0 %v7769_v42  ;;  %v8025_v36 = vor.u32 %v9386_v13, %v8024_v1  ;;  %v7737_v42 = vor.u32 %v9314_v46, %v7736_v3  ;;  %v8137_v1 = vor.u32 %v9414_v45, %v8136_v18  ;;  %v9378_v13 = vld [vmem:[#allocation9 + $0x254] sm:$0xf0]  ;;  %v7976_v45 = vld [vmem:[#allocation9 + $0x228] sm:$0xf] }
 0x28e   : > { %4957 = vmatpush.bf16.msra.mxu3 %v8185_v51  ;;  %4931 = vmatpush.bf16.msra.mxu1 %v7897_v60  ;;  %v11144_v51 = vpop.f32.mrf.mxu2  ;;  %v7865_v60 = vor.u32 %v9346_v10, %v7864_v61  ;;  %v9410_v26 = vld [vmem:[#allocation9 + $0x354] sm:$0xf0]  ;;  %v7849_v44 = vor.u32 %v9342_v14, %v7848_v30 }
 0x28f   : > { %11388 = vst [vmem:[#allocation28_spill] sm:$0xff] %v11144_v51  ;;  %v9306_v3 = vld [vmem:[#allocation9 + $0x14] sm:$0xf0]  ;;  %v3405_v30 = vpop.f32.mrf.mxu3 }
 0x290   : > { %v9338_v46 = vld [vmem:[#allocation9 + $0x114] sm:$0xf0]  ;;  %v7705_v23 = vor.u32 %v9306_v3, %v7704_v25  ;;  %v8088_v25 = vld [vmem:[#allocation9 + $0x308] sm:$0xf] }
 0x291   : > { %4944 = vmatpush.bf16.msra.mxu2 %v8041_v31  ;;  %4918 = vmatpush.bf16.msra.mxu0 %v7753_v62  ;;  %v8009_v31 = vor.u32 %v9382_v20, %v8008_v52  ;;  %v8120_v62 = vld [vmem:[#allocation9 + $0x348] sm:$0xf]  ;;  %v9462_v10 = vld [vmem:[#allocation9 + $0x4f4] sm:$0xf0] }
 0x292   : > { %4958 = vmatpush.bf16.msra.mxu3 %v8169_v50  ;;  %4932 = vmatpush.bf16.msra.mxu1 %v7881_v35  ;;  %v7992_v50 = vld [vmem:[#allocation9 + $0x248] sm:$0xf]  ;;  %v8121_v20 = vor.u32 %v9410_v26, %v8120_v62  ;;  %v9494_v18 = vld [vmem:[#allocation9 + $0x5f4] sm:$0xf0] }
 0x293   : > { %v7832_v35 = vld [vmem:[#allocation9 + $0x108] sm:$0xf]  ;;  %v7993_v61 = vor.u32 %v9378_v13, %v7992_v50  ;;  %v9490_v26 = vld [vmem:[#allocation9 + $0x5d4] sm:$0xf0] }
 0x294   : > { %v8456_v52 = vld [vmem:[#allocation9 + $0x5e8] sm:$0xf]  ;;  %v7833_v14 = vor.u32 %v9338_v46, %v7832_v35  ;;  %v9402_v3 = vld [vmem:[#allocation9 + $0x314] sm:$0xf0] }
 0x295   : > { %4945 = vmatpush.bf16.msra.mxu2 %v8025_v36  ;;  %4919 = vmatpush.bf16.msra.mxu0 %v7737_v42  ;;  %v8328_v36 = vld [vmem:[#allocation9 + $0x4e8] sm:$0xf]  ;;  %v9374_v42 = vld [vmem:[#allocation9 + $0x234] sm:$0xf0]  ;;  %v8457_v13 = vor.u32 %v9494_v18, %v8456_v52 }
 0x296   : > { %4959 = vmatpush.bf16.msra.mxu3 %v8153_v48  ;;  %4933 = vmatpush.bf16.msra.mxu1 %v7865_v60  ;;  %v3391_v48 = vpop.f32.mrf.mxu2  ;;  %v9406_v60 = vld [vmem:[#allocation9 + $0x334] sm:$0xf0]  ;;  %v8329_v51 = vor.u32 %v9462_v10, %v8328_v36  ;;  %v8440_v62 = vld [vmem:[#allocation9 + $0x5c8] sm:$0xf] }
 0x297   : > { %v3392_v56 = vadd.f32 %v3391_v48, %v3378_v19  ;;  %v8105_v28 = vor.u32 %v9406_v60, %v8104_v9  ;;  %v7960_v19 = vld [vmem:[#allocation9 + $0x208] sm:$0xf]  ;;  %v9558_v36 = vld [vmem:[#allocation9 + $0x7f4] sm:$0xf0]  ;;  %v8089_v9 = vor.u32 %v9402_v3, %v8088_v25 }
 0x298   : > { %v8584_v48 = vld [vmem:[#allocation9 + $0x6e8] sm:$0xf]  ;;  %v9454_v18 = vld [vmem:[#allocation9 + $0x4b4] sm:$0xf0] }
 0x299   : > { %4946 = vmatpush.bf16.msra.mxu2 %v8009_v31  ;;  %4920 = vmatpush.bf16.msra.mxu0 %v7721_v24  ;;  %v8312_v31 = vld [vmem:[#allocation9 + $0x4c8] sm:$0xf]  ;;  %v11148_v50 = vadd.f32 %v3405_v30, %v3392_v56  ;;  %v9370_v24 = vld [vmem:[#allocation9 + $0x214] sm:$0xf0] }
 0x29a   : > { %4960 = vmatpush.bf16.msra.mxu3 %v8137_v1  ;;  %4934 = vmatpush.bf16.msra.mxu1 %v7849_v44  ;;  %v7977_v1 = vor.u32 %v9374_v42, %v7976_v45  ;;  %v9526_v44 = vld [vmem:[#allocation9 + $0x6f4] sm:$0xf0]  ;;  %v8313_v35 = vor.u32 %v9458_v33, %v8312_v31  ;;  %v8712_v46 = vld [vmem:[#allocation9 + $0x7e8] sm:$0xf]  ;;  %v7961_v10 = vor.u32 %v9370_v24, %v7960_v19 }
 0x29b   : > { %11390 = vst [vmem:[#allocation30_spill] sm:$0xff] %v11148_v50  ;;  %v8296_v52 = vld [vmem:[#allocation9 + $0x4a8] sm:$0xf]  ;;  %v9486_v42 = vld [vmem:[#allocation9 + $0x5b4] sm:$0xf0]  ;;  %v8713_v56 = vor.u32 %v9558_v36, %v8712_v46 }
 0x29c   : > { %v8424_v45 = vld [vmem:[#allocation9 + $0x5a8] sm:$0xf]  ;;  %v9522_v33 = vld [vmem:[#allocation9 + $0x6d4] sm:$0xf0]  ;;  %v9456_v50 = vld [vmem:[#allocation9 + $0x4cc] sm:$0xf] }
 0x29d   : > { %4947 = vmatpush.bf16.msra.mxu2 %v7993_v61  ;;  %4921 = vmatpush.bf16.msra.mxu0 %v7705_v23  ;;  %v8441_v61 = vor.u32 %v9490_v26, %v8440_v62  ;;  %v8297_v23 = vor.u32 %v9454_v18, %v8296_v52  ;;  %v8696_v60 = vld [vmem:[#allocation9 + $0x7c8] sm:$0xf]  ;;  %v9554_v30 = vld [vmem:[#allocation9 + $0x7d4] sm:$0xf0] }
 0x29e   : > { %4961 = vmatpush.bf16.msra.mxu3 %v8121_v20  ;;  %4935 = vmatpush.bf16.msra.mxu1 %v7833_v14  ;;  %v8585_v20 = vor.u32 %v9526_v44, %v8584_v48  ;;  %v8425_v14 = vor.u32 %v9486_v42, %v8424_v45  ;;  %v8280_v31 = vld [vmem:[#allocation9 + $0x488] sm:$0xf]  ;;  %v9482_v62 = vld [vmem:[#allocation9 + $0x594] sm:$0xf0]  ;;  %v8697_v26 = vor.u32 %v9554_v30, %v8696_v60 }
 0x29f   : > { %v8552_v19 = vld [vmem:[#allocation9 + $0x6a8] sm:$0xf]  ;;  %v9518_v24 = vld [vmem:[#allocation9 + $0x6b4] sm:$0xf0] }
 0x2a0   : > { %4922 = vmatmul.bf16.vlgmr.msra.gmra.mxu0 %v11061_v29  ;;  %v8680_v3 = vld [vmem:[#allocation9 + $0x7a8] sm:$0xf]  ;;  %v9550_v48 = vld [vmem:[#allocation9 + $0x7b4] sm:$0xf0]  ;;  %v8553_v36 = vor.u32 %v9518_v24, %v8552_v19 }
 0x2a1   : > { %4970 = vmatpush.bf16.msrb.mxu0 %v8329_v51  ;;  %4948 = vmatpush.bf16.msra.mxu2 %v7977_v1  ;;  %v8568_v51 = vld [vmem:[#allocation9 + $0x6c8] sm:$0xf]  ;;  %v9446_v46 = vld [vmem:[#allocation9 + $0x474] sm:$0xf0]  ;;  %v8681_v52 = vor.u32 %v9550_v48, %v8680_v3 }
 0x2a2   : > { %4984 = vmatpush.bf16.msrb.mxu1 %v8457_v13  ;;  %4962 = vmatpush.bf16.msra.mxu3 %v8105_v28  ;;  %v9450_v28 = vld [vmem:[#allocation9 + $0x494] sm:$0xf0]  ;;  %v8569_v13 = vor.u32 %v9522_v33, %v8568_v51  ;;  %v8408_v1 = vld [vmem:[#allocation9 + $0x588] sm:$0xf] }
 0x2a3   : > { %4936 = vmatmul.bf16.vlgmr.msra.gmra.mxu1 %v11063_v54  ;;  %v8281_v25 = vor.u32 %v9450_v28, %v8280_v31  ;;  %v8409_v44 = vor.u32 %v9482_v62, %v8408_v1  ;;  %v8536_v18 = vld [vmem:[#allocation9 + $0x688] sm:$0xf]  ;;  %v9546_v42 = vld [vmem:[#allocation9 + $0x794] sm:$0xf0] }
 0x2a4   : > { %v8664_v45 = vld [vmem:[#allocation9 + $0x788] sm:$0xf]  ;;  %v9442_v33 = vld [vmem:[#allocation9 + $0x454] sm:$0xf0] }
 0x2a5   : > { %4971 = vmatpush.bf16.msrb.mxu0 %v8313_v35  ;;  %4949 = vmatpush.bf16.msra.mxu2 %v7961_v10  ;;  %v8264_v35 = vld [vmem:[#allocation9 + $0x468] sm:$0xf]  ;;  %v9478_v10 = vld [vmem:[#allocation9 + $0x574] sm:$0xf0] }
 0x2a6   : > { %4985 = vmatpush.bf16.msrb.mxu1 %v8441_v61  ;;  %4963 = vmatpush.bf16.msra.mxu3 %v8089_v9  ;;  %v8392_v61 = vld [vmem:[#allocation9 + $0x568] sm:$0xf]  ;;  %v9514_v9 = vld [vmem:[#allocation9 + $0x694] sm:$0xf0] }
 0x2a7   : > { %v8248_v51 = vld [vmem:[#allocation9 + $0x448] sm:$0xf]  ;;  %v9474_v30 = vld [vmem:[#allocation9 + $0x554] sm:$0xf0] }
 0x2a8   : > { %4950 = vmatmul.bf16.vlgmr.msra.gmra.mxu2 %v11071_v57  ;;  %v8376_v60 = vld [vmem:[#allocation9 + $0x548] sm:$0xf]  ;;  %v9510_v28 = vld [vmem:[#allocation9 + $0x674] sm:$0xf0] }
 0x2a9   : > { %4998 = vmatpush.bf16.msrb.mxu2 %v8585_v20  ;;  %4972 = vmatpush.bf16.msrb.mxu0 %v8297_v23  ;;  %v8265_v20 = vor.u32 %v9446_v46, %v8264_v35  ;;  %v8537_v23 = vor.u32 %v9514_v9, %v8536_v18  ;;  %v8520_v31 = vld [vmem:[#allocation9 + $0x668] sm:$0xf]  ;;  %v9542_v62 = vld [vmem:[#allocation9 + $0x774] sm:$0xf0] }
 0x2aa   : > { %5012 = vmatpush.bf16.msrb.mxu3 %v8713_v56  ;;  %4986 = vmatpush.bf16.msrb.mxu1 %v8425_v14  ;;  %v8393_v56 = vor.u32 %v9478_v10, %v8392_v61  ;;  %v8665_v14 = vor.u32 %v9546_v42, %v8664_v45  ;;  %v8648_v1 = vld [vmem:[#allocation9 + $0x768] sm:$0xf]  ;;  %v9438_v24 = vld [vmem:[#allocation9 + $0x434] sm:$0xf0] }
 0x2ab   : > { %4964 = vmatmul.bf16.vlgmr.msra.gmra.mxu3 %v11073_v63  ;;  %v8232_v19 = vld [vmem:[#allocation9 + $0x428] sm:$0xf]  ;;  %v9470_v48 = vld [vmem:[#allocation9 + $0x534] sm:$0xf0] }
 0x2ac   : > { %v8360_v3 = vld [vmem:[#allocation9 + $0x528] sm:$0xf]  ;;  %v9506_v46 = vld [vmem:[#allocation9 + $0x654] sm:$0xf0] }
 0x2ad   : > { %4999 = vmatpush.bf16.msrb.mxu2 %v8569_v13  ;;  %4973 = vmatpush.bf16.msrb.mxu0 %v8281_v25  ;;  %v8249_v13 = vor.u32 %v9442_v33, %v8248_v51  ;;  %v8521_v25 = vor.u32 %v9510_v28, %v8520_v31  ;;  %v8504_v35 = vld [vmem:[#allocation9 + $0x648] sm:$0xf]  ;;  %v9538_v10 = vld [vmem:[#allocation9 + $0x754] sm:$0xf0]  ;;  %v8361_v18 = vor.u32 %v9470_v48, %v8360_v3  ;;  %v7818_v51 = vld [vmem:[#allocation9 + $0xf8] sm:$0xf0] }
 0x2ae   : > { %5013 = vmatpush.bf16.msrb.mxu3 %v8697_v26  ;;  %4987 = vmatpush.bf16.msrb.mxu1 %v8409_v44  ;;  %v8377_v26 = vor.u32 %v9474_v30, %v8376_v60  ;;  %v8649_v44 = vor.u32 %v9542_v62, %v8648_v1  ;;  %v8632_v61 = vld [vmem:[#allocation9 + $0x748] sm:$0xf]  ;;  %v9434_v9 = vld [vmem:[#allocation9 + $0x414] sm:$0xf0]  ;;  %v8505_v42 = vor.u32 %v9506_v46, %v8504_v35  ;;  %v9364_v33 = vld [vmem:[#allocation9 + $0x1ec] sm:$0xf] }
 0x2af   : > { %v9466_v45 = vld [vmem:[#allocation9 + $0x514] sm:$0xf0]  ;;  %v7946_v60 = vld [vmem:[#allocation9 + $0x1f8] sm:$0xf0]  ;;  %v8488_v30 = vld [vmem:[#allocation9 + $0x628] sm:$0xf] }
 0x2b0   : > { %v8616_v28 = vld [vmem:[#allocation9 + $0x728] sm:$0xf]  ;;  %v9360_v3 = vld [vmem:[#allocation9 + $0x1cc] sm:$0xf]  ;;  %v7930_v48 = vld [vmem:[#allocation9 + $0x1d8] sm:$0xf0] }
 0x2b1   : > { %5000 = vmatpush.bf16.msrb.mxu2 %v8553_v36  ;;  %4974 = vmatpush.bf16.msrb.mxu0 %v8265_v20  ;;  %v8233_v36 = vor.u32 %v9438_v24, %v8232_v19  ;;  %v8344_v20 = vld [vmem:[#allocation9 + $0x508] sm:$0xf]  ;;  %v7949_v19 = vor.u32 %v9364_v33, %v7946_v60  ;;  %v9498_v46 = vld [vmem:[#allocation9 + $0x614] sm:$0xf0]  ;;  %v9356_v60 = vld [vmem:[#allocation9 + $0x1ac] sm:$0xf] }
 0x2b2   : > { %5014 = vmatpush.bf16.msrb.mxu3 %v8681_v52  ;;  %4988 = vmatpush.bf16.msrb.mxu1 %v8393_v56  ;;  %v8216_v52 = vld [vmem:[#allocation9 + $0x408] sm:$0xf]  ;;  %v9332_v56 = vld [vmem:[#allocation9 + $0xec] sm:$0xf]  ;;  %v8345_v1 = vor.u32 %v9466_v45, %v8344_v20  ;;  %v8202_v20 = vld [vmem:[#allocation9 + $0x3f8] sm:$0xf0]  ;;  %v7933_v45 = vor.u32 %v9360_v3, %v7930_v48 }
 0x2b3   : > { %v8217_v31 = vor.u32 %v9434_v9, %v8216_v52  ;;  %v7821_v62 = vor.u32 %v9332_v56, %v7818_v51  ;;  %v8472_v35 = vld [vmem:[#allocation9 + $0x608] sm:$0xf]  ;;  %v8074_v52 = vld [vmem:[#allocation9 + $0x2f8] sm:$0xf0]  ;;  %v9428_v9 = vld [vmem:[#allocation9 + $0x3ec] sm:$0xf] }
 0x2b4   : > { %v9324_v56 = vld [vmem:[#allocation9 + $0xac] sm:$0xf]  ;;  %v7786_v51 = vld [vmem:[#allocation9 + $0xb8] sm:$0xf0] }
 0x2b5   : > { %5001 = vmatpush.bf16.msrb.mxu2 %v8537_v23  ;;  %4975 = vmatpush.bf16.msrb.mxu0 %v8249_v13  ;;  %v8633_v23 = vor.u32 %v9538_v10, %v8632_v61  ;;  %v9534_v13 = vld [vmem:[#allocation9 + $0x734] sm:$0xf0]  ;;  %v8600_v61 = vld [vmem:[#allocation9 + $0x708] sm:$0xf]  ;;  %v9396_v10 = vld [vmem:[#allocation9 + $0x2ec] sm:$0xf] }
 0x2b6   : > { %5015 = vmatpush.bf16.msrb.mxu3 %v8665_v14  ;;  %4989 = vmatpush.bf16.msrb.mxu1 %v8377_v26  ;;  %v9502_v14 = vld [vmem:[#allocation9 + $0x634] sm:$0xf0]  ;;  %v9328_v26 = vld [vmem:[#allocation9 + $0xcc] sm:$0xf]  ;;  %v7898_v48 = vld [vmem:[#allocation9 + $0x198] sm:$0xf0] }
 0x2b7   : > { %v8489_v24 = vor.u32 %v9502_v14, %v8488_v30  ;;  %v7914_v30 = vld [vmem:[#allocation9 + $0x1b8] sm:$0xf0]  ;;  %v8205_v14 = vor.u32 %v9428_v9, %v8202_v20  ;;  %v9352_v3 = vld [vmem:[#allocation9 + $0x18c] sm:$0xf] }
 0x2b8   : > { %v9316_v9 = vld [vmem:[#allocation9 + $0x6c] sm:$0xf]  ;;  %v7754_v20 = vld [vmem:[#allocation9 + $0x78] sm:$0xf0] }
 0x2b9   : > { %5002 = vmatpush.bf16.msrb.mxu2 %v8521_v25  ;;  %4976 = vmatpush.bf16.msrb.mxu0 %v8233_v36  ;;  %v7802_v25 = vld [vmem:[#allocation9 + $0xd8] sm:$0xf0]  ;;  %v9530_v36 = vld [vmem:[#allocation9 + $0x714] sm:$0xf0] }
 0x2ba   : > { %5016 = vmatpush.bf16.msrb.mxu3 %v8649_v44  ;;  %4990 = vmatpush.bf16.msrb.mxu1 %v8361_v18  ;;  %v8617_v44 = vor.u32 %v9534_v13, %v8616_v28  ;;  %v7805_v18 = vor.u32 %v9328_v26, %v7802_v25  ;;  %v8601_v33 = vor.u32 %v9530_v36, %v8600_v61  ;;  %v8058_v28 = vld [vmem:[#allocation9 + $0x2d8] sm:$0xf0]  ;;  %v9420_v36 = vld [vmem:[#allocation9 + $0x3ac] sm:$0xf] }
 0x2bb   : > { %v7789_v13 = vor.u32 %v9324_v56, %v7786_v51  ;;  %v7917_v26 = vor.u32 %v9356_v60, %v7914_v30  ;;  %v7882_v56 = vld [vmem:[#allocation9 + $0x178] sm:$0xf0]  ;;  %v7757_v60 = vor.u32 %v9316_v9, %v7754_v20  ;;  %v9416_v30 = vld [vmem:[#allocation9 + $0x38c] sm:$0xf] }
 0x2bc   : > { %v9340_v9 = vld [vmem:[#allocation9 + $0x12c] sm:$0xf]  ;;  %v7850_v20 = vld [vmem:[#allocation9 + $0x138] sm:$0xf0] }
 0x2bd   : > { %5003 = vmatpush.bf16.msrb.mxu2 %v8505_v42  ;;  %4977 = vmatpush.bf16.msrb.mxu0 %v8217_v31  ;;  %v8473_v42 = vor.u32 %v9498_v46, %v8472_v35  ;;  %v9392_v31 = vld [vmem:[#allocation9 + $0x2cc] sm:$0xf]  ;;  %v8042_v46 = vld [vmem:[#allocation9 + $0x2b8] sm:$0xf0] }
 0x2be   : > { %5017 = vmatpush.bf16.msrb.mxu3 %v8633_v23  ;;  %4991 = vmatpush.bf16.msrb.mxu1 %v8345_v1  ;;  %v8077_v23 = vor.u32 %v9396_v10, %v8074_v52  ;;  %v9424_v1 = vld [vmem:[#allocation9 + $0x3cc] sm:$0xf]  ;;  %v8061_v25 = vor.u32 %v9392_v31, %v8058_v28  ;;  %v8170_v10 = vld [vmem:[#allocation9 + $0x3b8] sm:$0xf0]  ;;  %v11157_v52 = vpop.f32.mrf.mxu0 }
 0x2bf   : > { %v9388_v35 = vld [vmem:[#allocation9 + $0x2ac] sm:$0xf]  ;;  %11391 = vst [vmem:[#allocation31_spill] sm:$0xff] %v11157_v52  ;;  %v8173_v51 = vor.u32 %v9420_v36, %v8170_v10  ;;  %v7722_v10 = vld [vmem:[#allocation9 + $0x38] sm:$0xf0] }
 0x2c0   : > { %4978 = vmatmul.bf16.vlgmr.msrb.gmra.mxu0 %v11098_v40  ;;  %v9312_v28 = vld [vmem:[#allocation9 + $0x4c] sm:$0xf] }
 0x2c1   : > { %5026 = vmatpush.bf16.msra.mxu0 %v7821_v62  ;;  %5004 = vmatpush.bf16.msrb.mxu2 %v8489_v24  ;;  %v8186_v62 = vld [vmem:[#allocation9 + $0x3d8] sm:$0xf0]  ;;  %v9308_v36 = vld [vmem:[#allocation9 + $0x2c] sm:$0xf] }
 0x2c2   : > { %5040 = vmatpush.bf16.msra.mxu1 %v7949_v19  ;;  %5018 = vmatpush.bf16.msrb.mxu3 %v8617_v44  ;;  %v9320_v19 = vld [vmem:[#allocation9 + $0x8c] sm:$0xf]  ;;  %v7770_v24 = vld [vmem:[#allocation9 + $0x98] sm:$0xf0]  ;;  %v8189_v44 = vor.u32 %v9424_v1, %v8186_v62 }
 0x2c3   : > { %4992 = vmatmul.bf16.vlgmr.msrb.gmra.mxu1 %v11100_v27  ;;  %v7773_v61 = vor.u32 %v9320_v19, %v7770_v24  ;;  %v9344_v62 = vld [vmem:[#allocation9 + $0x14c] sm:$0xf]  ;;  %v11160_v19 = vpop.f32.mrf.mxu1 }
 0x2c4   : > { %11392 = vst [vmem:[#allocation32_spill] sm:$0xff] %v11160_v19  ;;  %v8442_v19 = vld [vmem:[#allocation9 + $0x5d8] sm:$0xf0] }
 0x2c5   : > { %5027 = vmatpush.bf16.msra.mxu0 %v7805_v18  ;;  %5005 = vmatpush.bf16.msrb.mxu2 %v8473_v42  ;;  %v7901_v18 = vor.u32 %v9352_v3, %v7898_v48  ;;  %v9348_v42 = vld [vmem:[#allocation9 + $0x16c] sm:$0xf]  ;;  %v8010_v3 = vld [vmem:[#allocation9 + $0x278] sm:$0xf0] }
 0x2c6   : > { %5041 = vmatpush.bf16.msra.mxu1 %v7933_v45  ;;  %5019 = vmatpush.bf16.msrb.mxu3 %v8601_v33  ;;  %v8045_v45 = vor.u32 %v9388_v35, %v8042_v46  ;;  %v9384_v33 = vld [vmem:[#allocation9 + $0x28c] sm:$0xf]  ;;  %v7885_v31 = vor.u32 %v9348_v42, %v7882_v56  ;;  %v8138_v35 = vld [vmem:[#allocation9 + $0x378] sm:$0xf0]  ;;  %v11162_v46 = vpop.f32.mrf.mxu0 }
 0x2c7   : > { %v9376_v56 = vld [vmem:[#allocation9 + $0x24c] sm:$0xf] }
 0x2c8   : > { %5006 = vmatmul.bf16.vlgmr.msrb.gmra.mxu2 %v11108_v21 }
 0x2c9   : > { %5054 = vmatpush.bf16.msra.mxu2 %v8077_v23  ;;  %5028 = vmatpush.bf16.msra.mxu0 %v7789_v13  ;;  %v8026_v23 = vld [vmem:[#allocation9 + $0x298] sm:$0xf0] }
 0x2ca   : > { %5068 = vmatpush.bf16.msra.mxu3 %v8205_v14  ;;  %5042 = vmatpush.bf16.msra.mxu1 %v7917_v26  ;;  %v8154_v14 = vld [vmem:[#allocation9 + $0x398] sm:$0xf0]  ;;  %v8029_v1 = vor.u32 %v9384_v33, %v8026_v23  ;;  %v11166_v33 = vpop.f32.mrf.mxu3  ;;  %v7725_v23 = vor.u32 %v9308_v36, %v7722_v10 }
 0x2cb   : > { %5020 = vmatmul.bf16.vlgmr.msrb.gmra.mxu3 %v11110_v22  ;;  %v7738_v13 = vld [vmem:[#allocation9 + $0x58] sm:$0xf0]  ;;  %v8157_v24 = vor.u32 %v9416_v30, %v8154_v14  ;;  %11394 = vst [vmem:[#allocation34_spill] sm:$0xff] %v11166_v33  ;;  %v9304_v14 = vld [vmem:[#allocation9 + $0xc] sm:$0xf] }
 0x2cc   : > { %v7866_v26 = vld [vmem:[#allocation9 + $0x158] sm:$0xf0]  ;;  %v7741_v48 = vor.u32 %v9312_v28, %v7738_v13  ;;  %v9336_v13 = vld [vmem:[#allocation9 + $0x10c] sm:$0xf] }
 0x2cd   : > { %5055 = vmatpush.bf16.msra.mxu2 %v8061_v25  ;;  %5029 = vmatpush.bf16.msra.mxu0 %v7773_v61  ;;  %v9380_v25 = vld [vmem:[#allocation9 + $0x26c] sm:$0xf]  ;;  %v7869_v61 = vor.u32 %v9344_v62, %v7866_v26  ;;  %v8122_v30 = vld [vmem:[#allocation9 + $0x358] sm:$0xf0] }
 0x2ce   : > { %5069 = vmatpush.bf16.msra.mxu3 %v8189_v44  ;;  %5043 = vmatpush.bf16.msra.mxu1 %v7901_v18  ;;  %v9412_v44 = vld [vmem:[#allocation9 + $0x36c] sm:$0xf]  ;;  %v8013_v18 = vor.u32 %v9380_v25, %v8010_v3  ;;  %v7706_v28 = vld [vmem:[#allocation9 + $0x18] sm:$0xf0]  ;;  %v11168_v3 = vpop.f32.mrf.mxu1  ;;  %v11170_v52 = vpop.f32.mrf.mxu0 }
 0x2cf   : > { %v8141_v42 = vor.u32 %v9412_v44, %v8138_v35  ;;  %v9460_v26 = vld [vmem:[#allocation9 + $0x4ec] sm:$0xf]  ;;  %v8330_v25 = vld [vmem:[#allocation9 + $0x4f8] sm:$0xf0]  ;;  %v7709_v10 = vor.u32 %v9304_v14, %v7706_v28 }
 0x2d0   : > { %v8458_v35 = vld [vmem:[#allocation9 + $0x5f8] sm:$0xf0]  ;;  %v9404_v33 = vld [vmem:[#allocation9 + $0x32c] sm:$0xf] }
 0x2d1   : > { %5056 = vmatpush.bf16.msra.mxu2 %v8045_v45  ;;  %5030 = vmatpush.bf16.msra.mxu0 %v7757_v60  ;;  %v11164_v45 = vpop.f32.mrf.mxu2  ;;  %v9408_v60 = vld [vmem:[#allocation9 + $0x34c] sm:$0xf]  ;;  %v7978_v36 = vld [vmem:[#allocation9 + $0x238] sm:$0xf0] }
 0x2d2   : > { %5070 = vmatpush.bf16.msra.mxu3 %v8173_v51  ;;  %5044 = vmatpush.bf16.msra.mxu1 %v7885_v31  ;;  %11393 = vst [vmem:[#allocation33_spill] sm:$0xff] %v11164_v45  ;;  %v7994_v51 = vld [vmem:[#allocation9 + $0x258] sm:$0xf0]  ;;  %v7853_v31 = vor.u32 %v9340_v9, %v7850_v20  ;;  %v8125_v44 = vor.u32 %v9408_v60, %v8122_v30  ;;  %v9488_v45 = vld [vmem:[#allocation9 + $0x5cc] sm:$0xf]  ;;  %v11174_v28 = vpop.f32.mrf.mxu3 }
 0x2d3   : > { %v7997_v62 = vor.u32 %v9376_v56, %v7994_v51  ;;  %v8333_v20 = vor.u32 %v9460_v26, %v8330_v25  ;;  %v8314_v51 = vld [vmem:[#allocation9 + $0x4d8] sm:$0xf0]  ;;  %v9400_v14 = vld [vmem:[#allocation9 + $0x30c] sm:$0xf] }
 0x2d4   : > { %v7962_v30 = vld [vmem:[#allocation9 + $0x218] sm:$0xf0]  ;;  %v9556_v26 = vld [vmem:[#allocation9 + $0x7ec] sm:$0xf] }
 0x2d5   : > { %5057 = vmatpush.bf16.msra.mxu2 %v8029_v1  ;;  %5031 = vmatpush.bf16.msra.mxu0 %v7741_v48  ;;  %v7834_v1 = vld [vmem:[#allocation9 + $0x118] sm:$0xf0]  ;;  %v9372_v48 = vld [vmem:[#allocation9 + $0x22c] sm:$0xf] }
 0x2d6   : > { %5071 = vmatpush.bf16.msra.mxu3 %v8157_v24  ;;  %5045 = vmatpush.bf16.msra.mxu1 %v7869_v61  ;;  %v9492_v24 = vld [vmem:[#allocation9 + $0x5ec] sm:$0xf]  ;;  %v8106_v61 = vld [vmem:[#allocation9 + $0x338] sm:$0xf0]  ;;  %v7837_v9 = vor.u32 %v9336_v13, %v7834_v1  ;;  %v7981_v56 = vor.u32 %v9372_v48, %v7978_v36 }
 0x2d7   : > { %v8109_v60 = vor.u32 %v9404_v33, %v8106_v61  ;;  %v9524_v13 = vld [vmem:[#allocation9 + $0x6ec] sm:$0xf]  ;;  %v8586_v1 = vld [vmem:[#allocation9 + $0x6f8] sm:$0xf0] }
 0x2d8   : > { %v8714_v25 = vld [vmem:[#allocation9 + $0x7f8] sm:$0xf0]  ;;  %v8589_v36 = vor.u32 %v9524_v13, %v8586_v1  ;;  %v9516_v13 = vld [vmem:[#allocation9 + $0x6ac] sm:$0xf] }
 0x2d9   : > { %5058 = vmatpush.bf16.msra.mxu2 %v8013_v18  ;;  %5032 = vmatpush.bf16.msra.mxu0 %v7725_v23  ;;  %v8461_v18 = vor.u32 %v9492_v24, %v8458_v35  ;;  %v9368_v23 = vld [vmem:[#allocation9 + $0x20c] sm:$0xf]  ;;  %v8445_v24 = vor.u32 %v9488_v45, %v8442_v19  ;;  %v8298_v33 = vld [vmem:[#allocation9 + $0x4b8] sm:$0xf0] }
 0x2da   : > { %5072 = vmatpush.bf16.msra.mxu3 %v8141_v42  ;;  %5046 = vmatpush.bf16.msra.mxu1 %v7853_v31  ;;  %v11172_v42 = vpop.f32.mrf.mxu2  ;;  %v8090_v31 = vld [vmem:[#allocation9 + $0x318] sm:$0xf0]  ;;  %v7965_v35 = vor.u32 %v9368_v23, %v7962_v30  ;;  %v9552_v45 = vld [vmem:[#allocation9 + $0x7cc] sm:$0xf] }
 0x2db   : > { %v8093_v48 = vor.u32 %v9400_v14, %v8090_v31  ;;  %v8426_v61 = vld [vmem:[#allocation9 + $0x5b8] sm:$0xf0]  ;;  %v9480_v31 = vld [vmem:[#allocation9 + $0x58c] sm:$0xf] }
 0x2dc   : > { %v8282_v23 = vld [vmem:[#allocation9 + $0x498] sm:$0xf0] }
 0x2dd   : > { %5059 = vmatpush.bf16.msra.mxu2 %v7997_v62  ;;  %5033 = vmatpush.bf16.msra.mxu0 %v7709_v10  ;;  %v8317_v62 = vor.u32 %v9456_v50, %v8314_v51  ;;  %v9484_v10 = vld [vmem:[#allocation9 + $0x5ac] sm:$0xf]  ;;  %v8570_v50 = vld [vmem:[#allocation9 + $0x6d8] sm:$0xf0] }
 0x2de   : > { %5073 = vmatpush.bf16.msra.mxu3 %v8125_v44  ;;  %5047 = vmatpush.bf16.msra.mxu1 %v7837_v9  ;;  %v9452_v44 = vld [vmem:[#allocation9 + $0x4ac] sm:$0xf]  ;;  %v8717_v9 = vor.u32 %v9556_v26, %v8714_v25  ;;  %v8698_v51 = vld [vmem:[#allocation9 + $0x7d8] sm:$0xf0] }
 0x2df   : > { %v8301_v19 = vor.u32 %v9452_v44, %v8298_v33  ;;  %v8554_v1 = vld [vmem:[#allocation9 + $0x6b8] sm:$0xf0]  ;;  %v9548_v25 = vld [vmem:[#allocation9 + $0x7ac] sm:$0xf] }
 0x2e0   : > { %5034 = vmatmul.bf16.vlgmr.msra.gmra.mxu0 %v11061_v29  ;;  %v8429_v29 = vor.u32 %v9484_v10, %v8426_v61  ;;  %v9444_v44 = vld [vmem:[#allocation9 + $0x46c] sm:$0xf]  ;;  %v8266_v33 = vld [vmem:[#allocation9 + $0x478] sm:$0xf0] }
 0x2e1   : > { %5082 = vmatpush.bf16.msrb.mxu0 %v8333_v20  ;;  %5060 = vmatpush.bf16.msra.mxu2 %v7981_v56  ;;  %v9520_v20 = vld [vmem:[#allocation9 + $0x6cc] sm:$0xf]  ;;  %v11180_v56 = vpop.f32.mrf.mxu1  ;;  %v8394_v61 = vld [vmem:[#allocation9 + $0x578] sm:$0xf0] }
 0x2e2   : > { %5096 = vmatpush.bf16.msrb.mxu1 %v8461_v18  ;;  %5074 = vmatpush.bf16.msra.mxu3 %v8109_v60  ;;  %v2988_v18 = vadd.f32 %v10998_v34, %v10996_v8  ;;  %v9448_v60 = vld [vmem:[#allocation9 + $0x48c] sm:$0xf]  ;;  %v8573_v14 = vor.u32 %v9520_v20, %v8570_v50  ;;  %v8410_v8 = vld [vmem:[#allocation9 + $0x598] sm:$0xf0]  ;;  %v8701_v34 = vor.u32 %v9552_v45, %v8698_v51 }
 0x2e3   : > { %5048 = vmatmul.bf16.vlgmr.msra.gmra.mxu1 %v11063_v54  ;;  %v11183_v54 = vpop.f32.mrf.mxu0  ;;  %v8285_v26 = vor.u32 %v9448_v60, %v8282_v23  ;;  %v9476_v10 = vld [vmem:[#allocation9 + $0x56c] sm:$0xf]  ;;  %v8538_v20 = vld [vmem:[#allocation9 + $0x698] sm:$0xf0] }
 0x2e4   : > { %v3002_v30 = vadd.f32 %v11005_v7, %v2988_v18  ;;  %v11188_v7 = vpop.f32.mrf.mxu3  ;;  %v8666_v45 = vld [vmem:[#allocation9 + $0x798] sm:$0xf0]  ;;  %v8397_v51 = vor.u32 %v9476_v10, %v8394_v61  ;;  %v9472_v23 = vld [vmem:[#allocation9 + $0x54c] sm:$0xf] }
 0x2e5   : > { %5083 = vmatpush.bf16.msrb.mxu0 %v8317_v62  ;;  %5061 = vmatpush.bf16.msra.mxu2 %v7965_v35  ;;  %v11185_v62 = vpop.f32.mrf.mxu2  ;;  %v8413_v35 = vor.u32 %v9480_v31, %v8410_v8  ;;  %v9508_v31 = vld [vmem:[#allocation9 + $0x66c] sm:$0xf]  ;;  %v8522_v8 = vld [vmem:[#allocation9 + $0x678] sm:$0xf0] }
 0x2e6   : > { %5097 = vmatpush.bf16.msrb.mxu1 %v8445_v24  ;;  %5075 = vmatpush.bf16.msra.mxu3 %v8093_v48  ;;  %v8682_v24 = vld [vmem:[#allocation9 + $0x7b8] sm:$0xf0]  ;;  %v3016_v48 = vadd.f32 %v11007_v37, %v3002_v30  ;;  %v9468_v10 = vld [vmem:[#allocation9 + $0x52c] sm:$0xf] }
 0x2e7   : > { %v8250_v37 = vld [vmem:[#allocation9 + $0x458] sm:$0xf0] }
 0x2e8   : > { %5062 = vmatmul.bf16.vlgmr.msra.gmra.mxu2 %v11071_v57  ;;  %v8685_v57 = vor.u32 %v9548_v25, %v8682_v24  ;;  %v3030_v50 = vadd.f32 %v11009_v15, %v3016_v48  ;;  %v8378_v30 = vld [vmem:[#allocation9 + $0x558] sm:$0xf0] }
 0x2e9   : > { %5110 = vmatpush.bf16.msrb.mxu2 %v8589_v36  ;;  %5084 = vmatpush.bf16.msrb.mxu0 %v8301_v19  ;;  %v8557_v36 = vor.u32 %v9516_v13, %v8554_v1  ;;  %v11193_v18 = vpop.f32.mrf.mxu1  ;;  %v9544_v19 = vld [vmem:[#allocation9 + $0x78c] sm:$0xf]  ;;  %v8650_v25 = vld [vmem:[#allocation9 + $0x778] sm:$0xf0] }
 0x2ea   : > { %5124 = vmatpush.bf16.msrb.mxu3 %v8717_v9  ;;  %5098 = vmatpush.bf16.msrb.mxu1 %v8429_v29  ;;  %v9512_v9 = vld [vmem:[#allocation9 + $0x68c] sm:$0xf]  ;;  %v3044_v15 = vadd.f32 %v11011_v43, %v3030_v50  ;;  %v8362_v43 = vld [vmem:[#allocation9 + $0x538] sm:$0xf0] }
 0x2eb   : > { %5076 = vmatmul.bf16.vlgmr.msra.gmra.mxu3 %v11073_v63  ;;  %v8269_v63 = vor.u32 %v9444_v44, %v8266_v33  ;;  %v9440_v29 = vld [vmem:[#allocation9 + $0x44c] sm:$0xf]  ;;  %v8541_v60 = vor.u32 %v9512_v9, %v8538_v20  ;;  %v8234_v33 = vld [vmem:[#allocation9 + $0x438] sm:$0xf0] }
 0x2ec   : > { %v8253_v1 = vor.u32 %v9440_v29, %v8250_v37  ;;  %v11200_v24 = vpop.f32.mrf.mxu3  ;;  %v9436_v44 = vld [vmem:[#allocation9 + $0x42c] sm:$0xf]  ;;  %v3058_v48 = vadd.f32 %v11017_v11, %v3044_v15  ;;  %v8506_v9 = vld [vmem:[#allocation9 + $0x658] sm:$0xf0] }
 0x2ed   : > { %5111 = vmatpush.bf16.msrb.mxu2 %v8573_v14  ;;  %5085 = vmatpush.bf16.msrb.mxu0 %v8285_v26  ;;  %v8669_v14 = vor.u32 %v9544_v19, %v8666_v45  ;;  %v11198_v13 = vpop.f32.mrf.mxu2  ;;  %v9540_v26 = vld [vmem:[#allocation9 + $0x76c] sm:$0xf]  ;;  %v8237_v20 = vor.u32 %v9436_v44, %v8234_v33  ;;  %v3100_v45 = vadd.f32 %v11025_v58, %v11022_v39  ;;  %v8218_v29 = vld [vmem:[#allocation9 + $0x418] sm:$0xf0] }
 0x2ee   : > { %5125 = vmatpush.bf16.msrb.mxu3 %v8701_v34  ;;  %5099 = vmatpush.bf16.msrb.mxu1 %v8413_v35  ;;  %v11196_v34 = vpop.f32.mrf.mxu0  ;;  %v8381_v35 = vor.u32 %v9472_v23, %v8378_v30  ;;  %v8653_v61 = vor.u32 %v9540_v26, %v8650_v25  ;;  %v9536_v50 = vld [vmem:[#allocation9 + $0x74c] sm:$0xf]  ;;  %v8346_v37 = vld [vmem:[#allocation9 + $0x518] sm:$0xf0]  ;;  %v9877_v26 = vld [vmem:[#allocation12 + $0x1ec] sm:$0xf0] }
 0x2ef   : > { %v9432_v19 = vld [vmem:[#allocation9 + $0x40c] sm:$0xf]  ;;  %v3114_v15 = vadd.f32 %v11038_v0, %v3100_v45  ;;  %v8490_v58 = vld [vmem:[#allocation9 + $0x638] sm:$0xf0] }
 0x2f0   : > { %v9464_v11 = vld [vmem:[#allocation9 + $0x50c] sm:$0xf]  ;;  %v8618_v33 = vld [vmem:[#allocation9 + $0x738] sm:$0xf0] }
 0x2f1   : > { %5112 = vmatpush.bf16.msrb.mxu2 %v8557_v36  ;;  %5086 = vmatpush.bf16.msrb.mxu0 %v8269_v63  ;;  %v8525_v36 = vor.u32 %v9508_v31, %v8522_v8  ;;  %v8634_v63 = vld [vmem:[#allocation9 + $0x758] sm:$0xf0]  ;;  %v11206_v23 = vpop.f32.mrf.mxu1  ;;  %v9845_v31 = vld [vmem:[#allocation12 + $0xec] sm:$0xf0]  ;;  %v8960_v8 = vld [vmem:[#allocation12 + $0x1e0] sm:$0xf] }
 0x2f2   : > { %5126 = vmatpush.bf16.msrb.mxu3 %v8685_v57  ;;  %5100 = vmatpush.bf16.msrb.mxu1 %v8397_v51  ;;  %v9504_v57 = vld [vmem:[#allocation9 + $0x64c] sm:$0xf]  ;;  %v8365_v51 = vor.u32 %v9468_v10, %v8362_v43  ;;  %v8961_v43 = vor.u32 %v9877_v26, %v8960_v8  ;;  %v9837_v8 = vld [vmem:[#allocation12 + $0xac] sm:$0xf0] }
 0x2f3   : > { %v8509_v30 = vor.u32 %v9504_v57, %v8506_v9  ;;  %v9500_v39 = vld [vmem:[#allocation9 + $0x62c] sm:$0xf]  ;;  %v8816_v57 = vld [vmem:[#allocation12 + $0xc0] sm:$0xf]  ;;  %v9841_v9 = vld [vmem:[#allocation12 + $0xcc] sm:$0xf0] }
 0x2f4   : > { %v9532_v44 = vld [vmem:[#allocation9 + $0x72c] sm:$0xf] }
 0x2f5   : > { %5113 = vmatpush.bf16.msrb.mxu2 %v8541_v60  ;;  %5087 = vmatpush.bf16.msrb.mxu0 %v8253_v1  ;;  %v3072_v60 = vadd.f32 %v11019_v12, %v3058_v48  ;;  %v8637_v1 = vor.u32 %v9536_v50, %v8634_v63  ;;  %v8221_v12 = vor.u32 %v9432_v19, %v8218_v29  ;;  %v11214_v0 = vpop.f32.mrf.mxu2  ;;  %v9873_v19 = vld [vmem:[#allocation12 + $0x1cc] sm:$0xf0]  ;;  %v9496_v45 = vld [vmem:[#allocation9 + $0x60c] sm:$0xf]  ;;  %v8602_v29 = vld [vmem:[#allocation9 + $0x718] sm:$0xf0] }
 0x2f6   : > { %5127 = vmatpush.bf16.msrb.mxu3 %v8669_v14  ;;  %5101 = vmatpush.bf16.msrb.mxu1 %v8381_v35  ;;  %v8832_v14 = vld [vmem:[#allocation12 + $0xe0] sm:$0xf]  ;;  %v11210_v35 = vpop.f32.mrf.mxu0  ;;  %v4700_v48 = vadd.f32 %v11162_v46, %v11013_v47  ;;  %v3128_v50 = vadd.f32 %v11041_v53, %v3114_v15  ;;  %v8621_v63 = vor.u32 %v9532_v44, %v8618_v33  ;;  %v8474_v47 = vld [vmem:[#allocation9 + $0x618] sm:$0xf0]  ;;  %v9833_v44 = vld [vmem:[#allocation12 + $0x8c] sm:$0xf0] }
 0x2f7   : > { %v4702_v25 = vadd.f32 %v11170_v52, %v3072_v60  ;;  %v8833_v10 = vor.u32 %v9845_v31, %v8832_v14  ;;  %v8944_v52 = vld [vmem:[#allocation12 + $0x1c0] sm:$0xf]  ;;  %v8477_v14 = vor.u32 %v9496_v45, %v8474_v47 }
 0x2f8   : > { %v8800_v31 = vld [vmem:[#allocation12 + $0xa0] sm:$0xf]  ;;  %v3142_v15 = vadd.f32 %v11066_v5, %v3128_v50 }
 0x2f9   : > { %5114 = vmatpush.bf16.msrb.mxu2 %v8525_v36  ;;  %5088 = vmatpush.bf16.msrb.mxu0 %v8237_v20  ;;  %v8349_v36 = vor.u32 %v9464_v11, %v8346_v37  ;;  %v11217_v20 = vpop.f32.mrf.mxu3  ;;  %v4716_v46 = vadd.f32 %v11180_v56, %v4702_v25  ;;  %v4714_v11 = vadd.f32 %v11168_v3, %v4700_v48  ;;  %v4825_v53 = vpop.f32.mrf.mxu1  ;;  %v9869_v3 = vld [vmem:[#allocation12 + $0x1ac] sm:$0xf0]  ;;  %v8784_v5 = vld [vmem:[#allocation12 + $0x80] sm:$0xf] }
 0x2fa   : > { %5128 = vmatpush.bf16.msrb.mxu3 %v8653_v61  ;;  %5102 = vmatpush.bf16.msrb.mxu1 %v8365_v51  ;;  %v8493_v61 = vor.u32 %v9500_v39, %v8490_v58  ;;  %v9528_v51 = vld [vmem:[#allocation9 + $0x70c] sm:$0xf]  ;;  %v8817_v37 = vor.u32 %v9841_v9, %v8816_v57  ;;  %v8912_v48 = vld [vmem:[#allocation12 + $0x180] sm:$0xf]  ;;  %v9909_v57 = vld [vmem:[#allocation12 + $0x2ec] sm:$0xf0] }
 0x2fb   : > { %v4730_v60 = vadd.f32 %v11185_v62, %v4716_v46  ;;  %v8605_v56 = vor.u32 %v9528_v51, %v8602_v29  ;;  %v4728_v26 = vadd.f32 %v11172_v42, %v4714_v11  ;;  %v8801_v62 = vor.u32 %v9837_v8, %v8800_v31  ;;  %v8896_v50 = vld [vmem:[#allocation12 + $0x160] sm:$0xf]  ;;  %v9825_v11 = vld [vmem:[#allocation12 + $0x4c] sm:$0xf0]  ;;  %v11241_v31 = vld [vmem:[#allocation11] sm:$0xf] }
 0x2fc   : > { %v9072_v45 = vld [vmem:[#allocation12 + $0x2c0] sm:$0xf] }
 0x2fd   : > { %5115 = vmatpush.bf16.msrb.mxu2 %v8509_v30  ;;  %5089 = vmatpush.bf16.msrb.mxu0 %v8221_v12  ;;  %v8945_v30 = vor.u32 %v9873_v19, %v8944_v52  ;;  %v4744_v39 = vadd.f32 %v11188_v7, %v4730_v60  ;;  %v4839_v25 = vpop.f32.mrf.mxu2  ;;  %v4742_v42 = vadd.f32 %v11174_v28, %v4728_v26  ;;  %v8768_v28 = vld [vmem:[#allocation12 + $0x60] sm:$0xf]  ;;  %v9829_v52 = vld [vmem:[#allocation12 + $0x6c] sm:$0xf0] }
 0x2fe   : > { %5129 = vmatpush.bf16.msrb.mxu3 %v8637_v1  ;;  %5103 = vmatpush.bf16.msrb.mxu1 %v8349_v36  ;;  %v8928_v1 = vld [vmem:[#allocation12 + $0x1a0] sm:$0xf]  ;;  %v4813_v58 = vpop.f32.mrf.mxu0  ;;  %v9865_v36 = vld [vmem:[#allocation12 + $0x18c] sm:$0xf0]  ;;  %v4812_v7 = vadd.f32 %v11210_v35, %v11055_v59  ;;  %v8769_v19 = vor.u32 %v9829_v52, %v8768_v28 }
 0x2ff   : > { %v8929_v12 = vor.u32 %v9869_v3, %v8928_v1  ;;  %v8913_v9 = vor.u32 %v9865_v36, %v8912_v48  ;;  %v8752_v29 = vld [vmem:[#allocation12 + $0x40] sm:$0xf]  ;;  %v9821_v26 = vld [vmem:[#allocation12 + $0x2c] sm:$0xf0] }
 0x300   : > { %5090 = vmatmul.bf16.vlgmr.msrb.gmra.mxu0 %v11098_v40  ;;  %v3156_v40 = vadd.f32 %v11069_v16, %v3142_v15  ;;  %v4756_v16 = vadd.f32 %v11183_v54, %v4742_v42  ;;  %v4826_v35 = vadd.f32 %v4825_v53, %v4812_v7  ;;  %v9905_v54 = vld [vmem:[#allocation12 + $0x2cc] sm:$0xf0]  ;;  %v8736_v3 = vld [vmem:[#allocation12 + $0x20] sm:$0xf] }
 0x301   : > { %5946 = vmatpush.bf16.msra.mxu0 %v8833_v10  ;;  %5116 = vmatpush.bf16.msrb.mxu2 %v8493_v61  ;;  %v4853_v33 = vpop.f32.mrf.mxu3  ;;  %v9088_v61 = vld [vmem:[#allocation12 + $0x2e0] sm:$0xf]  ;;  %v4827_v59 = vpop.f32.mrf.mxu1  ;;  %v9901_v15 = vld [vmem:[#allocation12 + $0x2ac] sm:$0xf0]  ;;  %v8737_v36 = vor.u32 %v9821_v26, %v8736_v3  ;;  %v9835_v26 = vld [vmem:[#allocation12 + $0xa4] sm:$0xf] }
 0x302   : > { %5960 = vmatpush.bf16.msra.mxu1 %v8961_v43  ;;  %5130 = vmatpush.bf16.msrb.mxu3 %v8621_v63  ;;  %v3170_v10 = vadd.f32 %v11077_v17, %v3156_v40  ;;  %v8785_v43 = vor.u32 %v9833_v44, %v8784_v5  ;;  %v9861_v17 = vld [vmem:[#allocation12 + $0x16c] sm:$0xf0]  ;;  %v4840_v60 = vadd.f32 %v4839_v25, %v4826_v35  ;;  %v8864_v25 = vld [vmem:[#allocation12 + $0x120] sm:$0xf]  ;;  %v5140_v5 = vperm.slane %v11241_v31, 0 }
 0x303   : > { %5104 = vmatmul.bf16.vlgmr.msrb.gmra.mxu1 %v11100_v27  ;;  %v4758_v27 = vadd.f32 %v11196_v34, %v4744_v39  ;;  %v9089_v34 = vor.u32 %v9909_v57, %v9088_v61  ;;  %v8897_v51 = vor.u32 %v9861_v17, %v8896_v50  ;;  %v9897_v42 = vld [vmem:[#allocation12 + $0x28c] sm:$0xf0]  ;;  %v8720_v7 = vld [vmem:[#allocation12] sm:$0xf]  ;;  %v8962_v50 = vld [vmem:[#allocation12 + $0x1f0] sm:$0xf0] }
 0x304   : > { %v9849_v57 = vld [vmem:[#allocation12 + $0x10c] sm:$0xf0]  ;;  %v9024_v35 = vld [vmem:[#allocation12 + $0x260] sm:$0xf] }
 0x305   : > { %5947 = vmatpush.bf16.msra.mxu0 %v8817_v37  ;;  %5117 = vmatpush.bf16.msrb.mxu2 %v8477_v14  ;;  %v4772_v63 = vadd.f32 %v11206_v23, %v4758_v27  ;;  %v9073_v37 = vor.u32 %v9905_v54, %v9072_v45  ;;  %v9857_v14 = vld [vmem:[#allocation12 + $0x14c] sm:$0xf0]  ;;  %v4841_v53 = vpop.f32.mrf.mxu2 }
 0x306   : > { %5961 = vmatpush.bf16.msra.mxu1 %v8945_v30  ;;  %5131 = vmatpush.bf16.msrb.mxu3 %v8605_v56  ;;  %v4867_v46 = vpop.f32.mrf.mxu0  ;;  %v8880_v30 = vld [vmem:[#allocation12 + $0x140] sm:$0xf] }
 0x307   : > { %v4786_v47 = vadd.f32 %v11214_v0, %v4772_v63  ;;  %v9056_v0 = vld [vmem:[#allocation12 + $0x2a0] sm:$0xf]  ;;  %v8881_v1 = vor.u32 %v9857_v14, %v8880_v30  ;;  %v8946_v30 = vld [vmem:[#allocation12 + $0x1d0] sm:$0xf0] }
 0x308   : > { %5118 = vmatmul.bf16.vlgmr.msrb.gmra.mxu2 %v11108_v21  ;;  %v3184_v21 = vadd.f32 %v11081_v38, %v3170_v10  ;;  %v9008_v14 = vld [vmem:[#allocation12 + $0x240] sm:$0xf] }
 0x309   : > { %5948 = vmatpush.bf16.msra.mxu0 %v8801_v62  ;;  %5132 = vmatmul.bf16.vlgmr.msrb.gmra.mxu3 %v11110_v22  ;;  %v4770_v22 = vadd.f32 %v11193_v18, %v4756_v16  ;;  %v4855_v8 = vpop.f32.mrf.mxu3  ;;  %v8753_v18 = vor.u32 %v9825_v11, %v8752_v29  ;;  %v4800_v56 = vadd.f32 %v11217_v20, %v4786_v47  ;;  %v4881_v44 = vpop.f32.mrf.mxu1  ;;  %v9040_v20 = vld [vmem:[#allocation12 + $0x280] sm:$0xf]  ;;  %v9843_v16 = vld [vmem:[#allocation12 + $0xe4] sm:$0xf] }
 0x30a   : > { %5962 = vmatpush.bf16.msra.mxu1 %v8929_v12  ;;  %5974 = vmatpush.bf16.msra.mxu2 %v9089_v34  ;;  %v4814_v23 = vadd.f32 %v4813_v58, %v3184_v21  ;;  %v9057_v62 = vor.u32 %v9901_v15, %v9056_v0  ;;  %v4854_v58 = vadd.f32 %v4853_v33, %v4840_v60  ;;  %v8848_v33 = vld [vmem:[#allocation12 + $0x100] sm:$0xf]  ;;  %v9875_v34 = vld [vmem:[#allocation12 + $0x1e4] sm:$0xf] }
 0x30b   : > { %v4784_v38 = vadd.f32 %v11198_v13, %v4770_v22  ;;  %v9853_v13 = vld [vmem:[#allocation12 + $0x12c] sm:$0xf0]  ;;  %v5152_v27 = vadd.f32 %v5140_v5, %v4800_v56  ;;  %v9041_v61 = vor.u32 %v9897_v42, %v9040_v20  ;;  %v8849_v54 = vor.u32 %v9849_v57, %v8848_v33  ;;  %v9839_v11 = vld [vmem:[#allocation12 + $0xc4] sm:$0xf] }
 0x30c   : > { %v4828_v39 = vadd.f32 %v4827_v59, %v4814_v23  ;;  %v4868_v48 = vadd.f32 %v4867_v46, %v4854_v58  ;;  %v8865_v10 = vor.u32 %v9853_v13, %v8864_v25  ;;  %v8965_v29 = vor.u32 %v9875_v34, %v8962_v50  ;;  %v9871_v60 = vld [vmem:[#allocation12 + $0x1c4] sm:$0xf]  ;;  %v8930_v25 = vld [vmem:[#allocation12 + $0x1b0] sm:$0xf0]  ;;  %v8992_v13 = vld [vmem:[#allocation12 + $0x220] sm:$0xf] }
 0x30d   : > { %5949 = vmatpush.bf16.msra.mxu0 %v8785_v43  ;;  %v4798_v12 = vadd.f32 %v11200_v24, %v4784_v38  ;;  %v9817_v43 = vld [vmem:[#allocation12 + $0xc] sm:$0xf0]  ;;  %v8834_v24 = vld [vmem:[#allocation12 + $0xf0] sm:$0xf0]  ;;  %v4895_v52 = vpop.f32.mrf.mxu2  ;;  %v5160_v45 = vmax.f32 %v5152_v27, 0.0  ;;  %v8949_v3 = vor.u32 %v9871_v60, %v8946_v30 }
 0x30e   : > { %5963 = vmatpush.bf16.msra.mxu1 %v8913_v9  ;;  %5975 = vmatpush.bf16.msra.mxu2 %v9073_v37  ;;  %v4842_v40 = vadd.f32 %v4841_v53, %v4828_v39  ;;  %v4869_v28 = vpop.f32.mrf.mxu0  ;;  %v4882_v63 = vadd.f32 %v4881_v44, %v4868_v48  ;;  %v8721_v21 = vor.u32 %v9817_v43, %v8720_v7  ;;  %v8818_v37 = vld [vmem:[#allocation12 + $0xd0] sm:$0xf0]  ;;  %v9889_v38 = vld [vmem:[#allocation12 + $0x24c] sm:$0xf0]  ;;  %v9867_v39 = vld [vmem:[#allocation12 + $0x1a4] sm:$0xf] }
 0x30f   : > { %v5148_v9 = vadd.f32 %v5140_v5, %v4798_v12  ;;  %v8837_v22 = vor.u32 %v9843_v16, %v8834_v24  ;;  %v8821_v0 = vor.u32 %v9839_v11, %v8818_v37  ;;  %v9009_v15 = vor.u32 %v9889_v38, %v9008_v14  ;;  %v9885_v12 = vld [vmem:[#allocation12 + $0x22c] sm:$0xf0]  ;;  %v9831_v27 = vld [vmem:[#allocation12 + $0x84] sm:$0xf]  ;;  %v8914_v43 = vld [vmem:[#allocation12 + $0x190] sm:$0xf0] }
 0x310   : > { %v4856_v17 = vadd.f32 %v4855_v8, %v4842_v40  ;;  %v8993_v44 = vor.u32 %v9885_v12, %v8992_v13  ;;  %v8933_v42 = vor.u32 %v9867_v39, %v8930_v25  ;;  %v9863_v7 = vld [vmem:[#allocation12 + $0x184] sm:$0xf]  ;;  %v9881_v57 = vld [vmem:[#allocation12 + $0x20c] sm:$0xf0]  ;;  %v8882_v37 = vld [vmem:[#allocation12 + $0x150] sm:$0xf0] }
 0x311   : > { %5950 = vmatpush.bf16.msra.mxu0 %v8769_v19  ;;  %v4909_v59 = vpop.f32.mrf.mxu3  ;;  %v9893_v19 = vld [vmem:[#allocation12 + $0x26c] sm:$0xf0]  ;;  %v5156_v23 = vmax.f32 %v5148_v9, 0.0  ;;  %v4883_v8 = vpop.f32.mrf.mxu1  ;;  %v9827_v24 = vld [vmem:[#allocation12 + $0x64] sm:$0xf]  ;;  %v8917_v50 = vor.u32 %v9863_v7, %v8914_v43 }
 0x312   : > { %5964 = vmatpush.bf16.msra.mxu1 %v8897_v51  ;;  %5976 = vmatpush.bf16.msra.mxu2 %v9057_v62  ;;  %v9025_v47 = vor.u32 %v9893_v19, %v9024_v35  ;;  %v4870_v46 = vadd.f32 %v4869_v28, %v4856_v17  ;;  %v4896_v51 = vadd.f32 %v4895_v52, %v4882_v63  ;;  %v8802_v62 = vld [vmem:[#allocation12 + $0xb0] sm:$0xf0]  ;;  %v9907_v17 = vld [vmem:[#allocation12 + $0x2e4] sm:$0xf]  ;;  %v8840_v12 = vld [vmem:[#allocation12 + $0xe8] sm:$0xf] }
 0x313   : > { %v11246_v53 = vpack.c.bf16 %v5160_v45, %v5156_v23  ;;  %v8805_v48 = vor.u32 %v9835_v26, %v8802_v62  ;;  %v8770_v9 = vld [vmem:[#allocation12 + $0x70] sm:$0xf0]  ;;  %v9855_v11 = vld [vmem:[#allocation12 + $0x144] sm:$0xf] }
 0x314   : > { %v4884_v56 = vadd.f32 %v4883_v8, %v4870_v46  ;;  %v9090_v63 = vld [vmem:[#allocation12 + $0x2f0] sm:$0xf0]  ;;  %v8773_v45 = vor.u32 %v9827_v24, %v8770_v9  ;;  %v9823_v46 = vld [vmem:[#allocation12 + $0x44] sm:$0xf]  ;;  %v8885_v14 = vor.u32 %v9855_v11, %v8882_v37  ;;  %v8952_v24 = vld [vmem:[#allocation12 + $0x1c8] sm:$0xf] }
 0x315   : > { %5951 = vmatpush.bf16.msra.mxu0 %v8753_v18  ;;  %v5141_v18 = vperm.slane %v11241_v31, 1  ;;  %v4897_v58 = vpop.f32.mrf.mxu2  ;;  %v9093_v35 = vor.u32 %v9907_v17, %v9090_v63  ;;  %v9899_v60 = vld [vmem:[#allocation12 + $0x2a4] sm:$0xf]  ;;  %v9058_v30 = vld [vmem:[#allocation12 + $0x2b0] sm:$0xf0] }
 0x316   : > { %5965 = vmatpush.bf16.msra.mxu1 %v8881_v1  ;;  %5977 = vmatpush.bf16.msra.mxu2 %v9041_v61  ;;  %v4910_v1 = vadd.f32 %v4909_v59, %v4896_v51  ;;  %v4898_v5 = vadd.f32 %v4897_v58, %v4884_v56  ;;  %v8976_v61 = vld [vmem:[#allocation12 + $0x200] sm:$0xf]  ;;  %v9859_v59 = vld [vmem:[#allocation12 + $0x164] sm:$0xf]  ;;  %v8754_v51 = vld [vmem:[#allocation12 + $0x50] sm:$0xf0] }
 0x317   : > { %v8977_v28 = vor.u32 %v9881_v57, %v8976_v61  ;;  %v8757_v23 = vor.u32 %v9823_v46, %v8754_v51  ;;  %v9819_v38 = vld [vmem:[#allocation12 + $0x24] sm:$0xf]  ;;  %v8738_v8 = vld [vmem:[#allocation12 + $0x30] sm:$0xf0]  ;;  %v8824_v61 = vld [vmem:[#allocation12 + $0xc8] sm:$0xf] }
 0x318   : > { %v8741_v56 = vor.u32 %v9819_v38, %v8738_v8  ;;  %v9815_v62 = vld [vmem:[#allocation12 + $0x4] sm:$0xf]  ;;  %v8722_v39 = vld [vmem:[#allocation12 + $0x10] sm:$0xf0]  ;;  %v9842_v57 = vld [vmem:[#allocation12 + $0xd4] sm:$0xf0] }
 0x319   : > { %5952 = vmatpush.bf16.msra.mxu0 %v8737_v36  ;;  %v4911_v40 = vpop.f32.mrf.mxu3  ;;  %v5149_v36 = vadd.f32 %v5141_v18, %v4910_v1  ;;  %v9895_v1 = vld [vmem:[#allocation12 + $0x284] sm:$0xf]  ;;  %v8850_v13 = vld [vmem:[#allocation12 + $0x110] sm:$0xf0]  ;;  %v9874_v9 = vld [vmem:[#allocation12 + $0x1d4] sm:$0xf0] }
 0x31a   : > { %5966 = vmatpush.bf16.msra.mxu1 %v8865_v10  ;;  %5978 = vmatpush.bf16.msra.mxu2 %v9025_v47  ;;  %v4912_v20 = vadd.f32 %v4911_v40, %v4898_v5  ;;  %v8786_v10 = vld [vmem:[#allocation12 + $0x90] sm:$0xf0]  ;;  %v9847_v58 = vld [vmem:[#allocation12 + $0x104] sm:$0xf]  ;;  %v9846_v5 = vld [vmem:[#allocation12 + $0xf4] sm:$0xf0] }
 0x31b   : > { %v8789_v16 = vor.u32 %v9831_v27, %v8786_v10  ;;  %v5157_v52 = vmax.f32 %v5149_v36, 0.0  ;;  %v8968_v40 = vld [vmem:[#allocation12 + $0x1e8] sm:$0xf]  ;;  %v8853_v10 = vor.u32 %v9847_v58, %v8850_v13  ;;  %v8841_v7 = vor.u32 %v9846_v5, %v8840_v12  ;;  %v9026_v43 = vld [vmem:[#allocation12 + $0x270] sm:$0xf0] }
 0x31c   : > { %v5153_v33 = vadd.f32 %v5141_v18, %v4912_v20  ;;  %v9061_v18 = vor.u32 %v9899_v60, %v9058_v30  ;;  %v8725_v20 = vor.u32 %v9815_v62, %v8722_v39  ;;  %v8808_v17 = vld [vmem:[#allocation12 + $0xa8] sm:$0xf]  ;;  %v9838_v63 = vld [vmem:[#allocation12 + $0xb4] sm:$0xf0]  ;;  %v9879_v30 = vld [vmem:[#allocation12 + $0x204] sm:$0xf] }
 0x31d   : > { %5953 = vmatpush.bf16.msra.mxu0 %v8721_v21  ;;  %v8898_v21 = vld [vmem:[#allocation12 + $0x170] sm:$0xf0]  ;;  %v4923_v36 = vpop.f32.mrf.mxu0  ;;  %v9834_v11 = vld [vmem:[#allocation12 + $0x94] sm:$0xf0]  ;;  %v11395_v8 = vld [vmem:[#allocation24_spill] sm:$0xff] }
 0x31e   : > { %5967 = vmatpush.bf16.msra.mxu1 %v8849_v54  ;;  %5979 = vmatpush.bf16.msra.mxu2 %v9009_v15  ;;  %v5161_v34 = vmax.f32 %v5153_v33, 0.0  ;;  %v9903_v54 = vld [vmem:[#allocation12 + $0x2c4] sm:$0xf]  ;;  %v8901_v47 = vor.u32 %v9859_v59, %v8898_v21  ;;  %v8866_v15 = vld [vmem:[#allocation12 + $0x130] sm:$0xf0] }
 0x31f   : > { %v8936_v21 = vld [vmem:[#allocation12 + $0x1a8] sm:$0xf]  ;;  %v9866_v60 = vld [vmem:[#allocation12 + $0x194] sm:$0xf0]  ;;  %v9941_v62 = vld [vmem:[#allocation12 + $0x3ec] sm:$0xf0] }
 0x320   : > { %5954 = vmatmul.bf16.vlgmr.msra.gmra.mxu0 %v11246_v53  ;;  %v11250_v19 = vpack.c.bf16 %v5161_v34, %v5157_v52  ;;  %v8825_v52 = vor.u32 %v9842_v57, %v8824_v61  ;;  %v4937_v34 = vpop.f32.mrf.mxu1  ;;  %v9862_v39 = vld [vmem:[#allocation12 + $0x174] sm:$0xf0]  ;;  %v11396_v13 = vld [vmem:[#allocation25_spill] sm:$0xff] }
 0x321   : > { %6002 = vmatpush.bf16.msrb.mxu0 %v8837_v22  ;;  %v9074_v22 = vld [vmem:[#allocation12 + $0x2d0] sm:$0xf0] }
 0x322   : > { %6016 = vmatpush.bf16.msrb.mxu1 %v8965_v29  ;;  %5980 = vmatpush.bf16.msra.mxu2 %v8993_v44  ;;  %v9077_v29 = vor.u32 %v9903_v54, %v9074_v22  ;;  %v3212_v44 = vadd.f32 %v11106_v55, %v11103_v6  ;;  %v9887_v6 = vld [vmem:[#allocation12 + $0x244] sm:$0xf]  ;;  %v9010_v55 = vld [vmem:[#allocation12 + $0x250] sm:$0xf0]  ;;  %v8809_v54 = vor.u32 %v9838_v63, %v8808_v17  ;;  %v9854_v17 = vld [vmem:[#allocation12 + $0x134] sm:$0xf0] }
 0x323   : > { %5968 = vmatmul.bf16.vlgmr.msra.gmra.mxu1 %v11250_v19 }
 0x324   : > { %v3226_v27 = vadd.f32 %v11115_v4, %v3212_v44  ;;  %v9013_v4 = vor.u32 %v9887_v6, %v9010_v55  ;;  %v9200_v44 = vld [vmem:[#allocation12 + $0x3c0] sm:$0xf]  ;;  %v8744_v55 = vld [vmem:[#allocation12 + $0x28] sm:$0xf] }
 0x325   : > { %6003 = vmatpush.bf16.msrb.mxu0 %v8821_v0  ;;  %v9851_v0 = vld [vmem:[#allocation12 + $0x124] sm:$0xf] }
 0x326   : > { %6017 = vmatpush.bf16.msrb.mxu1 %v8949_v3  ;;  %5981 = vmatpush.bf16.msra.mxu2 %v8977_v28  ;;  %v9042_v3 = vld [vmem:[#allocation12 + $0x290] sm:$0xf0]  ;;  %v8869_v26 = vor.u32 %v9851_v0, %v8866_v15  ;;  %v3240_v28 = vadd.f32 %v11117_v49, %v3226_v27  ;;  %v8776_v15 = vld [vmem:[#allocation12 + $0x68] sm:$0xf] }
 0x327   : > { %v9045_v25 = vor.u32 %v9895_v1, %v9042_v3  ;;  %v8994_v49 = vld [vmem:[#allocation12 + $0x230] sm:$0xf0]  ;;  %v9830_v3 = vld [vmem:[#allocation12 + $0x74] sm:$0xf0] }
 0x328   : > { %v3254_v59 = vadd.f32 %v11122_v32, %v3240_v28  ;;  %v9822_v28 = vld [vmem:[#allocation12 + $0x34] sm:$0xf0] }
 0x329   : > { %6004 = vmatpush.bf16.msrb.mxu0 %v8805_v48  ;;  %v9878_v48 = vld [vmem:[#allocation12 + $0x1f4] sm:$0xf0] }
 0x32a   : > { %6018 = vmatpush.bf16.msrb.mxu1 %v8933_v42  ;;  %6030 = vmatpush.bf16.msrb.mxu2 %v9093_v35  ;;  %v9891_v42 = vld [vmem:[#allocation12 + $0x264] sm:$0xf]  ;;  %v8969_v33 = vor.u32 %v9878_v48, %v8968_v40  ;;  %v9870_v35 = vld [vmem:[#allocation12 + $0x1b4] sm:$0xf0]  ;;  %v3268_v32 = vadd.f32 %v11125_v2, %v3254_v59  ;;  %v8904_v2 = vld [vmem:[#allocation12 + $0x168] sm:$0xf] }
 0x32b   : > { %v4951_v46 = vpop.f32.mrf.mxu2  ;;  %v8937_v51 = vor.u32 %v9870_v35, %v8936_v21  ;;  %v9937_v40 = vld [vmem:[#allocation12 + $0x3cc] sm:$0xf0]  ;;  %v8745_v35 = vor.u32 %v9822_v28, %v8744_v55 }
 0x32c   : > { %v3282_v38 = vadd.f32 %v11129_v41, %v3268_v32  ;;  %v8777_v41 = vor.u32 %v9830_v3, %v8776_v15  ;;  %v9201_v27 = vor.u32 %v9937_v40, %v9200_v44  ;;  %v8842_v32 = vld [vmem:[#allocation12 + $0xf8] sm:$0xf0]  ;;  %v9925_v15 = vld [vmem:[#allocation12 + $0x36c] sm:$0xf0]  ;;  %v5142_v44 = vperm.slane %v11241_v31, 2 }
 0x32d   : > { %6005 = vmatpush.bf16.msrb.mxu0 %v8789_v16  ;;  %v9029_v16 = vor.u32 %v9891_v42, %v9026_v43  ;;  %v9826_v42 = vld [vmem:[#allocation12 + $0x54] sm:$0xf0]  ;;  %v8888_v43 = vld [vmem:[#allocation12 + $0x148] sm:$0xf] }
 0x32e   : > { %6019 = vmatpush.bf16.msrb.mxu1 %v8917_v50  ;;  %6031 = vmatpush.bf16.msrb.mxu2 %v9077_v29  ;;  %v8953_v50 = vor.u32 %v9874_v9, %v8952_v24  ;;  %v8792_v29 = vld [vmem:[#allocation12 + $0x88] sm:$0xf]  ;;  %v4965_v37 = vpop.f32.mrf.mxu3  ;;  %v3296_v12 = vadd.f32 %v11396_v13, %v3282_v38  ;;  %v9184_v24 = vld [vmem:[#allocation12 + $0x3a0] sm:$0xf]  ;;  %v9933_v9 = vld [vmem:[#allocation12 + $0x3ac] sm:$0xf0] }
 0x32f   : > { %v8793_v0 = vor.u32 %v9834_v11, %v8792_v29  ;;  %v9850_v29 = vld [vmem:[#allocation12 + $0x114] sm:$0xf0]  ;;  %v9844_v11 = vld [vmem:[#allocation12 + $0xec] sm:$0xf]  ;;  %v8954_v13 = vld [vmem:[#allocation12 + $0x1d8] sm:$0xf0] }
 0x331   : > { %6006 = vmatpush.bf16.msrb.mxu0 %v8773_v45  ;;  %v9883_v45 = vld [vmem:[#allocation12 + $0x224] sm:$0xf] }
 0x332   : > { %6020 = vmatpush.bf16.msrb.mxu1 %v8901_v47  ;;  %6032 = vmatpush.bf16.msrb.mxu2 %v9061_v18  ;;  %v8997_v22 = vor.u32 %v9883_v45, %v8994_v49  ;;  %v4925_v47 = vpop.f32.mrf.mxu0  ;;  %v4924_v18 = vadd.f32 %v4923_v36, %v11395_v8  ;;  %v8905_v36 = vor.u32 %v9862_v39, %v8904_v2  ;;  %v9168_v45 = vld [vmem:[#allocation12 + $0x380] sm:$0xf]  ;;  %v9929_v49 = vld [vmem:[#allocation12 + $0x38c] sm:$0xf0]  ;;  %v9840_v39 = vld [vmem:[#allocation12 + $0xcc] sm:$0xf] }
 0x333   : > { %v4953_v61 = vpop.f32.mrf.mxu2 }
 0x334   : > { %v4938_v5 = vadd.f32 %v4937_v34, %v4924_v18 }
 0x335   : > { %6007 = vmatpush.bf16.msrb.mxu0 %v8757_v23  ;;  %v8920_v23 = vld [vmem:[#allocation12 + $0x188] sm:$0xf] }
 0x336   : > { %6021 = vmatpush.bf16.msrb.mxu1 %v8885_v14  ;;  %6033 = vmatpush.bf16.msrb.mxu2 %v9045_v25  ;;  %v8978_v14 = vld [vmem:[#allocation12 + $0x210] sm:$0xf0]  ;;  %v8921_v1 = vor.u32 %v9866_v60, %v8920_v23  ;;  %v4939_v25 = vpop.f32.mrf.mxu1  ;;  %v4967_v57 = vpop.f32.mrf.mxu3  ;;  %v9876_v60 = vld [vmem:[#allocation12 + $0x1ec] sm:$0xf] }
 0x339   : > { %6008 = vmatpush.bf16.msrb.mxu0 %v8741_v56  ;;  %v8981_v56 = vor.u32 %v9879_v30, %v8978_v14  ;;  %v8970_v30 = vld [vmem:[#allocation12 + $0x1f8] sm:$0xf0] }
 0x33a   : > { %6022 = vmatpush.bf16.msrb.mxu1 %v8869_v26  ;;  %6034 = vmatpush.bf16.msrb.mxu2 %v9029_v16  ;;  %v9216_v26 = vld [vmem:[#allocation12 + $0x3e0] sm:$0xf]  ;;  %v8973_v2 = vor.u32 %v9876_v60, %v8970_v30  ;;  %v8906_v60 = vld [vmem:[#allocation12 + $0x178] sm:$0xf0] }
 0x33b   : > { %v9217_v58 = vor.u32 %v9941_v62, %v9216_v26 }
 0x33d   : > { %6009 = vmatpush.bf16.msrb.mxu0 %v8725_v20  ;;  %5988 = vmatpush.bf16.msra.mxu3 %v9217_v58  ;;  %v4979_v48 = vpop.f32.mrf.mxu0  ;;  %v8760_v20 = vld [vmem:[#allocation12 + $0x48] sm:$0xf]  ;;  %v8826_v58 = vld [vmem:[#allocation12 + $0xd8] sm:$0xf0] }
 0x33e   : > { %6023 = vmatpush.bf16.msrb.mxu1 %v8853_v10  ;;  %6035 = vmatpush.bf16.msrb.mxu2 %v9013_v4  ;;  %v4926_v10 = vadd.f32 %v4925_v47, %v3296_v12  ;;  %v8761_v16 = vor.u32 %v9826_v42, %v8760_v20  ;;  %v9818_v47 = vld [vmem:[#allocation12 + $0x14] sm:$0xf0]  ;;  %v9136_v12 = vld [vmem:[#allocation12 + $0x340] sm:$0xf]  ;;  %v8829_v40 = vor.u32 %v9840_v39, %v8826_v58  ;;  %v9064_v39 = vld [vmem:[#allocation12 + $0x2a8] sm:$0xf] }
 0x33f   : > { %v9902_v58 = vld [vmem:[#allocation12 + $0x2b4] sm:$0xf0] }
 0x340   : > { %6010 = vmatmul.bf16.vlgmr.msrb.gmra.mxu0 %v11246_v53  ;;  %v4940_v4 = vadd.f32 %v4939_v25, %v4926_v10  ;;  %v4993_v63 = vpop.f32.mrf.mxu1  ;;  %v9872_v25 = vld [vmem:[#allocation12 + $0x1cc] sm:$0xf]  ;;  %v8810_v10 = vld [vmem:[#allocation12 + $0xb8] sm:$0xf0] }
 0x341   : > { %6058 = vmatpush.bf16.msra.mxu0 %v8841_v7  ;;  %6024 = vmatmul.bf16.vlgmr.msrb.gmra.mxu1 %v11250_v19  ;;  %v4952_v7 = vadd.f32 %v4951_v46, %v4938_v5  ;;  %v8856_v46 = vld [vmem:[#allocation12 + $0x108] sm:$0xf]  ;;  %v9921_v5 = vld [vmem:[#allocation12 + $0x34c] sm:$0xf0]  ;;  %v8957_v42 = vor.u32 %v9872_v25, %v8954_v13  ;;  %v9931_v13 = vld [vmem:[#allocation12 + $0x3a4] sm:$0xf] }
 0x342   : > { %6072 = vmatpush.bf16.msra.mxu1 %v8969_v33  ;;  %6036 = vmatpush.bf16.msrb.mxu2 %v8997_v22  ;;  %v9858_v33 = vld [vmem:[#allocation12 + $0x154] sm:$0xf0]  ;;  %v4954_v59 = vadd.f32 %v4953_v61, %v4940_v4  ;;  %v8728_v22 = vld [vmem:[#allocation12 + $0x8] sm:$0xf]  ;;  %v9120_v61 = vld [vmem:[#allocation12 + $0x320] sm:$0xf] }
 0x343   : > { %5989 = vmatpush.bf16.msra.mxu3 %v9201_v27  ;;  %v8889_v6 = vor.u32 %v9858_v33, %v8888_v43  ;;  %v4966_v34 = vadd.f32 %v4965_v37, %v4952_v7  ;;  %v8729_v18 = vor.u32 %v9818_v47, %v8728_v22  ;;  %v9836_v27 = vld [vmem:[#allocation12 + $0xac] sm:$0xf]  ;;  %v8938_v33 = vld [vmem:[#allocation12 + $0x1b8] sm:$0xf0]  ;;  %v9218_v22 = vld [vmem:[#allocation12 + $0x3f0] sm:$0xf0] }
 0x344   : > { %v4968_v14 = vadd.f32 %v4967_v57, %v4954_v59  ;;  %v9868_v7 = vld [vmem:[#allocation12 + $0x1ac] sm:$0xf]  ;;  %v9917_v57 = vld [vmem:[#allocation12 + $0x32c] sm:$0xf0]  ;;  %v8794_v4 = vld [vmem:[#allocation12 + $0x98] sm:$0xf0] }
 0x345   : > { %6059 = vmatpush.bf16.msra.mxu0 %v8825_v52  ;;  %v9185_v52 = vor.u32 %v9933_v9, %v9184_v24  ;;  %v4980_v21 = vadd.f32 %v4979_v48, %v4966_v34  ;;  %v4981_v37 = vpop.f32.mrf.mxu0  ;;  %v9137_v48 = vor.u32 %v9921_v5, %v9136_v12  ;;  %v9121_v31 = vor.u32 %v9917_v57, %v9120_v61  ;;  %v9864_v34 = vld [vmem:[#allocation12 + $0x18c] sm:$0xf]  ;;  %v9910_v59 = vld [vmem:[#allocation12 + $0x2f4] sm:$0xf0]  ;;  %v9186_v12 = vld [vmem:[#allocation12 + $0x3b0] sm:$0xf0] }
 0x346   : > { %6073 = vmatpush.bf16.msra.mxu1 %v8953_v50  ;;  %6037 = vmatpush.bf16.msrb.mxu2 %v8981_v56  ;;  %v8872_v50 = vld [vmem:[#allocation12 + $0x128] sm:$0xf]  ;;  %v8857_v56 = vor.u32 %v9850_v29, %v8856_v46  ;;  %v4982_v26 = vadd.f32 %v4981_v37, %v4968_v14  ;;  %v8813_v9 = vor.u32 %v9836_v27, %v8810_v10  ;;  %v9828_v29 = vld [vmem:[#allocation12 + $0x6c] sm:$0xf]  ;;  %v9898_v27 = vld [vmem:[#allocation12 + $0x294] sm:$0xf0] }
 0x347   : > { %5990 = vmatpush.bf16.msra.mxu3 %v9185_v52  ;;  %v4994_v38 = vadd.f32 %v4993_v63, %v4980_v21  ;;  %v8941_v28 = vor.u32 %v9868_v7, %v8938_v33  ;;  %v9832_v52 = vld [vmem:[#allocation12 + $0x8c] sm:$0xf]  ;;  %v9104_v21 = vld [vmem:[#allocation12 + $0x300] sm:$0xf]  ;;  %v9080_v14 = vld [vmem:[#allocation12 + $0x2c8] sm:$0xf] }
 0x348   : > { %v9927_v7 = vld [vmem:[#allocation12 + $0x384] sm:$0xf]  ;;  %v9816_v61 = vld [vmem:[#allocation12 + $0xc] sm:$0xf]  ;;  %v8730_v57 = vld [vmem:[#allocation12 + $0x18] sm:$0xf0] }
 0x349   : > { %6060 = vmatpush.bf16.msra.mxu0 %v8809_v54  ;;  %v8873_v54 = vor.u32 %v9854_v17, %v8872_v50  ;;  %v8922_v50 = vld [vmem:[#allocation12 + $0x198] sm:$0xf0]  ;;  %v9096_v17 = vld [vmem:[#allocation12 + $0x2e8] sm:$0xf] }
 0x34a   : > { %6074 = vmatpush.bf16.msra.mxu1 %v8937_v51  ;;  %v9169_v51 = vor.u32 %v9929_v49, %v9168_v45  ;;  %v8797_v45 = vor.u32 %v9832_v52, %v8794_v4  ;;  %v9097_v37 = vor.u32 %v9910_v59, %v9096_v17  ;;  %v9032_v52 = vld [vmem:[#allocation12 + $0x268] sm:$0xf]  ;;  %v9894_v4 = vld [vmem:[#allocation12 + $0x274] sm:$0xf0]  ;;  %v9923_v17 = vld [vmem:[#allocation12 + $0x364] sm:$0xf] }
 0x34b   : > { %v5007_v23 = vpop.f32.mrf.mxu2  ;;  %v11399_v59 = vld [vmem:[#allocation28_spill] sm:$0xff] }
 0x34c   : > { %5991 = vmatpush.bf16.msra.mxu3 %v9169_v51  ;;  %v5008_v62 = vadd.f32 %v5007_v23, %v4994_v38  ;;  %v8925_v51 = vor.u32 %v9864_v34, %v8922_v50  ;;  %v9860_v23 = vld [vmem:[#allocation12 + $0x16c] sm:$0xf]  ;;  %v9906_v38 = vld [vmem:[#allocation12 + $0x2d4] sm:$0xf0]  ;;  %v8733_v50 = vor.u32 %v9816_v61, %v8730_v57 }
 0x34d   : > { %6061 = vmatpush.bf16.msra.mxu0 %v8793_v0  ;;  %v9152_v0 = vld [vmem:[#allocation12 + $0x360] sm:$0xf] }
 0x34e   : > { %6075 = vmatpush.bf16.msra.mxu1 %v8921_v1  ;;  %v5021_v8 = vpop.f32.mrf.mxu3  ;;  %v8845_v1 = vor.u32 %v9844_v11, %v8842_v32  ;;  %v9153_v3 = vor.u32 %v9925_v15, %v9152_v0  ;;  %v8778_v11 = vld [vmem:[#allocation12 + $0x78] sm:$0xf0]  ;;  %v9202_v0 = vld [vmem:[#allocation12 + $0x3d0] sm:$0xf0]  ;;  %v8909_v15 = vor.u32 %v9860_v23, %v8906_v60  ;;  %v11401_v23 = vld [vmem:[#allocation31_spill] sm:$0xff] }
 0x34f   : > { %v5022_v20 = vadd.f32 %v5021_v8, %v5008_v62  ;;  %v8781_v8 = vor.u32 %v9828_v29, %v8778_v11  ;;  %v9856_v62 = vld [vmem:[#allocation12 + $0x14c] sm:$0xf] }
 0x350   : > { %5992 = vmatpush.bf16.msra.mxu3 %v9153_v3 }
 0x351   : > { %6062 = vmatpush.bf16.msra.mxu0 %v8777_v41  ;;  %v4995_v41 = vpop.f32.mrf.mxu1 }
 0x352   : > { %6076 = vmatpush.bf16.msra.mxu1 %v8905_v36  ;;  %v4996_v36 = vadd.f32 %v4995_v41, %v4982_v26  ;;  %v9081_v26 = vor.u32 %v9906_v38, %v9080_v14  ;;  %v9820_v41 = vld [vmem:[#allocation12 + $0x2c] sm:$0xf]  ;;  %v9000_v14 = vld [vmem:[#allocation12 + $0x228] sm:$0xf]  ;;  %v9886_v38 = vld [vmem:[#allocation12 + $0x234] sm:$0xf0] }
 0x353   : > { %v5009_v43 = vpop.f32.mrf.mxu2 }
 0x354   : > { %5993 = vmatpush.bf16.msra.mxu3 %v9137_v48  ;;  %v9065_v48 = vor.u32 %v9902_v58, %v9064_v39  ;;  %v9882_v39 = vld [vmem:[#allocation12 + $0x214] sm:$0xf0]  ;;  %v9908_v58 = vld [vmem:[#allocation12 + $0x2ec] sm:$0xf] }
 0x355   : > { %6063 = vmatpush.bf16.msra.mxu0 %v8761_v16  ;;  %v5010_v16 = vadd.f32 %v5009_v43, %v4996_v36  ;;  %v9852_v36 = vld [vmem:[#allocation12 + $0x12c] sm:$0xf]  ;;  %v9170_v43 = vld [vmem:[#allocation12 + $0x390] sm:$0xf0] }
 0x356   : > { %6077 = vmatpush.bf16.msra.mxu1 %v8889_v6  ;;  %v5023_v24 = vpop.f32.mrf.mxu3  ;;  %v5150_v6 = vadd.f32 %v5142_v44, %v5022_v20  ;;  %v8874_v20 = vld [vmem:[#allocation12 + $0x138] sm:$0xf0] }
 0x357   : > { %v5024_v55 = vadd.f32 %v5023_v24, %v5010_v16  ;;  %v8877_v33 = vor.u32 %v9852_v36, %v8874_v20  ;;  %v9173_v16 = vor.u32 %v9927_v7, %v9170_v43  ;;  %v9848_v24 = vld [vmem:[#allocation12 + $0x10c] sm:$0xf] }
 0x358   : > { %5994 = vmatpush.bf16.msra.mxu3 %v9121_v31  ;;  %v5158_v47 = vmax.f32 %v5150_v6, 0.0  ;;  %v11397_v6 = vld [vmem:[#allocation26_spill] sm:$0xff]  ;;  %v9904_v20 = vld [vmem:[#allocation12 + $0x2cc] sm:$0xf] }
 0x359   : > { %6064 = vmatpush.bf16.msra.mxu0 %v8745_v35  ;;  %v5154_v63 = vadd.f32 %v5142_v44, %v5024_v55  ;;  %v9913_v35 = vld [vmem:[#allocation12 + $0x30c] sm:$0xf0]  ;;  %v8746_v44 = vld [vmem:[#allocation12 + $0x38] sm:$0xf0]  ;;  %v11398_v55 = vld [vmem:[#allocation27_spill] sm:$0xff] }
 0x35a   : > { %6078 = vmatpush.bf16.msra.mxu1 %v8873_v54  ;;  %v9105_v49 = vor.u32 %v9913_v35, %v9104_v21  ;;  %v9939_v54 = vld [vmem:[#allocation12 + $0x3e4] sm:$0xf]  ;;  %v8749_v10 = vor.u32 %v9820_v41, %v8746_v44 }
 0x35b   : > { %v5162_v46 = vmax.f32 %v5154_v63, 0.0  ;;  %v9221_v32 = vor.u32 %v9939_v54, %v9218_v22  ;;  %v9154_v63 = vld [vmem:[#allocation12 + $0x370] sm:$0xf0]  ;;  %v9016_v54 = vld [vmem:[#allocation12 + $0x248] sm:$0xf] }
 0x35c   : > { %5995 = vmatpush.bf16.msra.mxu3 %v9105_v49  ;;  %v9033_v49 = vor.u32 %v9894_v4, %v9032_v52  ;;  %v9890_v22 = vld [vmem:[#allocation12 + $0x254] sm:$0xf0]  ;;  %v9896_v4 = vld [vmem:[#allocation12 + $0x28c] sm:$0xf] }
 0x35d   : > { %6065 = vmatpush.bf16.msra.mxu0 %v8729_v18  ;;  %v11267_v30 = vpack.c.bf16 %v5162_v46, %v5158_v47  ;;  %v9935_v18 = vld [vmem:[#allocation12 + $0x3c4] sm:$0xf]  ;;  %v5035_v34 = vpop.f32.mrf.mxu0  ;;  %v9138_v46 = vld [vmem:[#allocation12 + $0x350] sm:$0xf0] }
 0x35e   : > { %6079 = vmatpush.bf16.msra.mxu1 %v8857_v56  ;;  %v9824_v56 = vld [vmem:[#allocation12 + $0x4c] sm:$0xf]  ;;  %v9205_v3 = vor.u32 %v9935_v18, %v9202_v0  ;;  %v9919_v47 = vld [vmem:[#allocation12 + $0x344] sm:$0xf]  ;;  %v9122_v18 = vld [vmem:[#allocation12 + $0x330] sm:$0xf0] }
 0x35f   : > { %5982 = vmatmul.bf16.vlgmr.msra.gmra.mxu2 %v11267_v30  ;;  %v9141_v11 = vor.u32 %v9919_v47, %v9138_v46 }
 0x360   : > { %6066 = vmatmul.bf16.vlgmr.msra.gmra.mxu0 %v11246_v53  ;;  %6044 = vmatpush.bf16.msrb.mxu3 %v9221_v32  ;;  %v5049_v32 = vpop.f32.mrf.mxu1 }
 0x361   : > { %6114 = vmatpush.bf16.msrb.mxu0 %v8845_v1  ;;  %6080 = vmatmul.bf16.vlgmr.msra.gmra.mxu1 %v11250_v19  ;;  %v8762_v1 = vld [vmem:[#allocation12 + $0x58] sm:$0xf0] }
 0x362   : > { %6128 = vmatpush.bf16.msrb.mxu1 %v8973_v2  ;;  %6086 = vmatpush.bf16.msra.mxu2 %v9097_v37  ;;  %v8890_v2 = vld [vmem:[#allocation12 + $0x158] sm:$0xf0]  ;;  %v8765_v25 = vor.u32 %v9824_v56, %v8762_v1  ;;  %v9017_v37 = vor.u32 %v9890_v22, %v9016_v54  ;;  %v9001_v1 = vor.u32 %v9886_v38, %v9000_v14 }
 0x363   : > { %v8893_v5 = vor.u32 %v9856_v62, %v8890_v2  ;;  %v8984_v2 = vld [vmem:[#allocation12 + $0x208] sm:$0xf] }
 0x364   : > { %6045 = vmatpush.bf16.msrb.mxu3 %v9205_v3  ;;  %v11402_v3 = vld [vmem:[#allocation32_spill] sm:$0xff] }
 0x365   : > { %6115 = vmatpush.bf16.msrb.mxu0 %v8829_v40  ;;  %v9189_v40 = vor.u32 %v9931_v13, %v9186_v12  ;;  %v9106_v13 = vld [vmem:[#allocation12 + $0x310] sm:$0xf0] }
 0x366   : > { %6129 = vmatpush.bf16.msrb.mxu1 %v8957_v42  ;;  %6087 = vmatpush.bf16.msra.mxu2 %v9081_v26  ;;  %v9048_v42 = vld [vmem:[#allocation12 + $0x288] sm:$0xf]  ;;  %v11403_v12 = vld [vmem:[#allocation33_spill] sm:$0xff] }
 0x367   : > { %v9049_v31 = vor.u32 %v9898_v27, %v9048_v42  ;;  %v9082_v42 = vld [vmem:[#allocation12 + $0x2d8] sm:$0xf0] }
 0x368   : > { %6046 = vmatpush.bf16.msrb.mxu3 %v9189_v40  ;;  %v8985_v40 = vor.u32 %v9882_v39, %v8984_v2  ;;  %v5051_v36 = vpop.f32.mrf.mxu1  ;;  %v11405_v27 = vld [vmem:[#allocation34_spill] sm:$0xff]  ;;  %v9085_v57 = vor.u32 %v9904_v20, %v9082_v42  ;;  %v9176_v42 = vld [vmem:[#allocation12 + $0x388] sm:$0xf] }
 0x369   : > { %6116 = vmatpush.bf16.msrb.mxu0 %v8813_v9  ;;  %v8858_v9 = vld [vmem:[#allocation12 + $0x118] sm:$0xf0] }
 0x36a   : > { %6130 = vmatpush.bf16.msrb.mxu1 %v8941_v28  ;;  %6088 = vmatpush.bf16.msra.mxu2 %v9065_v48  ;;  %v3324_v28 = vadd.f32 %v11398_v55, %v11397_v6  ;;  %v8861_v35 = vor.u32 %v9848_v24, %v8858_v9  ;;  %v9066_v24 = vld [vmem:[#allocation12 + $0x2b8] sm:$0xf0] }
 0x36b   : > { %v5063_v56 = vpop.f32.mrf.mxu2  ;;  %v8986_v2 = vld [vmem:[#allocation12 + $0x218] sm:$0xf0] }
 0x36c   : > { %6047 = vmatpush.bf16.msrb.mxu3 %v9173_v16  ;;  %v3338_v21 = vadd.f32 %v11399_v59, %v3324_v28 }
 0x36d   : > { %6117 = vmatpush.bf16.msrb.mxu0 %v8797_v45  ;;  %v9157_v45 = vor.u32 %v9923_v17, %v9154_v63 }
 0x36e   : > { %6131 = vmatpush.bf16.msrb.mxu1 %v8925_v51  ;;  %6089 = vmatpush.bf16.msra.mxu2 %v9049_v31  ;;  %v11400_v51 = vld [vmem:[#allocation29_spill] sm:$0xff]  ;;  %v5077_v62 = vpop.f32.mrf.mxu3  ;;  %v9900_v31 = vld [vmem:[#allocation12 + $0x2ac] sm:$0xf] }
 0x36f   : > { %v3352_v29 = vadd.f32 %v11400_v51, %v3338_v21  ;;  %6038 = vmatmul.bf16.vlgmr.msrb.gmra.mxu2 %v11267_v30  ;;  %v9069_v28 = vor.u32 %v9900_v31, %v9066_v24  ;;  %v9128_v31 = vld [vmem:[#allocation12 + $0x328] sm:$0xf]  ;;  %v9918_v24 = vld [vmem:[#allocation12 + $0x334] sm:$0xf0] }
 0x370   : > { %6048 = vmatpush.bf16.msrb.mxu3 %v9157_v45  ;;  %v9034_v45 = vld [vmem:[#allocation12 + $0x278] sm:$0xf0] }
 0x371   : > { %6118 = vmatpush.bf16.msrb.mxu0 %v8781_v8  ;;  %v3366_v60 = vadd.f32 %v11401_v23, %v3352_v29  ;;  %v9915_v8 = vld [vmem:[#allocation12 + $0x324] sm:$0xf]  ;;  %v9888_v29 = vld [vmem:[#allocation12 + $0x24c] sm:$0xf] }
 0x372   : > { %6132 = vmatpush.bf16.msrb.mxu1 %v8909_v15  ;;  %6090 = vmatpush.bf16.msra.mxu2 %v9033_v49  ;;  %v9125_v0 = vor.u32 %v9915_v8, %v9122_v18  ;;  %v5037_v15 = vpop.f32.mrf.mxu0  ;;  %v9884_v18 = vld [vmem:[#allocation12 + $0x22c] sm:$0xf] }
 0x373   : > { %v3380_v26 = vadd.f32 %v11402_v3, %v3366_v60  ;;  %v5065_v16 = vpop.f32.mrf.mxu2  ;;  %v10077_v60 = vld [vmem:[#allocation11] sm:$0xf] }
 0x374   : > { %6049 = vmatpush.bf16.msrb.mxu3 %v9141_v11  ;;  %v9018_v11 = vld [vmem:[#allocation12 + $0x258] sm:$0xf0]  ;;  %v5143_v14 = vperm.slane %v10077_v60, 3 }
 0x375   : > { %6119 = vmatpush.bf16.msrb.mxu0 %v8765_v25  ;;  %v9098_v25 = vld [vmem:[#allocation12 + $0x2f8] sm:$0xf0]  ;;  %v9021_v38 = vor.u32 %v9888_v29, %v9018_v11  ;;  %v9916_v11 = vld [vmem:[#allocation12 + $0x32c] sm:$0xf] }
 0x376   : > { %6133 = vmatpush.bf16.msrb.mxu1 %v8893_v5  ;;  %6091 = vmatpush.bf16.msra.mxu2 %v9017_v37  ;;  %v11404_v5 = vld [vmem:[#allocation30_spill] sm:$0xff]  ;;  %v9101_v48 = vor.u32 %v9908_v58, %v9098_v25  ;;  %v5079_v9 = vpop.f32.mrf.mxu3  ;;  %v9224_v58 = vld [vmem:[#allocation12 + $0x3e8] sm:$0xf] }
 0x377   : > { %v5036_v41 = vadd.f32 %v5035_v34, %v11404_v5  ;;  %v9050_v34 = vld [vmem:[#allocation12 + $0x298] sm:$0xf0]  ;;  %v9942_v25 = vld [vmem:[#allocation12 + $0x3f4] sm:$0xf0] }
 0x378   : > { %6050 = vmatpush.bf16.msrb.mxu3 %v9125_v0  ;;  %v9053_v63 = vor.u32 %v9896_v4, %v9050_v34  ;;  %v9002_v0 = vld [vmem:[#allocation12 + $0x238] sm:$0xf0]  ;;  %v9936_v34 = vld [vmem:[#allocation12 + $0x3cc] sm:$0xf] }
 0x379   : > { %6120 = vmatpush.bf16.msrb.mxu0 %v8749_v10  ;;  %v5050_v7 = vadd.f32 %v5049_v32, %v5036_v41  ;;  %v9208_v41 = vld [vmem:[#allocation12 + $0x3c8] sm:$0xf]  ;;  %v9114_v60 = vld [vmem:[#allocation12 + $0x318] sm:$0xf0] }
 0x37a   : > { %6134 = vmatpush.bf16.msrb.mxu1 %v8877_v33  ;;  %6092 = vmatpush.bf16.msra.mxu2 %v9001_v1 }
 0x37b   : > { %v5064_v61 = vadd.f32 %v5063_v56, %v5050_v7  ;;  %v9160_v7 = vld [vmem:[#allocation12 + $0x368] sm:$0xf] }
 0x37d   : > { %6121 = vmatpush.bf16.msrb.mxu0 %v8733_v50  ;;  %v5091_v43 = vpop.f32.mrf.mxu0  ;;  %v5078_v55 = vadd.f32 %v5077_v62, %v5064_v61  ;;  %v9880_v62 = vld [vmem:[#allocation12 + $0x20c] sm:$0xf]  ;;  %v9144_v61 = vld [vmem:[#allocation12 + $0x348] sm:$0xf] }
 0x37e   : > { %6135 = vmatpush.bf16.msrb.mxu1 %v8861_v35  ;;  %6093 = vmatpush.bf16.msra.mxu2 %v8985_v40  ;;  %v9892_v35 = vld [vmem:[#allocation12 + $0x26c] sm:$0xf] }
 0x37f   : > { %v5092_v17 = vadd.f32 %v5091_v43, %v5078_v55  ;;  %v9037_v51 = vor.u32 %v9892_v35, %v9034_v45  ;;  %v9926_v43 = vld [vmem:[#allocation12 + $0x374] sm:$0xf0]  ;;  %v9940_v55 = vld [vmem:[#allocation12 + $0x3ec] sm:$0xf]  ;;  %v9178_v45 = vld [vmem:[#allocation12 + $0x398] sm:$0xf0] }
 0x380   : > { %6122 = vmatmul.bf16.vlgmr.msrb.gmra.mxu0 %v11246_v53  ;;  %v9911_v53 = vld [vmem:[#allocation12 + $0x304] sm:$0xf]  ;;  %v5105_v52 = vpop.f32.mrf.mxu1  ;;  %v9928_v35 = vld [vmem:[#allocation12 + $0x38c] sm:$0xf] }
 0x381   : > { %6136 = vmatmul.bf16.vlgmr.msrb.gmra.mxu1 %v11250_v19  ;;  %v3394_v19 = vadd.f32 %v11403_v12, %v3380_v26  ;;  %v9109_v44 = vor.u32 %v9911_v53, %v9106_v13  ;;  %6094 = vmatmul.bf16.vlgmr.msra.gmra.mxu2 %v11267_v30  ;;  %v5106_v54 = vadd.f32 %v5105_v52, %v5092_v17 }
 0x382   : > { %6142 = vmatpush.bf16.msrb.mxu2 %v9101_v48  ;;  %v9005_v26 = vor.u32 %v9884_v18, %v9002_v0  ;;  %v8989_v12 = vor.u32 %v9880_v62, %v8986_v2  ;;  %v9192_v48 = vld [vmem:[#allocation12 + $0x3a8] sm:$0xf] }
 0x383   : > { %6051 = vmatpush.bf16.msrb.mxu3 %v9109_v44  ;;  %v3408_v10 = vadd.f32 %v11405_v27, %v3394_v19  ;;  %v9225_v19 = vor.u32 %v9942_v25, %v9224_v58  ;;  %v9938_v44 = vld [vmem:[#allocation12 + $0x3d4] sm:$0xf0] }
 0x384   : > { %v9209_v40 = vor.u32 %v9938_v44, %v9208_v41  ;;  %v9930_v27 = vld [vmem:[#allocation12 + $0x394] sm:$0xf0] }
 0x385   : > { %v5038_v33 = vadd.f32 %v5037_v15, %v3408_v10  ;;  %v5093_v59 = vpop.f32.mrf.mxu0  ;;  %v9177_v10 = vor.u32 %v9930_v27, %v9176_v42 }
 0x386   : > { %6143 = vmatpush.bf16.msrb.mxu2 %v9085_v57  ;;  %v9922_v57 = vld [vmem:[#allocation12 + $0x354] sm:$0xf0] }
 0x387   : > { %v5052_v6 = vadd.f32 %v5051_v36, %v5038_v33  ;;  %v9934_v36 = vld [vmem:[#allocation12 + $0x3b4] sm:$0xf0]  ;;  %v9161_v33 = vor.u32 %v9926_v43, %v9160_v7 }
 0x388   : > { %v5107_v32 = vpop.f32.mrf.mxu1  ;;  %v9193_v20 = vor.u32 %v9934_v36, %v9192_v48 }
 0x389   : > { %v5066_v50 = vadd.f32 %v5065_v16, %v5052_v6  ;;  %v9145_v16 = vor.u32 %v9922_v57, %v9144_v61  ;;  %v9914_v6 = vld [vmem:[#allocation12 + $0x314] sm:$0xf0] }
 0x38a   : > { %6144 = vmatpush.bf16.msrb.mxu2 %v9069_v28  ;;  %v9226_v28 = vld [vmem:[#allocation12 + $0x3f8] sm:$0xf0] }
 0x38b   : > { %v5119_v21 = vpop.f32.mrf.mxu2  ;;  %v5080_v49 = vadd.f32 %v5079_v9, %v5066_v50  ;;  %v9112_v9 = vld [vmem:[#allocation12 + $0x308] sm:$0xf]  ;;  %v9229_v4 = vor.u32 %v9940_v55, %v9226_v28  ;;  %v9210_v50 = vld [vmem:[#allocation12 + $0x3d8] sm:$0xf0] }
 0x38c   : > { %v5133_v22 = vpop.f32.mrf.mxu3  ;;  %v5120_v46 = vadd.f32 %v5119_v21, %v5106_v54  ;;  %v9113_v52 = vor.u32 %v9914_v6, %v9112_v9  ;;  %v9213_v17 = vor.u32 %v9936_v34, %v9210_v50  ;;  %v9924_v54 = vld [vmem:[#allocation12 + $0x36c] sm:$0xf] }
 0x38d   : > { %v5094_v47 = vadd.f32 %v5093_v59, %v5080_v49  ;;  %v9194_v59 = vld [vmem:[#allocation12 + $0x3b8] sm:$0xf0]  ;;  %v9181_v49 = vor.u32 %v9928_v35, %v9178_v45 }
 0x38e   : > { %6145 = vmatpush.bf16.msrb.mxu2 %v9053_v63  ;;  %v5134_v23 = vadd.f32 %v5133_v22, %v5120_v46  ;;  %v9932_v63 = vld [vmem:[#allocation12 + $0x3ac] sm:$0xf]  ;;  %v9162_v22 = vld [vmem:[#allocation12 + $0x378] sm:$0xf0] }
 0x38f   : > { %v5108_v37 = vadd.f32 %v5107_v32, %v5094_v47  ;;  %v9197_v21 = vor.u32 %v9932_v63, %v9194_v59  ;;  %v9165_v47 = vor.u32 %v9924_v54, %v9162_v22  ;;  %v9920_v46 = vld [vmem:[#allocation12 + $0x34c] sm:$0xf]  ;;  %v9130_v32 = vld [vmem:[#allocation12 + $0x338] sm:$0xf0] }
 0x390   : > { %v5151_v1 = vadd.f32 %v5143_v14, %v5134_v23  ;;  %v9912_v23 = vld [vmem:[#allocation12 + $0x30c] sm:$0xf] }
 0x392   : > { %6146 = vmatpush.bf16.msrb.mxu2 %v9037_v51  ;;  %v5159_v53 = vmax.f32 %v5151_v1, 0.0  ;;  %v9146_v51 = vld [vmem:[#allocation12 + $0x358] sm:$0xf0] }
 0x393   : > { %v5121_v8 = vpop.f32.mrf.mxu2  ;;  %v9149_v29 = vor.u32 %v9920_v46, %v9146_v51 }
 0x394   : > { %v5122_v15 = vadd.f32 %v5121_v8, %v5108_v37  ;;  %v5135_v56 = vpop.f32.mrf.mxu3  ;;  %v9133_v37 = vor.u32 %v9916_v11, %v9130_v32 }
 0x396   : > { %v5136_v3 = vadd.f32 %v5135_v56, %v5122_v15  ;;  %6147 = vmatpush.bf16.msrb.mxu2 %v9021_v38 }
 0x398   : > { %v5155_v39 = vadd.f32 %v5143_v14, %v5136_v3  ;;  %v9117_v14 = vor.u32 %v9912_v23, %v9114_v60 }
 0x39a   : > { %v5163_v13 = vmax.f32 %v5155_v39, 0.0  ;;  %6148 = vmatpush.bf16.msrb.mxu2 %v9005_v26 }
 0x39c   : > { %v11283_v5 = vpack.c.bf16 %v5163_v13, %v5159_v53 }
 0x39d   : > { %v5955_v38 = vpop.f32.mrf.mxu0 }
 0x39e   : > { %6149 = vmatpush.bf16.msrb.mxu2 %v8989_v12  ;;  %5996 = vmatmul.bf16.vlgmr.msra.gmra.mxu3 %v11283_v5 }
 0x39f   : > { %6100 = vmatpush.bf16.msra.mxu3 %v9225_v19 }
 0x3a0   : > { %v5969_v18 = vpop.f32.mrf.mxu1 }
 0x3a1   : > { %6150 = vmatmul.bf16.vlgmr.msrb.gmra.mxu2 %v11267_v30  ;;  %v9129_v30 = vor.u32 %v9918_v24, %v9128_v31 }
 0x3a3   : > { %6101 = vmatpush.bf16.msra.mxu3 %v9209_v40 }
 0x3a5   : > { %v5957_v15 = vpop.f32.mrf.mxu0 }
 0x3a7   : > { %6102 = vmatpush.bf16.msra.mxu3 %v9193_v20 }
 0x3a8   : > { %v5971_v1 = vpop.f32.mrf.mxu1 }
 0x3ab   : > { %6103 = vmatpush.bf16.msra.mxu3 %v9177_v10 }
 0x3ae   : > { %6052 = vmatmul.bf16.vlgmr.msrb.gmra.mxu3 %v11283_v5 }
 0x3af   : > { %6104 = vmatpush.bf16.msra.mxu3 %v9161_v33 }
 0x3b3   : > { %6105 = vmatpush.bf16.msra.mxu3 %v9145_v16 }
 0x3b7   : > { %6106 = vmatpush.bf16.msra.mxu3 %v9129_v30 }
 0x3bb   : > { %6107 = vmatpush.bf16.msra.mxu3 %v9113_v52 }
 0x3bd   : > { %v6011_v3 = vpop.f32.mrf.mxu0 }
 0x3be   : > { %6108 = vmatmul.bf16.vlgmr.msra.gmra.mxu3 %v11283_v5  ;;  %v6025_v2 = vpop.f32.mrf.mxu1 }
 0x3bf   : > { %6156 = vmatpush.bf16.msrb.mxu3 %v9229_v4 }
 0x3c3   : > { %6157 = vmatpush.bf16.msrb.mxu3 %v9213_v17  ;;  %v6178_v17 = vld [vmem:[#allocation15] sm:$0xf] }
 0x3c4   : > { %v6180_v46 = vperm.slane %v6178_v17, 0 }
 0x3c5   : > { %v6013_v39 = vpop.f32.mrf.mxu0 }
 0x3c6   : > { %v6027_v53 = vpop.f32.mrf.mxu1 }
 0x3c7   : > { %6158 = vmatpush.bf16.msrb.mxu3 %v9197_v21 }
 0x3cb   : > { %6159 = vmatpush.bf16.msrb.mxu3 %v9181_v49  ;;  %v6181_v49 = vperm.slane %v6178_v17, 1 }
 0x3cf   : > { %6160 = vmatpush.bf16.msrb.mxu3 %v9165_v47 }
 0x3d3   : > { %6161 = vmatpush.bf16.msrb.mxu3 %v9149_v29 }
 0x3d7   : > { %6162 = vmatpush.bf16.msrb.mxu3 %v9133_v37  ;;  %v6182_v37 = vperm.slane %v6178_v17, 2 }
 0x3db   : > { %6163 = vmatpush.bf16.msrb.mxu3 %v9117_v14 }
 0x3dd   : > { %v6067_v13 = vpop.f32.mrf.mxu0 }
 0x3de   : > { %6164 = vmatmul.bf16.vlgmr.msrb.gmra.mxu3 %v11283_v5  ;;  %v6081_v19 = vpop.f32.mrf.mxu1  ;;  %v5296_v5 = vld [vmem:[#allocation14] sm:$0xf] }
 0x3df   : > { %v5299_v44 = vperm.slane %v5296_v5, 1  ;;  %v5300_v48 = vperm.slane %v5296_v5, 2  ;;  %v5298_v36 = vperm.slane %v5296_v5, 0  ;;  %v5301_v31 = vperm.slane %v5296_v5, 3 }
 0x3e1   : > { %v6012_v42 = vadd.f32 %v6011_v3, %v5299_v44  ;;  %v6068_v27 = vadd.f32 %v6067_v13, %v5300_v48  ;;  %v5956_v7 = vadd.f32 %v5955_v38, %v5298_v36  ;;  %v6014_v9 = vadd.f32 %v6013_v39, %v5299_v44 }
 0x3e2   : > { %v5983_v8 = vpop.f32.mrf.mxu2  ;;  %v5958_v59 = vadd.f32 %v5957_v15, %v5298_v36  ;;  %v6183_v39 = vperm.slane %v6178_v17, 3 }
 0x3e3   : > { %v6026_v33 = vadd.f32 %v6025_v2, %v6012_v42  ;;  %v5970_v57 = vadd.f32 %v5969_v18, %v5956_v7  ;;  %v6082_v16 = vadd.f32 %v6081_v19, %v6068_v27  ;;  %v6028_v35 = vadd.f32 %v6027_v53, %v6014_v9 }
 0x3e4   : > { %v5972_v54 = vadd.f32 %v5971_v1, %v5958_v59 }
 0x3e5   : > { %v6069_v40 = vpop.f32.mrf.mxu0  ;;  %v5984_v30 = vadd.f32 %v5983_v8, %v5970_v57  ;;  %v10415_v57 = vmov 0  }
 0x3e6   : > { %v6083_v10 = vpop.f32.mrf.mxu1  ;;  %v6070_v28 = vadd.f32 %v6069_v40, %v5300_v48  ;;  %10070 = vset.pattern.permute.xlu1 %v10415_v57  ;;  %10071 = vset.pattern.permute.xlu0 %v10415_v57 }
 0x3e8   : > { %v6084_v22 = vadd.f32 %v6083_v10, %v6070_v28 }
 0x3ea   : > { %v5985_v56 = vpop.f32.mrf.mxu2 }
 0x3eb   : > { %v5986_v23 = vadd.f32 %v5985_v56, %v5972_v54 }
 0x3f2   : > { %v6039_v62 = vpop.f32.mrf.mxu2 }
 0x3f3   : > { %v6040_v24 = vadd.f32 %v6039_v62, %v6026_v33 }
 0x3fa   : > { %v6041_v25 = vpop.f32.mrf.mxu2 }
 0x3fb   : > { %v6042_v11 = vadd.f32 %v6041_v25, %v6028_v35 }
 0x3fd   : > { %v6123_v61 = vpop.f32.mrf.mxu0 }
 0x3fe   : > { %v6124_v34 = vadd.f32 %v6123_v61, %v5301_v31  ;;  %v6137_v50 = vpop.f32.mrf.mxu1 }
 0x400   : > { %v6138_v51 = vadd.f32 %v6137_v50, %v6124_v34 }
 0x404   : > { %v6095_v41 = vpop.f32.mrf.mxu2 }
 0x405   : > { %v6096_v6 = vadd.f32 %v6095_v41, %v6082_v16  ;;  %v6125_v29 = vpop.f32.mrf.mxu0  ;;  %v10072_v16 = vld [vmem:[#allocation2] ss:$0 sm:$0xff] }
 0x406   : > { %v6126_v18 = vadd.f32 %v6125_v29, %v5301_v31 }
 0x40c   : > { %v6097_v43 = vpop.f32.mrf.mxu2 }
 0x40d   : > { %v6098_v60 = vadd.f32 %v6097_v43, %v6084_v22 }
 0x421   : > { %v5997_v0 = vpop.f32.mrf.mxu3 }
 0x422   : > { %v5998_v52 = vadd.f32 %v5997_v0, %v5984_v30 }
 0x424   : > { %v6151_v21 = vpop.f32.mrf.mxu2  ;;  %v6170_v47 = vmax.f32 %v5998_v52, 0.0 }
 0x425   : > { %v6152_v14 = vadd.f32 %v6151_v21, %v6138_v51 }
 0x426   : > { %v6188_v0 = vmul.f32 %v6180_v46, %v6170_v47 }
 0x429   : > { %v5999_v26 = vpop.f32.mrf.mxu3 }
 0x42a   : > { %v6000_v15 = vadd.f32 %v5999_v26, %v5986_v23 }
 0x42c   : > { %v6153_v41 = vpop.f32.mrf.mxu2  ;;  %v6174_v5 = vmax.f32 %v6000_v15, 0.0 }
 0x42e   : > { %v6192_v26 = vmul.f32 %v6180_v46, %v6174_v5 }
 0x431   : > { %v6053_v58 = vpop.f32.mrf.mxu3 }
 0x432   : > { %v6054_v55 = vadd.f32 %v6053_v58, %v6040_v24  ;;  %v6139_v58 = vpop.f32.mrf.mxu1 }
 0x433   : > { %v6140_v25 = vadd.f32 %v6139_v58, %v6126_v18 }
 0x434   : > { %v6171_v45 = vmax.f32 %v6054_v55, 0.0 }
 0x435   : > { %v6154_v48 = vadd.f32 %v6153_v41, %v6140_v25 }
 0x436   : > { %v6189_v38 = vmul.f32 %v6181_v49, %v6171_v45 }
 0x438   : > { %v6196_v19 = vadd.f32 %v6189_v38, %v6188_v0 }
 0x439   : > { %v6055_v12 = vpop.f32.mrf.mxu3 }
 0x43a   : > { %v6056_v8 = vadd.f32 %v6055_v12, %v6042_v11 }
 0x43c   : > { %v6175_v53 = vmax.f32 %v6056_v8, 0.0 }
 0x43e   : > { %v6193_v12 = vmul.f32 %v6181_v49, %v6175_v53 }
 0x440   : > { %v6201_v10 = vadd.f32 %v6193_v12, %v6192_v26 }
 0x441   : > { %v6109_v20 = vpop.f32.mrf.mxu3 }
 0x442   : > { %v6110_v63 = vadd.f32 %v6109_v20, %v6096_v6 }
 0x444   : > { %v6172_v32 = vmax.f32 %v6110_v63, 0.0 }
 0x446   : > { %v6190_v62 = vmul.f32 %v6182_v37, %v6172_v32 }
 0x448   : > { %v6197_v40 = vadd.f32 %v6196_v19, %v6190_v62 }
 0x449   : > { %v6111_v4 = vpop.f32.mrf.mxu3 }
 0x44a   : > { %v6112_v2 = vadd.f32 %v6111_v4, %v6098_v60 }
 0x44c   : > { %v6176_v56 = vmax.f32 %v6112_v2, 0.0 }
 0x44e   : > { %v6194_v42 = vmul.f32 %v6182_v37, %v6176_v56 }
 0x450   : > { %v6202_v33 = vadd.f32 %v6201_v10, %v6194_v42 }
 0x461   : > { %v6165_v3 = vpop.f32.mrf.mxu3 }
 0x462   : > { %v6166_v1 = vadd.f32 %v6165_v3, %v6152_v14 }
 0x464   : > { %v6173_v13 = vmax.f32 %v6166_v1, 0.0 }
 0x466   : > { %v6191_v44 = vmul.f32 %v6183_v39, %v6173_v13 }
 0x468   : > { %v6198_v36 = vadd.f32 %v6197_v40, %v6191_v44 }
 0x469   : > { %v6167_v20 = vpop.f32.mrf.mxu3 }
 0x46a   : > { %v6168_v27 = vadd.f32 %v6167_v20, %v6154_v48  ;;  %6199 = vadd.xlane.f32.xlu0 %v6198_v36 }
 0x46c   : > { %v6177_v7 = vmax.f32 %v6168_v27, 0.0 }
 0x46e   : > { %v6195_v43 = vmul.f32 %v6183_v39, %v6177_v7 }
 0x470   : > { %v6203_v61 = vadd.f32 %v6202_v33, %v6195_v43 }
 0x472   : > { %6204 = vadd.xlane.f32.xlu0 %v6203_v61 }
 0x4dd   : > { %v6200_v31 = vpop.xlane.xlu0 %6199 }
 0x4de   : > { %v6210_v24 = vadd.f32 %v10072_v16, %v6200_v31 }
 0x4e0   : > { %10073 = vtanh.f32 %v6210_v24 }
 0x4e5   : > { %v6205_v30 = vpop.xlane.xlu0 %6204 }
 0x4e6   : > { %v10074_v9 = vpop.eup %10073  ;;  %v6211_v6 = vadd.f32 %v10072_v16, %v6205_v30 }
 0x4e7   : > { %6216 = vperm.xlu1 %10070, %v10074_v9  }
 0x4e8   : > { %10075 = vtanh.f32 %v6211_v6 }
 0x4ee   : > { %v10076_v55 = vpop.eup %10075 }
 0x4ef   : > { %6221 = vperm.xlu1 %10070, %v10076_v55  }
 0x559   : > { %v6217_v28 = vpop.permute.xlu1 %6216 }
 0x55a   : > { %6224 = vst [vmem:[%s463_s20] sm:$0xff] %v6217_v28 }
 0x561   : > { %v6222_v52 = vpop.permute.xlu1 %6221 }
 0x562   : > { %6225 = vst [vmem:[%s463_s20 + $0x8] sm:$0xff] %v6222_v52 }
 0x563   : > { %10345 = shalt.err (!%p10342_p9)
}
 0x564   : > { %s10416_s16 = smov 128   ;;  %s10417_s1 = smov 8  }
 0x565   : > { %9974 = dma.vmem_to_hbm [thread:$0]  (%p10571_p0), %s6240_s26, 256, %s6242_s30, %s6227_s15, %s10416_s16, %s10416_s16, %s10417_s1  }
 0x566 PF: > { %s6256_s18 = sand.u32 1, %s10388_s11   ;;  %p11406_p10 = scmp.ge.s32.totalorder %s10400_s14, 2 }
 0x567   : > { %s6257_s24 = scalar_lea.sflag [#allocation5], %s6256_s18 }
 0x568   : > { %p10003_p11 = pnand %p11406_p10, %p10577_p6 }
 0x56a   : > { %p10004_p12 = pneg %p10003_p11 }
 0x56c   : > { %10383 = dma.done.wait (%p10004_p12), %s6257_s24, 256  }
 0x56d   : > { %10385 = vsyncadd (%p10004_p12), %s6257_s24, 4294967040  ;;  %p28_p2 = scmp.ge.s32.totalorder %s10547_s27, 4   ;;  %s11407_s11 = smov %s10392_s12 }
 0x56e   : > { %s11408_s12 = smov %s10396_s13  ;;  %s11409_s13 = smov %s10559_s28 }
 0x56f   : > { %s11410_s14 = smov %s10547_s27  ;;  %30 = sbr.rel (!%p28_p2) target bundleno = 13 (0xd), region = 129 }
 0x574   :  { %6263 = vsyncpa [#allocation4], 1 }
 0x575   :  { %6265 = vsyncpa [#allocation4 + $0x1], 1 }
 0x576   :  { %6266 = vsyncpa [#allocation7], 1 }
 0x577   :  { %6267 = vsyncpa [#allocation10], 1 }
 0x578   :  { %6268 = vsyncpa [#allocation13], 1 }
 0x579   :  { %6269 = vsyncpa [#allocation16], 1 }
 0x57a   :  { %6270 = vsyncpa [#allocation5], 1 }
 0x57b   :  { %6272 = vsyncpa [#allocation5 + $0x1], 1 }

</bundles_post_ra>
